<compile_context>
chip_gen: v5e
topology: v5e:2x2
jax: 0.10.0
libtpu: 0.0.40
codegen_flags: <defaults>
</compile_context>

<pallas_src>
import jax
import jax.numpy as jnp
from jax import lax
from jax.experimental import pallas as pl
from jax.experimental.pallas import tpu as pltpu


def _round_up(x, m):
    return (x + m - 1) // m * m


def _pad_axis(a, axis, new_size):
    if a.shape[axis] == new_size:
        return a
    pad = [(0, 0)] * a.ndim
    pad[axis] = (0, new_size - a.shape[axis])
    return jnp.pad(a, pad)


_TAPS = tuple((kh - 1, kw - 1) for kh in range(3) for kw in range(3))


def _make_kernel(B, H, W, Cin_p, Cout_p, compute_dtype):
    Li = W * Cin_p        # packed input row width  (lanes)
    Lo = W * Cout_p       # packed output row width (lanes)
    cdt = compute_dtype

    def store_taps(dst_ref, src, C, L):
        # src: (B, H, L) value.  dst_ref: (B, H, 9*L) VMEM scratch.
        # For each 3x3 tap, store the shifted valid block at its static,
        # 128-lane-aligned column offset and zero only the halo strips
        # (SAME padding).  No concatenated zero slabs, no full-slab copies.
        for t, (dh, dw) in enumerate(_TAPS):
            dwc = dw * C
            base = t * L
            r0, r1 = max(0, -dh), H - max(0, dh)      # valid dst rows
            c0, c1 = max(0, -dwc), L - max(0, dwc)    # valid dst cols (in tap)
            if dh > 0:      # bottom halo row(s)
                dst_ref[:, H - dh:H, base:base + L] = jnp.zeros((B, dh, L), cdt)
            elif dh < 0:    # top halo row(s)
                dst_ref[:, 0:-dh, base:base + L] = jnp.zeros((B, -dh, L), cdt)
            if dwc > 0:     # right halo columns
                dst_ref[:, r0:r1, base + L - dwc:base + L] = jnp.zeros(
                    (B, r1 - r0, dwc), cdt)
            elif dwc < 0:   # left halo columns
                dst_ref[:, r0:r1, base:base - dwc] = jnp.zeros(
                    (B, r1 - r0, -dwc), cdt)
            dst_ref[:, r0:r1, base + c0:base + c1] = src[
                :, r0 + dh:r1 + dh, c0 + dwc:c1 + dwc]

    def kernel(x_ref, wf_ref, bf_ref, w2_ref, o_ref, tx_ref, ty_ref):
        # x_ref : (B, H, W*Cin_p)          packed input block (batch sub-block)
        # wf_ref: (9*W*Cin_p, 2*W*Cout_p)  fused [conv1 | conv_res] expanded weights
        # bf_ref: (1, 2*W*Cout_p)          fused packed biases [b1 | br + b2] (f32)
        # w2_ref: (9*W*Cout_p, W*Cout_p)   conv2 expanded weights
        # o_ref : (B, H, W*Cout_p)         packed output block (lane-dense)
        # tx_ref/ty_ref: VMEM tap scratch for input / hidden activations
        x = x_ref[...].astype(cdt)                            # (B, H, Li)

        # fused conv1 | conv_res: one matmul on the shared input taps
        store_taps(tx_ref, x, Cin_p, Li)
        yf = jnp.dot(tx_ref[...].reshape(B * H, 9 * Li), wf_ref[...],
                     preferred_element_type=jnp.float32) + bf_ref[...]
        y1 = jnp.maximum(yf[:, :Lo], 0.0)                     # relu(conv1 + b1)
        res = yf[:, Lo:]                                      # conv_res + br + b2

        # conv2: one matmul on the hidden-activation taps (bias already folded)
        store_taps(ty_ref, y1.astype(cdt).reshape(B, H, Lo), Cout_p, Lo)
        y2 = jnp.dot(ty_ref[...].reshape(B * H, 9 * Lo), w2_ref[...],
                     preferred_element_type=jnp.float32)

        o_ref[...] = (y2 + res).reshape(B, H, Lo).astype(o_ref.dtype)

    return kernel


def _expand_packed_weight(wt, W):
    """(3,3,Ci,Co) HWIO conv weight -> (9*W*Ci, W*Co) per-w block-diagonal matrix."""
    kh, kw, ci, co = wt.shape
    eye = jnp.eye(W, dtype=wt.dtype)
    r = jnp.einsum('tio,wv->twivo', wt.reshape(kh * kw, ci, co), eye)
    return r.reshape(kh * kw * W * ci, W * co)


def prepare_resnet_block_params(w1, b1, w2, b2, wr, br, *, W,
                                compute_dtype=jnp.float32):
    """One-time (cacheable) layout plumbing: channel padding to multiples of 8,
    per-w block-diagonal weight expansion, bias packing and b2 folding."""
    Cin, Cout = w1.shape[2], w1.shape[3]
    Cin_p, Cout_p = _round_up(Cin, 8), _round_up(Cout, 8)
    assert W * Cout_p <= 256 and W * Cin_p <= 256, (
        "packed-W formulation is a small-W*C special case; use a row-im2col "
        "formulation for larger shapes")  # TODO(synk): row-im2col fallback path
    w1p = _pad_axis(_pad_axis(w1, 2, Cin_p), 3, Cout_p)
    wrp = _pad_axis(_pad_axis(wr, 2, Cin_p), 3, Cout_p)
    w2p = _pad_axis(_pad_axis(w2, 2, Cout_p), 3, Cout_p)
    b1p = _pad_axis(b1, 0, Cout_p)
    brp = _pad_axis(br + b2, 0, Cout_p)          # fold conv2 bias into residual bias
    wf = jnp.concatenate([_expand_packed_weight(w1p, W),
                          _expand_packed_weight(wrp, W)],
                         axis=1).astype(compute_dtype)          # (9*W*Cin_p, 2*W*Cout_p)
    w2e = _expand_packed_weight(w2p, W).astype(compute_dtype)   # (9*W*Cout_p, W*Cout_p)
    bf = jnp.concatenate([jnp.tile(b1p, W), jnp.tile(brp, W)]
                         ).reshape(1, 2 * W * Cout_p).astype(jnp.float32)
    return dict(wf=wf, bf=bf, w2e=w2e, W=W, Cin=Cin, Cout=Cout,
                Cin_p=Cin_p, Cout_p=Cout_p, compute_dtype=compute_dtype)


def _pick_block_n(N, H):
    # Fill ~256 MXU rows (M = block_n * H), but keep >= 2 grid steps when N >= 2
    # so v7x's two TensorCores both get work.
    b = max(1, 256 // max(H, 1))
    if N >= 2:
        b = min(b, -(-N // 2))
    return max(1, min(b, N))


def resnet_block_packed(x_packed, params, *, block_n=None):
    """x_packed: (N, H, W*Cin_p) packed activations -> (N, H, W*Cout_p) packed."""
    N, H, Li = x_packed.shape
    W, Cin_p, Cout_p = params['W'], params['Cin_p'], params['Cout_p']
    cdt = params['compute_dtype']
    assert Li == W * Cin_p
    Lo = W * Cout_p

    B = _pick_block_n(N, H) if block_n is None else block_n
    Np = _round_up(N, B)
    xp = _pad_axis(x_packed, 0, Np)
    grid = (Np // B,)

    csz = jnp.dtype(cdt).itemsize
    xsz = jnp.dtype(x_packed.dtype).itemsize
    per_step = (2 * B * H * Li * xsz          # input block  (double-buffered)
                + 2 * B * H * Lo * xsz        # output block (double-buffered)
                + 9 * Li * 2 * Lo * csz       # wf  (single-buffered)
                + 9 * Lo * Lo * csz           # w2e (single-buffered)
                + 2 * Lo * 4                  # bf
                + B * H * 9 * Li * csz        # input tap scratch
                + B * H * 9 * Lo * csz)       # hidden tap scratch
    vmem_limit = int(min(max(2 * per_step, 16 << 20), 64 << 20))

    def build(single_buffer_weights):
        # Weights/bias never change across the grid -> single buffer them.
        wkw = {'pipeline_mode': pl.Buffered(1)} if single_buffer_weights else {}
        return pl.pallas_call(
            _make_kernel(B, H, W, Cin_p, Cout_p, cdt),
            out_shape=jax.ShapeDtypeStruct((Np, H, Lo), x_packed.dtype),
            grid_spec=pltpu.PrefetchScalarGridSpec(
                num_scalar_prefetch=0,
                grid=grid,
                in_specs=[
                    pl.BlockSpec((B, H, Li), lambda n: (n, 0, 0)),
                    pl.BlockSpec((9 * Li, 2 * Lo), lambda n: (0, 0), **wkw),
                    pl.BlockSpec((1, 2 * Lo), lambda n: (0, 0), **wkw),
                    pl.BlockSpec((9 * Lo, Lo), lambda n: (0, 0), **wkw),
                ],
                out_specs=pl.BlockSpec((B, H, Lo), lambda n: (n, 0, 0)),
                scratch_shapes=[pltpu.VMEM((B, H, 9 * Li), cdt),
                                pltpu.VMEM((B, H, 9 * Lo), cdt)],
            ),
            compiler_params=pltpu.CompilerParams(
                dimension_semantics=("parallel",),
                vmem_limit_bytes=vmem_limit),
        )

    args = (xp, params['wf'], params['bf'], params['w2e'])
    try:
        out = build(True)(*args)
    except Exception:
        # Fallback for jax versions where Buffered(1) is not accepted for the
        # implicit pallas_call pipeline: use default (double) buffering.
        out = build(False)(*args)
    return out[:N]


def resnet_block(x_nchw, w1, b1, w2, b2, wr, br, *,
                 compute_dtype=jnp.float32, block_n=None):
    # x_nchw: (N, Cin, H, W) — PyTorch layout at the API boundary.
    # For stacks of blocks, call prepare_resnet_block_params() once per block and
    # chain resnet_block_packed() to keep activations in the packed layout.
    N, Cin, H, W = x_nchw.shape
    params = prepare_resnet_block_params(w1, b1, w2, b2, wr, br, W=W,
                                         compute_dtype=compute_dtype)
    Cin_p, Cout_p, Cout = params['Cin_p'], params['Cout_p'], params['Cout']
    x = jnp.transpose(x_nchw, (0, 2, 3, 1))                  # NHWC
    x = _pad_axis(x, 3, Cin_p).reshape(N, H, W * Cin_p)      # packed, Cin padded to 8
    out = resnet_block_packed(x, params, block_n=block_n)    # (N, H, W*Cout_p)
    out = out.reshape(N, H, W, Cout_p)[..., :Cout]
    return jnp.transpose(out, (0, 3, 1, 2))


def _reference(x_nchw, w1, b1, w2, b2, wr, br):
    # Pure-JAX reference (NHWC conv) for correctness checking.
    x = jnp.transpose(x_nchw, (0, 2, 3, 1))
    dn = ('NHWC', 'HWIO', 'NHWC')

    def conv(inp, w, b):
        y = lax.conv_general_dilated(inp, w, window_strides=(1, 1),
                                     padding='SAME', dimension_numbers=dn)
        return y + b.reshape(1, 1, 1, -1)

    y1 = jnp.maximum(conv(x, w1, b1), 0.0)
    y2 = conv(y1, w2, b2)
    res = conv(x, wr, br)
    return jnp.transpose(y2 + res, (0, 3, 1, 2))


if __name__ == "__main__":
    # Small shapes consistent with the module: batch=2, Cin=4, Cout=8, 16x16.
    N, Cin, Cout, H, W = 2, 4, 8, 16, 16
    key = jax.random.PRNGKey(0)
    kx, k1, kb1, k2, kb2, kr, kbr = jax.random.split(key, 7)

    x = jax.random.normal(kx, (N, Cin, H, W), jnp.float32)
    # Deterministic synthetic parameters (HWIO layout), kaiming-ish scale.
    w1 = jax.random.normal(k1, (3, 3, Cin, Cout), jnp.float32) * 0.1
    b1 = jax.random.normal(kb1, (Cout,), jnp.float32) * 0.05
    w2 = jax.random.normal(k2, (3, 3, Cout, Cout), jnp.float32) * 0.1
    b2 = jax.random.normal(kb2, (Cout,), jnp.float32) * 0.05
    wr = jax.random.normal(kr, (3, 3, Cin, Cout), jnp.float32) * 0.1
    br = jax.random.normal(kbr, (Cout,), jnp.float32) * 0.05

    out = resnet_block(x, w1, b1, w2, b2, wr, br)
    out = jax.block_until_ready(out)

    ref = jax.block_until_ready(_reference(x, w1, b1, w2, b2, wr, br))
    assert out.shape == (N, Cout, H, W)
    assert jnp.allclose(out, ref, rtol=1e-3, atol=1e-3), "mismatch vs reference"

    print("KERNEL_OK")
</pallas_src>

<mosaic_0001>
module attributes {stable_mosaic.version = 11 : i64} {
  func.func @kernel(%arg0: i32, %arg1: memref<1x16x128xf32, #tpu.memory_space<vmem>>, %arg2: memref<1152x256xf32, #tpu.memory_space<vmem>>, %arg3: memref<1x256xf32, #tpu.memory_space<vmem>>, %arg4: memref<1152x128xf32, #tpu.memory_space<vmem>>, %arg5: memref<1x16x128xf32, #tpu.memory_space<vmem>>, %arg6: memref<1x16x1152xf32, #tpu.memory_space<vmem>>, %arg7: memref<1x16x1152xf32, #tpu.memory_space<vmem>>) attributes {dimension_semantics = [#tpu.dimension_semantics<parallel>], iteration_bounds = array<i64: 2>, scalar_prefetch = 0 : i64, scratch_operands = 2 : i64, tpu.core_type = #tpu.core_type<tc>, window_params = [{transform_indices = @transform_0, window_bounds = array<i64: 1, 16, 128>}, {pipeline_mode = #tpu.pipeline_mode<synchronous>, transform_indices = @transform_1, window_bounds = array<i64: 1152, 256>}, {pipeline_mode = #tpu.pipeline_mode<synchronous>, transform_indices = @transform_2, window_bounds = array<i64: 1, 256>}, {pipeline_mode = #tpu.pipeline_mode<synchronous>, transform_indices = @transform_3, window_bounds = array<i64: 1152, 128>}, {transform_indices = @transform_4, window_bounds = array<i64: 1, 16, 128>}]} {
    %c0 = arith.constant 0 : index
    %c0_0 = arith.constant 0 : index
    %c0_1 = arith.constant 0 : index
    %0 = vector.load %arg1[%c0, %c0_0, %c0_1] : memref<1x16x128xf32, #tpu.memory_space<vmem>>, vector<1x16x128xf32>
    %cst = arith.constant 0.000000e+00 : f32
    %1 = vector.broadcast %cst : f32 to vector<1x1x128xf32>
    %c0_2 = arith.constant 0 : index
    %c0_3 = arith.constant 0 : index
    %c0_4 = arith.constant 0 : index
    %2 = vector.load %arg6[%c0_2, %c0_3, %c0_4] : memref<1x16x1152xf32, #tpu.memory_space<vmem>>, vector<1x1x128xf32>
    tpu.vector_store %arg6[%c0_2, %c0_3, %c0_4], %1 {strides = array<i32>} : memref<1x16x1152xf32, #tpu.memory_space<vmem>>, vector<1x1x128xf32>,
    %cst_5 = arith.constant 0.000000e+00 : f32
    %3 = vector.broadcast %cst_5 : f32 to vector<1x15x8xf32>
    %c0_6 = arith.constant 0 : index
    %c1 = arith.constant 1 : index
    %c0_7 = arith.constant 0 : index
    %4 = vector.load %arg6[%c0_6, %c1, %c0_7] : memref<1x16x1152xf32, #tpu.memory_space<vmem>>, vector<1x15x8xf32>
    tpu.vector_store %arg6[%c0_6, %c1, %c0_7], %3 {strides = array<i32>} : memref<1x16x1152xf32, #tpu.memory_space<vmem>>, vector<1x15x8xf32>,
    %5 = vector.extract_strided_slice %0 {offsets = [0, 0, 0], sizes = [1, 15, 120], strides = [1, 1, 1]} : vector<1x16x128xf32> to vector<1x15x120xf32>
    %c0_8 = arith.constant 0 : index
    %c1_9 = arith.constant 1 : index
    %c8 = arith.constant 8 : index
    %6 = vector.load %arg6[%c0_8, %c1_9, %c8] : memref<1x16x1152xf32, #tpu.memory_space<vmem>>, vector<1x15x120xf32>
    tpu.vector_store %arg6[%c0_8, %c1_9, %c8], %5 {strides = array<i32>} : memref<1x16x1152xf32, #tpu.memory_space<vmem>>, vector<1x15x120xf32>,
    %cst_10 = arith.constant 0.000000e+00 : f32
    %7 = vector.broadcast %cst_10 : f32 to vector<1x1x128xf32>
    %c0_11 = arith.constant 0 : index
    %c0_12 = arith.constant 0 : index
    %c128 = arith.constant 128 : index
    %8 = vector.load %arg6[%c0_11, %c0_12, %c128] : memref<1x16x1152xf32, #tpu.memory_space<vmem>>, vector<1x1x128xf32>
    tpu.vector_store %arg6[%c0_11, %c0_12, %c128], %7 {strides = array<i32>} : memref<1x16x1152xf32, #tpu.memory_space<vmem>>, vector<1x1x128xf32>,
    %9 = vector.extract_strided_slice %0 {offsets = [0, 0, 0], sizes = [1, 15, 128], strides = [1, 1, 1]} : vector<1x16x128xf32> to vector<1x15x128xf32>
    %c0_13 = arith.constant 0 : index
    %c1_14 = arith.constant 1 : index
    %c128_15 = arith.constant 128 : index
    %10 = vector.load %arg6[%c0_13, %c1_14, %c128_15] : memref<1x16x1152xf32, #tpu.memory_space<vmem>>, vector<1x15x128xf32>
    tpu.vector_store %arg6[%c0_13, %c1_14, %c128_15], %9 {strides = array<i32>} : memref<1x16x1152xf32, #tpu.memory_space<vmem>>, vector<1x15x128xf32>,
    %cst_16 = arith.constant 0.000000e+00 : f32
    %11 = vector.broadcast %cst_16 : f32 to vector<1x1x128xf32>
    %c0_17 = arith.constant 0 : index
    %c0_18 = arith.constant 0 : index
    %c256 = arith.constant 256 : index
    %12 = vector.load %arg6[%c0_17, %c0_18, %c256] : memref<1x16x1152xf32, #tpu.memory_space<vmem>>, vector<1x1x128xf32>
    tpu.vector_store %arg6[%c0_17, %c0_18, %c256], %11 {strides = array<i32>} : memref<1x16x1152xf32, #tpu.memory_space<vmem>>, vector<1x1x128xf32>,
    %cst_19 = arith.constant 0.000000e+00 : f32
    %13 = vector.broadcast %cst_19 : f32 to vector<1x15x8xf32>
    %c0_20 = arith.constant 0 : index
    %c1_21 = arith.constant 1 : index
    %c376 = arith.constant 376 : index
    %14 = vector.load %arg6[%c0_20, %c1_21, %c376] : memref<1x16x1152xf32, #tpu.memory_space<vmem>>, vector<1x15x8xf32>
    tpu.vector_store %arg6[%c0_20, %c1_21, %c376], %13 {strides = array<i32>} : memref<1x16x1152xf32, #tpu.memory_space<vmem>>, vector<1x15x8xf32>,
    %15 = vector.extract_strided_slice %0 {offsets = [0, 0, 8], sizes = [1, 15, 120], strides = [1, 1, 1]} : vector<1x16x128xf32> to vector<1x15x120xf32>
    %c0_22 = arith.constant 0 : index
    %c1_23 = arith.constant 1 : index
    %c256_24 = arith.constant 256 : index
    %16 = vector.load %arg6[%c0_22, %c1_23, %c256_24] : memref<1x16x1152xf32, #tpu.memory_space<vmem>>, vector<1x15x120xf32>
    tpu.vector_store %arg6[%c0_22, %c1_23, %c256_24], %15 {strides = array<i32>} : memref<1x16x1152xf32, #tpu.memory_space<vmem>>, vector<1x15x120xf32>,
    %cst_25 = arith.constant 0.000000e+00 : f32
    %17 = vector.broadcast %cst_25 : f32 to vector<1x16x8xf32>
    %c0_26 = arith.constant 0 : index
    %c0_27 = arith.constant 0 : index
    %c384 = arith.constant 384 : index
    %18 = vector.load %arg6[%c0_26, %c0_27, %c384] : memref<1x16x1152xf32, #tpu.memory_space<vmem>>, vector<1x16x8xf32>
    tpu.vector_store %arg6[%c0_26, %c0_27, %c384], %17 {strides = array<i32>} : memref<1x16x1152xf32, #tpu.memory_space<vmem>>, vector<1x16x8xf32>,
    %19 = vector.extract_strided_slice %0 {offsets = [0, 0, 0], sizes = [1, 16, 120], strides = [1, 1, 1]} : vector<1x16x128xf32> to vector<1x16x120xf32>
    %c0_28 = arith.constant 0 : index
    %c0_29 = arith.constant 0 : index
    %c392 = arith.constant 392 : index
    %20 = vector.load %arg6[%c0_28, %c0_29, %c392] : memref<1x16x1152xf32, #tpu.memory_space<vmem>>, vector<1x16x120xf32>
    tpu.vector_store %arg6[%c0_28, %c0_29, %c392], %19 {strides = array<i32>} : memref<1x16x1152xf32, #tpu.memory_space<vmem>>, vector<1x16x120xf32>,
    %c0_30 = arith.constant 0 : index
    %c0_31 = arith.constant 0 : index
    %c512 = arith.constant 512 : index
    %21 = vector.load %arg6[%c0_30, %c0_31, %c512] : memref<1x16x1152xf32, #tpu.memory_space<vmem>>, vector<1x16x128xf32>
    tpu.vector_store %arg6[%c0_30, %c0_31, %c512], %0 {strides = array<i32>} : memref<1x16x1152xf32, #tpu.memory_space<vmem>>, vector<1x16x128xf32>,
    %cst_32 = arith.constant 0.000000e+00 : f32
    %22 = vector.broadcast %cst_32 : f32 to vector<1x16x8xf32>
    %c0_33 = arith.constant 0 : index
    %c0_34 = arith.constant 0 : index
    %c760 = arith.constant 760 : index
    %23 = vector.load %arg6[%c0_33, %c0_34, %c760] : memref<1x16x1152xf32, #tpu.memory_space<vmem>>, vector<1x16x8xf32>
    tpu.vector_store %arg6[%c0_33, %c0_34, %c760], %22 {strides = array<i32>} : memref<1x16x1152xf32, #tpu.memory_space<vmem>>, vector<1x16x8xf32>,
    %24 = vector.extract_strided_slice %0 {offsets = [0, 0, 8], sizes = [1, 16, 120], strides = [1, 1, 1]} : vector<1x16x128xf32> to vector<1x16x120xf32>
    %c0_35 = arith.constant 0 : index
    %c0_36 = arith.constant 0 : index
    %c640 = arith.constant 640 : index
    %25 = vector.load %arg6[%c0_35, %c0_36, %c640] : memref<1x16x1152xf32, #tpu.memory_space<vmem>>, vector<1x16x120xf32>
    tpu.vector_store %arg6[%c0_35, %c0_36, %c640], %24 {strides = array<i32>} : memref<1x16x1152xf32, #tpu.memory_space<vmem>>, vector<1x16x120xf32>,
    %cst_37 = arith.constant 0.000000e+00 : f32
    %26 = vector.broadcast %cst_37 : f32 to vector<1x1x128xf32>
    %c0_38 = arith.constant 0 : index
    %c15 = arith.constant 15 : index
    %c768 = arith.constant 768 : index
    %27 = vector.load %arg6[%c0_38, %c15, %c768] : memref<1x16x1152xf32, #tpu.memory_space<vmem>>, vector<1x1x128xf32>
    tpu.vector_store %arg6[%c0_38, %c15, %c768], %26 {strides = array<i32>} : memref<1x16x1152xf32, #tpu.memory_space<vmem>>, vector<1x1x128xf32>,
    %cst_39 = arith.constant 0.000000e+00 : f32
    %28 = vector.broadcast %cst_39 : f32 to vector<1x15x8xf32>
    %c0_40 = arith.constant 0 : index
    %c0_41 = arith.constant 0 : index
    %c768_42 = arith.constant 768 : index
    %29 = vector.load %arg6[%c0_40, %c0_41, %c768_42] : memref<1x16x1152xf32, #tpu.memory_space<vmem>>, vector<1x15x8xf32>
    tpu.vector_store %arg6[%c0_40, %c0_41, %c768_42], %28 {strides = array<i32>} : memref<1x16x1152xf32, #tpu.memory_space<vmem>>, vector<1x15x8xf32>,
    %30 = vector.extract_strided_slice %0 {offsets = [0, 1, 0], sizes = [1, 15, 120], strides = [1, 1, 1]} : vector<1x16x128xf32> to vector<1x15x120xf32>
    %c0_43 = arith.constant 0 : index
    %c0_44 = arith.constant 0 : index
    %c776 = arith.constant 776 : index
    %31 = vector.load %arg6[%c0_43, %c0_44, %c776] : memref<1x16x1152xf32, #tpu.memory_space<vmem>>, vector<1x15x120xf32>
    tpu.vector_store %arg6[%c0_43, %c0_44, %c776], %30 {strides = array<i32>} : memref<1x16x1152xf32, #tpu.memory_space<vmem>>, vector<1x15x120xf32>,
    %cst_45 = arith.constant 0.000000e+00 : f32
    %32 = vector.broadcast %cst_45 : f32 to vector<1x1x128xf32>
    %c0_46 = arith.constant 0 : index
    %c15_47 = arith.constant 15 : index
    %c896 = arith.constant 896 : index
    %33 = vector.load %arg6[%c0_46, %c15_47, %c896] : memref<1x16x1152xf32, #tpu.memory_space<vmem>>, vector<1x1x128xf32>
    tpu.vector_store %arg6[%c0_46, %c15_47, %c896], %32 {strides = array<i32>} : memref<1x16x1152xf32, #tpu.memory_space<vmem>>, vector<1x1x128xf32>,
    %34 = vector.extract_strided_slice %0 {offsets = [0, 1, 0], sizes = [1, 15, 128], strides = [1, 1, 1]} : vector<1x16x128xf32> to vector<1x15x128xf32>
    %c0_48 = arith.constant 0 : index
    %c0_49 = arith.constant 0 : index
    %c896_50 = arith.constant 896 : index
    %35 = vector.load %arg6[%c0_48, %c0_49, %c896_50] : memref<1x16x1152xf32, #tpu.memory_space<vmem>>, vector<1x15x128xf32>
    tpu.vector_store %arg6[%c0_48, %c0_49, %c896_50], %34 {strides = array<i32>} : memref<1x16x1152xf32, #tpu.memory_space<vmem>>, vector<1x15x128xf32>,
    %cst_51 = arith.constant 0.000000e+00 : f32
    %36 = vector.broadcast %cst_51 : f32 to vector<1x1x128xf32>
    %c0_52 = arith.constant 0 : index
    %c15_53 = arith.constant 15 : index
    %c1024 = arith.constant 1024 : index
    %37 = vector.load %arg6[%c0_52, %c15_53, %c1024] : memref<1x16x1152xf32, #tpu.memory_space<vmem>>, vector<1x1x128xf32>
    tpu.vector_store %arg6[%c0_52, %c15_53, %c1024], %36 {strides = array<i32>} : memref<1x16x1152xf32, #tpu.memory_space<vmem>>, vector<1x1x128xf32>,
    %cst_54 = arith.constant 0.000000e+00 : f32
    %38 = vector.broadcast %cst_54 : f32 to vector<1x15x8xf32>
    %c0_55 = arith.constant 0 : index
    %c0_56 = arith.constant 0 : index
    %c1144 = arith.constant 1144 : index
    %39 = vector.load %arg6[%c0_55, %c0_56, %c1144] : memref<1x16x1152xf32, #tpu.memory_space<vmem>>, vector<1x15x8xf32>
    tpu.vector_store %arg6[%c0_55, %c0_56, %c1144], %38 {strides = array<i32>} : memref<1x16x1152xf32, #tpu.memory_space<vmem>>, vector<1x15x8xf32>,
    %40 = vector.extract_strided_slice %0 {offsets = [0, 1, 8], sizes = [1, 15, 120], strides = [1, 1, 1]} : vector<1x16x128xf32> to vector<1x15x120xf32>
    %c0_57 = arith.constant 0 : index
    %c0_58 = arith.constant 0 : index
    %c1024_59 = arith.constant 1024 : index
    %41 = vector.load %arg6[%c0_57, %c0_58, %c1024_59] : memref<1x16x1152xf32, #tpu.memory_space<vmem>>, vector<1x15x120xf32>
    tpu.vector_store %arg6[%c0_57, %c0_58, %c1024_59], %40 {strides = array<i32>} : memref<1x16x1152xf32, #tpu.memory_space<vmem>>, vector<1x15x120xf32>,
    %c0_60 = arith.constant 0 : index
    %c0_61 = arith.constant 0 : index
    %c0_62 = arith.constant 0 : index
    %42 = vector.load %arg6[%c0_60, %c0_61, %c0_62] : memref<1x16x1152xf32, #tpu.memory_space<vmem>>, vector<1x16x1152xf32>
    %43 = vector.shape_cast %42 : vector<1x16x1152xf32> to vector<16x1152xf32>
    %c0_63 = arith.constant 0 : index
    %c0_64 = arith.constant 0 : index
    %44 = vector.load %arg2[%c0_63, %c0_64] : memref<1152x256xf32, #tpu.memory_space<vmem>>, vector<1152x256xf32>
    %cst_65 = arith.constant dense<0.000000e+00> : vector<16x256xf32>
    %45 = tpu.matmul %43, %44, %cst_65 {dimension_numbers = #tpu.dot_dimension_numbers<[1], [0], [0], [1], [0, 0, 1, 1], [], []>} : vector<16x1152xf32>, vector<1152x256xf32>, vector<16x256xf32> -> vector<16x256xf32>
    %c0_66 = arith.constant 0 : index
    %c0_67 = arith.constant 0 : index
    %46 = vector.load %arg3[%c0_66, %c0_67] : memref<1x256xf32, #tpu.memory_space<vmem>>, vector<1x256xf32>
    %47 = vector.broadcast %46 : vector<1x256xf32> to vector<16x256xf32>
    %48 = arith.addf %45, %47 : vector<16x256xf32>
    %49 = vector.extract_strided_slice %48 {offsets = [0, 0], sizes = [16, 128], strides = [1, 1]} : vector<16x256xf32> to vector<16x128xf32>
    %cst_68 = arith.constant 0.000000e+00 : f32
    %50 = vector.broadcast %cst_68 : f32 to vector<16x128xf32>
    %51 = arith.maximumf %49, %50 : vector<16x128xf32>
    %52 = vector.extract_strided_slice %48 {offsets = [0, 128], sizes = [16, 128], strides = [1, 1]} : vector<16x256xf32> to vector<16x128xf32>
    %53 = vector.shape_cast %51 : vector<16x128xf32> to vector<1x16x128xf32>
    %cst_69 = arith.constant 0.000000e+00 : f32
    %54 = vector.broadcast %cst_69 : f32 to vector<1x1x128xf32>
    %c0_70 = arith.constant 0 : index
    %c0_71 = arith.constant 0 : index
    %c0_72 = arith.constant 0 : index
    %55 = vector.load %arg7[%c0_70, %c0_71, %c0_72] : memref<1x16x1152xf32, #tpu.memory_space<vmem>>, vector<1x1x128xf32>
    tpu.vector_store %arg7[%c0_70, %c0_71, %c0_72], %54 {strides = array<i32>} : memref<1x16x1152xf32, #tpu.memory_space<vmem>>, vector<1x1x128xf32>,
    %cst_73 = arith.constant 0.000000e+00 : f32
    %56 = vector.broadcast %cst_73 : f32 to vector<1x15x8xf32>
    %c0_74 = arith.constant 0 : index
    %c1_75 = arith.constant 1 : index
    %c0_76 = arith.constant 0 : index
    %57 = vector.load %arg7[%c0_74, %c1_75, %c0_76] : memref<1x16x1152xf32, #tpu.memory_space<vmem>>, vector<1x15x8xf32>
    tpu.vector_store %arg7[%c0_74, %c1_75, %c0_76], %56 {strides = array<i32>} : memref<1x16x1152xf32, #tpu.memory_space<vmem>>, vector<1x15x8xf32>,
    %58 = vector.extract_strided_slice %53 {offsets = [0, 0, 0], sizes = [1, 15, 120], strides = [1, 1, 1]} : vector<1x16x128xf32> to vector<1x15x120xf32>
    %c0_77 = arith.constant 0 : index
    %c1_78 = arith.constant 1 : index
    %c8_79 = arith.constant 8 : index
    %59 = vector.load %arg7[%c0_77, %c1_78, %c8_79] : memref<1x16x1152xf32, #tpu.memory_space<vmem>>, vector<1x15x120xf32>
    tpu.vector_store %arg7[%c0_77, %c1_78, %c8_79], %58 {strides = array<i32>} : memref<1x16x1152xf32, #tpu.memory_space<vmem>>, vector<1x15x120xf32>,
    %cst_80 = arith.constant 0.000000e+00 : f32
    %60 = vector.broadcast %cst_80 : f32 to vector<1x1x128xf32>
    %c0_81 = arith.constant 0 : index
    %c0_82 = arith.constant 0 : index
    %c128_83 = arith.constant 128 : index
    %61 = vector.load %arg7[%c0_81, %c0_82, %c128_83] : memref<1x16x1152xf32, #tpu.memory_space<vmem>>, vector<1x1x128xf32>
    tpu.vector_store %arg7[%c0_81, %c0_82, %c128_83], %60 {strides = array<i32>} : memref<1x16x1152xf32, #tpu.memory_space<vmem>>, vector<1x1x128xf32>,
    %62 = vector.extract_strided_slice %53 {offsets = [0, 0, 0], sizes = [1, 15, 128], strides = [1, 1, 1]} : vector<1x16x128xf32> to vector<1x15x128xf32>
    %c0_84 = arith.constant 0 : index
    %c1_85 = arith.constant 1 : index
    %c128_86 = arith.constant 128 : index
    %63 = vector.load %arg7[%c0_84, %c1_85, %c128_86] : memref<1x16x1152xf32, #tpu.memory_space<vmem>>, vector<1x15x128xf32>
    tpu.vector_store %arg7[%c0_84, %c1_85, %c128_86], %62 {strides = array<i32>} : memref<1x16x1152xf32, #tpu.memory_space<vmem>>, vector<1x15x128xf32>,
    %cst_87 = arith.constant 0.000000e+00 : f32
    %64 = vector.broadcast %cst_87 : f32 to vector<1x1x128xf32>
    %c0_88 = arith.constant 0 : index
    %c0_89 = arith.constant 0 : index
    %c256_90 = arith.constant 256 : index
    %65 = vector.load %arg7[%c0_88, %c0_89, %c256_90] : memref<1x16x1152xf32, #tpu.memory_space<vmem>>, vector<1x1x128xf32>
    tpu.vector_store %arg7[%c0_88, %c0_89, %c256_90], %64 {strides = array<i32>} : memref<1x16x1152xf32, #tpu.memory_space<vmem>>, vector<1x1x128xf32>,
    %cst_91 = arith.constant 0.000000e+00 : f32
    %66 = vector.broadcast %cst_91 : f32 to vector<1x15x8xf32>
    %c0_92 = arith.constant 0 : index
    %c1_93 = arith.constant 1 : index
    %c376_94 = arith.constant 376 : index
    %67 = vector.load %arg7[%c0_92, %c1_93, %c376_94] : memref<1x16x1152xf32, #tpu.memory_space<vmem>>, vector<1x15x8xf32>
    tpu.vector_store %arg7[%c0_92, %c1_93, %c376_94], %66 {strides = array<i32>} : memref<1x16x1152xf32, #tpu.memory_space<vmem>>, vector<1x15x8xf32>,
    %68 = vector.extract_strided_slice %53 {offsets = [0, 0, 8], sizes = [1, 15, 120], strides = [1, 1, 1]} : vector<1x16x128xf32> to vector<1x15x120xf32>
    %c0_95 = arith.constant 0 : index
    %c1_96 = arith.constant 1 : index
    %c256_97 = arith.constant 256 : index
    %69 = vector.load %arg7[%c0_95, %c1_96, %c256_97] : memref<1x16x1152xf32, #tpu.memory_space<vmem>>, vector<1x15x120xf32>
    tpu.vector_store %arg7[%c0_95, %c1_96, %c256_97], %68 {strides = array<i32>} : memref<1x16x1152xf32, #tpu.memory_space<vmem>>, vector<1x15x120xf32>,
    %cst_98 = arith.constant 0.000000e+00 : f32
    %70 = vector.broadcast %cst_98 : f32 to vector<1x16x8xf32>
    %c0_99 = arith.constant 0 : index
    %c0_100 = arith.constant 0 : index
    %c384_101 = arith.constant 384 : index
    %71 = vector.load %arg7[%c0_99, %c0_100, %c384_101] : memref<1x16x1152xf32, #tpu.memory_space<vmem>>, vector<1x16x8xf32>
    tpu.vector_store %arg7[%c0_99, %c0_100, %c384_101], %70 {strides = array<i32>} : memref<1x16x1152xf32, #tpu.memory_space<vmem>>, vector<1x16x8xf32>,
    %72 = vector.extract_strided_slice %53 {offsets = [0, 0, 0], sizes = [1, 16, 120], strides = [1, 1, 1]} : vector<1x16x128xf32> to vector<1x16x120xf32>
    %c0_102 = arith.constant 0 : index
    %c0_103 = arith.constant 0 : index
    %c392_104 = arith.constant 392 : index
    %73 = vector.load %arg7[%c0_102, %c0_103, %c392_104] : memref<1x16x1152xf32, #tpu.memory_space<vmem>>, vector<1x16x120xf32>
    tpu.vector_store %arg7[%c0_102, %c0_103, %c392_104], %72 {strides = array<i32>} : memref<1x16x1152xf32, #tpu.memory_space<vmem>>, vector<1x16x120xf32>,
    %c0_105 = arith.constant 0 : index
    %c0_106 = arith.constant 0 : index
    %c512_107 = arith.constant 512 : index
    %74 = vector.load %arg7[%c0_105, %c0_106, %c512_107] : memref<1x16x1152xf32, #tpu.memory_space<vmem>>, vector<1x16x128xf32>
    tpu.vector_store %arg7[%c0_105, %c0_106, %c512_107], %53 {strides = array<i32>} : memref<1x16x1152xf32, #tpu.memory_space<vmem>>, vector<1x16x128xf32>,
    %cst_108 = arith.constant 0.000000e+00 : f32
    %75 = vector.broadcast %cst_108 : f32 to vector<1x16x8xf32>
    %c0_109 = arith.constant 0 : index
    %c0_110 = arith.constant 0 : index
    %c760_111 = arith.constant 760 : index
    %76 = vector.load %arg7[%c0_109, %c0_110, %c760_111] : memref<1x16x1152xf32, #tpu.memory_space<vmem>>, vector<1x16x8xf32>
    tpu.vector_store %arg7[%c0_109, %c0_110, %c760_111], %75 {strides = array<i32>} : memref<1x16x1152xf32, #tpu.memory_space<vmem>>, vector<1x16x8xf32>,
    %77 = vector.extract_strided_slice %53 {offsets = [0, 0, 8], sizes = [1, 16, 120], strides = [1, 1, 1]} : vector<1x16x128xf32> to vector<1x16x120xf32>
    %c0_112 = arith.constant 0 : index
    %c0_113 = arith.constant 0 : index
    %c640_114 = arith.constant 640 : index
    %78 = vector.load %arg7[%c0_112, %c0_113, %c640_114] : memref<1x16x1152xf32, #tpu.memory_space<vmem>>, vector<1x16x120xf32>
    tpu.vector_store %arg7[%c0_112, %c0_113, %c640_114], %77 {strides = array<i32>} : memref<1x16x1152xf32, #tpu.memory_space<vmem>>, vector<1x16x120xf32>,
    %cst_115 = arith.constant 0.000000e+00 : f32
    %79 = vector.broadcast %cst_115 : f32 to vector<1x1x128xf32>
    %c0_116 = arith.constant 0 : index
    %c15_117 = arith.constant 15 : index
    %c768_118 = arith.constant 768 : index
    %80 = vector.load %arg7[%c0_116, %c15_117, %c768_118] : memref<1x16x1152xf32, #tpu.memory_space<vmem>>, vector<1x1x128xf32>
    tpu.vector_store %arg7[%c0_116, %c15_117, %c768_118], %79 {strides = array<i32>} : memref<1x16x1152xf32, #tpu.memory_space<vmem>>, vector<1x1x128xf32>,
    %cst_119 = arith.constant 0.000000e+00 : f32
    %81 = vector.broadcast %cst_119 : f32 to vector<1x15x8xf32>
    %c0_120 = arith.constant 0 : index
    %c0_121 = arith.constant 0 : index
    %c768_122 = arith.constant 768 : index
    %82 = vector.load %arg7[%c0_120, %c0_121, %c768_122] : memref<1x16x1152xf32, #tpu.memory_space<vmem>>, vector<1x15x8xf32>
    tpu.vector_store %arg7[%c0_120, %c0_121, %c768_122], %81 {strides = array<i32>} : memref<1x16x1152xf32, #tpu.memory_space<vmem>>, vector<1x15x8xf32>,
    %83 = vector.extract_strided_slice %53 {offsets = [0, 1, 0], sizes = [1, 15, 120], strides = [1, 1, 1]} : vector<1x16x128xf32> to vector<1x15x120xf32>
    %c0_123 = arith.constant 0 : index
    %c0_124 = arith.constant 0 : index
    %c776_125 = arith.constant 776 : index
    %84 = vector.load %arg7[%c0_123, %c0_124, %c776_125] : memref<1x16x1152xf32, #tpu.memory_space<vmem>>, vector<1x15x120xf32>
    tpu.vector_store %arg7[%c0_123, %c0_124, %c776_125], %83 {strides = array<i32>} : memref<1x16x1152xf32, #tpu.memory_space<vmem>>, vector<1x15x120xf32>,
    %cst_126 = arith.constant 0.000000e+00 : f32
    %85 = vector.broadcast %cst_126 : f32 to vector<1x1x128xf32>
    %c0_127 = arith.constant 0 : index
    %c15_128 = arith.constant 15 : index
    %c896_129 = arith.constant 896 : index
    %86 = vector.load %arg7[%c0_127, %c15_128, %c896_129] : memref<1x16x1152xf32, #tpu.memory_space<vmem>>, vector<1x1x128xf32>
    tpu.vector_store %arg7[%c0_127, %c15_128, %c896_129], %85 {strides = array<i32>} : memref<1x16x1152xf32, #tpu.memory_space<vmem>>, vector<1x1x128xf32>,
    %87 = vector.extract_strided_slice %53 {offsets = [0, 1, 0], sizes = [1, 15, 128], strides = [1, 1, 1]} : vector<1x16x128xf32> to vector<1x15x128xf32>
    %c0_130 = arith.constant 0 : index
    %c0_131 = arith.constant 0 : index
    %c896_132 = arith.constant 896 : index
    %88 = vector.load %arg7[%c0_130, %c0_131, %c896_132] : memref<1x16x1152xf32, #tpu.memory_space<vmem>>, vector<1x15x128xf32>
    tpu.vector_store %arg7[%c0_130, %c0_131, %c896_132], %87 {strides = array<i32>} : memref<1x16x1152xf32, #tpu.memory_space<vmem>>, vector<1x15x128xf32>,
    %cst_133 = arith.constant 0.000000e+00 : f32
    %89 = vector.broadcast %cst_133 : f32 to vector<1x1x128xf32>
    %c0_134 = arith.constant 0 : index
    %c15_135 = arith.constant 15 : index
    %c1024_136 = arith.constant 1024 : index
    %90 = vector.load %arg7[%c0_134, %c15_135, %c1024_136] : memref<1x16x1152xf32, #tpu.memory_space<vmem>>, vector<1x1x128xf32>
    tpu.vector_store %arg7[%c0_134, %c15_135, %c1024_136], %89 {strides = array<i32>} : memref<1x16x1152xf32, #tpu.memory_space<vmem>>, vector<1x1x128xf32>,
    %cst_137 = arith.constant 0.000000e+00 : f32
    %91 = vector.broadcast %cst_137 : f32 to vector<1x15x8xf32>
    %c0_138 = arith.constant 0 : index
    %c0_139 = arith.constant 0 : index
    %c1144_140 = arith.constant 1144 : index
    %92 = vector.load %arg7[%c0_138, %c0_139, %c1144_140] : memref<1x16x1152xf32, #tpu.memory_space<vmem>>, vector<1x15x8xf32>
    tpu.vector_store %arg7[%c0_138, %c0_139, %c1144_140], %91 {strides = array<i32>} : memref<1x16x1152xf32, #tpu.memory_space<vmem>>, vector<1x15x8xf32>,
    %93 = vector.extract_strided_slice %53 {offsets = [0, 1, 8], sizes = [1, 15, 120], strides = [1, 1, 1]} : vector<1x16x128xf32> to vector<1x15x120xf32>
    %c0_141 = arith.constant 0 : index
    %c0_142 = arith.constant 0 : index
    %c1024_143 = arith.constant 1024 : index
    %94 = vector.load %arg7[%c0_141, %c0_142, %c1024_143] : memref<1x16x1152xf32, #tpu.memory_space<vmem>>, vector<1x15x120xf32>
    tpu.vector_store %arg7[%c0_141, %c0_142, %c1024_143], %93 {strides = array<i32>} : memref<1x16x1152xf32, #tpu.memory_space<vmem>>, vector<1x15x120xf32>,
    %c0_144 = arith.constant 0 : index
    %c0_145 = arith.constant 0 : index
    %c0_146 = arith.constant 0 : index
    %95 = vector.load %arg7[%c0_144, %c0_145, %c0_146] : memref<1x16x1152xf32, #tpu.memory_space<vmem>>, vector<1x16x1152xf32>
    %96 = vector.shape_cast %95 : vector<1x16x1152xf32> to vector<16x1152xf32>
    %c0_147 = arith.constant 0 : index
    %c0_148 = arith.constant 0 : index
    %97 = vector.load %arg4[%c0_147, %c0_148] : memref<1152x128xf32, #tpu.memory_space<vmem>>, vector<1152x128xf32>
    %cst_149 = arith.constant dense<0.000000e+00> : vector<16x128xf32>
    %98 = tpu.matmul %96, %97, %cst_149 {dimension_numbers = #tpu.dot_dimension_numbers<[1], [0], [0], [1], [0, 0, 1, 1], [], []>} : vector<16x1152xf32>, vector<1152x128xf32>, vector<16x128xf32> -> vector<16x128xf32>
    %99 = arith.addf %98, %52 : vector<16x128xf32>
    %100 = vector.shape_cast %99 : vector<16x128xf32> to vector<1x16x128xf32>
    %c0_150 = arith.constant 0 : index
    %c0_151 = arith.constant 0 : index
    %c0_152 = arith.constant 0 : index
    %101 = vector.load %arg5[%c0_150, %c0_151, %c0_152] : memref<1x16x128xf32, #tpu.memory_space<vmem>>, vector<1x16x128xf32>
    tpu.vector_store %arg5[%c0_150, %c0_151, %c0_152], %100 {strides = array<i32>} : memref<1x16x128xf32, #tpu.memory_space<vmem>>, vector<1x16x128xf32>,
    return
  }
  func.func @transform_0(%arg0: i32) -> (i32, i32, i32) {
    %c0_i32 = arith.constant 0 : i32
    %c0_i32_0 = arith.constant 0 : i32
    %c0_i32_1 = arith.constant 0 : i32
    return %arg0, %c0_i32, %c0_i32_0 : i32, i32, i32
  }
  func.func @transform_1(%arg0: i32) -> (i32, i32) {
    %c0_i32 = arith.constant 0 : i32
    %c0_i32_0 = arith.constant 0 : i32
    %c0_i32_1 = arith.constant 0 : i32
    return %c0_i32, %c0_i32_0 : i32, i32
  }
  func.func @transform_2(%arg0: i32) -> (i32, i32) {
    %c0_i32 = arith.constant 0 : i32
    %c0_i32_0 = arith.constant 0 : i32
    %c0_i32_1 = arith.constant 0 : i32
    return %c0_i32, %c0_i32_0 : i32, i32
  }
  func.func @transform_3(%arg0: i32) -> (i32, i32) {
    %c0_i32 = arith.constant 0 : i32
    %c0_i32_0 = arith.constant 0 : i32
    %c0_i32_1 = arith.constant 0 : i32
    return %c0_i32, %c0_i32_0 : i32, i32
  }
  func.func @transform_4(%arg0: i32) -> (i32, i32, i32) {
    %c0_i32 = arith.constant 0 : i32
    %c0_i32_0 = arith.constant 0 : i32
    %c0_i32_1 = arith.constant 0 : i32
    return %arg0, %c0_i32, %c0_i32_0 : i32, i32, i32
  }
}

module attributes {stable_mosaic.version = 11 : i64} {
  func.func @kernel(%arg0: i32, %arg1: memref<1x16x128xf32, #tpu.memory_space<vmem>>, %arg2: memref<1152x256xf32, #tpu.memory_space<vmem>>, %arg3: memref<1x256xf32, #tpu.memory_space<vmem>>, %arg4: memref<1152x128xf32, #tpu.memory_space<vmem>>, %arg5: memref<1x16x128xf32, #tpu.memory_space<vmem>>, %arg6: memref<1x16x1152xf32, #tpu.memory_space<vmem>>, %arg7: memref<1x16x1152xf32, #tpu.memory_space<vmem>>) attributes {dimension_semantics = [#tpu.dimension_semantics<parallel>], iteration_bounds = array<i64: 2>, scalar_prefetch = 0 : i64, scratch_operands = 2 : i64, tpu.core_type = #tpu.core_type<tc>, window_params = [{transform_indices = @transform_0, window_bounds = array<i64: 1, 16, 128>}, {pipeline_mode = #tpu.pipeline_mode<synchronous>, transform_indices = @transform_1, window_bounds = array<i64: 1152, 256>}, {pipeline_mode = #tpu.pipeline_mode<synchronous>, transform_indices = @transform_2, window_bounds = array<i64: 1, 256>}, {pipeline_mode = #tpu.pipeline_mode<synchronous>, transform_indices = @transform_3, window_bounds = array<i64: 1152, 128>}, {transform_indices = @transform_4, window_bounds = array<i64: 1, 16, 128>}]} {
    %c0 = arith.constant 0 : index
    %c0_0 = arith.constant 0 : index
    %c0_1 = arith.constant 0 : index
    %0 = vector.load %arg1[%c0, %c0_0, %c0_1] : memref<1x16x128xf32, #tpu.memory_space<vmem>>, vector<1x16x128xf32>
    %cst = arith.constant 0.000000e+00 : f32
    %1 = vector.broadcast %cst : f32 to vector<1x1x128xf32>
    %c0_2 = arith.constant 0 : index
    %c0_3 = arith.constant 0 : index
    %c0_4 = arith.constant 0 : index
    %2 = vector.load %arg6[%c0_2, %c0_3, %c0_4] : memref<1x16x1152xf32, #tpu.memory_space<vmem>>, vector<1x1x128xf32>
    tpu.vector_store %arg6[%c0_2, %c0_3, %c0_4], %1 {strides = array<i32>} : memref<1x16x1152xf32, #tpu.memory_space<vmem>>, vector<1x1x128xf32>,
    %cst_5 = arith.constant 0.000000e+00 : f32
    %3 = vector.broadcast %cst_5 : f32 to vector<1x15x8xf32>
    %c0_6 = arith.constant 0 : index
    %c1 = arith.constant 1 : index
    %c0_7 = arith.constant 0 : index
    %4 = vector.load %arg6[%c0_6, %c1, %c0_7] : memref<1x16x1152xf32, #tpu.memory_space<vmem>>, vector<1x15x8xf32>
    tpu.vector_store %arg6[%c0_6, %c1, %c0_7], %3 {strides = array<i32>} : memref<1x16x1152xf32, #tpu.memory_space<vmem>>, vector<1x15x8xf32>,
    %5 = vector.extract_strided_slice %0 {offsets = [0, 0, 0], sizes = [1, 15, 120], strides = [1, 1, 1]} : vector<1x16x128xf32> to vector<1x15x120xf32>
    %c0_8 = arith.constant 0 : index
    %c1_9 = arith.constant 1 : index
    %c8 = arith.constant 8 : index
    %6 = vector.load %arg6[%c0_8, %c1_9, %c8] : memref<1x16x1152xf32, #tpu.memory_space<vmem>>, vector<1x15x120xf32>
    tpu.vector_store %arg6[%c0_8, %c1_9, %c8], %5 {strides = array<i32>} : memref<1x16x1152xf32, #tpu.memory_space<vmem>>, vector<1x15x120xf32>,
    %cst_10 = arith.constant 0.000000e+00 : f32
    %7 = vector.broadcast %cst_10 : f32 to vector<1x1x128xf32>
    %c0_11 = arith.constant 0 : index
    %c0_12 = arith.constant 0 : index
    %c128 = arith.constant 128 : index
    %8 = vector.load %arg6[%c0_11, %c0_12, %c128] : memref<1x16x1152xf32, #tpu.memory_space<vmem>>, vector<1x1x128xf32>
    tpu.vector_store %arg6[%c0_11, %c0_12, %c128], %7 {strides = array<i32>} : memref<1x16x1152xf32, #tpu.memory_space<vmem>>, vector<1x1x128xf32>,
    %9 = vector.extract_strided_slice %0 {offsets = [0, 0, 0], sizes = [1, 15, 128], strides = [1, 1, 1]} : vector<1x16x128xf32> to vector<1x15x128xf32>
    %c0_13 = arith.constant 0 : index
    %c1_14 = arith.constant 1 : index
    %c128_15 = arith.constant 128 : index
    %10 = vector.load %arg6[%c0_13, %c1_14, %c128_15] : memref<1x16x1152xf32, #tpu.memory_space<vmem>>, vector<1x15x128xf32>
    tpu.vector_store %arg6[%c0_13, %c1_14, %c128_15], %9 {strides = array<i32>} : memref<1x16x1152xf32, #tpu.memory_space<vmem>>, vector<1x15x128xf32>,
    %cst_16 = arith.constant 0.000000e+00 : f32
    %11 = vector.broadcast %cst_16 : f32 to vector<1x1x128xf32>
    %c0_17 = arith.constant 0 : index
    %c0_18 = arith.constant 0 : index
    %c256 = arith.constant 256 : index
    %12 = vector.load %arg6[%c0_17, %c0_18, %c256] : memref<1x16x1152xf32, #tpu.memory_space<vmem>>, vector<1x1x128xf32>
    tpu.vector_store %arg6[%c0_17, %c0_18, %c256], %11 {strides = array<i32>} : memref<1x16x1152xf32, #tpu.memory_space<vmem>>, vector<1x1x128xf32>,
    %cst_19 = arith.constant 0.000000e+00 : f32
    %13 = vector.broadcast %cst_19 : f32 to vector<1x15x8xf32>
    %c0_20 = arith.constant 0 : index
    %c1_21 = arith.constant 1 : index
    %c376 = arith.constant 376 : index
    %14 = vector.load %arg6[%c0_20, %c1_21, %c376] : memref<1x16x1152xf32, #tpu.memory_space<vmem>>, vector<1x15x8xf32>
    tpu.vector_store %arg6[%c0_20, %c1_21, %c376], %13 {strides = array<i32>} : memref<1x16x1152xf32, #tpu.memory_space<vmem>>, vector<1x15x8xf32>,
    %15 = vector.extract_strided_slice %0 {offsets = [0, 0, 8], sizes = [1, 15, 120], strides = [1, 1, 1]} : vector<1x16x128xf32> to vector<1x15x120xf32>
    %c0_22 = arith.constant 0 : index
    %c1_23 = arith.constant 1 : index
    %c256_24 = arith.constant 256 : index
    %16 = vector.load %arg6[%c0_22, %c1_23, %c256_24] : memref<1x16x1152xf32, #tpu.memory_space<vmem>>, vector<1x15x120xf32>
    tpu.vector_store %arg6[%c0_22, %c1_23, %c256_24], %15 {strides = array<i32>} : memref<1x16x1152xf32, #tpu.memory_space<vmem>>, vector<1x15x120xf32>,
    %cst_25 = arith.constant 0.000000e+00 : f32
    %17 = vector.broadcast %cst_25 : f32 to vector<1x16x8xf32>
    %c0_26 = arith.constant 0 : index
    %c0_27 = arith.constant 0 : index
    %c384 = arith.constant 384 : index
    %18 = vector.load %arg6[%c0_26, %c0_27, %c384] : memref<1x16x1152xf32, #tpu.memory_space<vmem>>, vector<1x16x8xf32>
    tpu.vector_store %arg6[%c0_26, %c0_27, %c384], %17 {strides = array<i32>} : memref<1x16x1152xf32, #tpu.memory_space<vmem>>, vector<1x16x8xf32>,
    %19 = vector.extract_strided_slice %0 {offsets = [0, 0, 0], sizes = [1, 16, 120], strides = [1, 1, 1]} : vector<1x16x128xf32> to vector<1x16x120xf32>
    %c0_28 = arith.constant 0 : index
    %c0_29 = arith.constant 0 : index
    %c392 = arith.constant 392 : index
    %20 = vector.load %arg6[%c0_28, %c0_29, %c392] : memref<1x16x1152xf32, #tpu.memory_space<vmem>>, vector<1x16x120xf32>
    tpu.vector_store %arg6[%c0_28, %c0_29, %c392], %19 {strides = array<i32>} : memref<1x16x1152xf32, #tpu.memory_space<vmem>>, vector<1x16x120xf32>,
    %c0_30 = arith.constant 0 : index
    %c0_31 = arith.constant 0 : index
    %c512 = arith.constant 512 : index
    %21 = vector.load %arg6[%c0_30, %c0_31, %c512] : memref<1x16x1152xf32, #tpu.memory_space<vmem>>, vector<1x16x128xf32>
    tpu.vector_store %arg6[%c0_30, %c0_31, %c512], %0 {strides = array<i32>} : memref<1x16x1152xf32, #tpu.memory_space<vmem>>, vector<1x16x128xf32>,
    %cst_32 = arith.constant 0.000000e+00 : f32
    %22 = vector.broadcast %cst_32 : f32 to vector<1x16x8xf32>
    %c0_33 = arith.constant 0 : index
    %c0_34 = arith.constant 0 : index
    %c760 = arith.constant 760 : index
    %23 = vector.load %arg6[%c0_33, %c0_34, %c760] : memref<1x16x1152xf32, #tpu.memory_space<vmem>>, vector<1x16x8xf32>
    tpu.vector_store %arg6[%c0_33, %c0_34, %c760], %22 {strides = array<i32>} : memref<1x16x1152xf32, #tpu.memory_space<vmem>>, vector<1x16x8xf32>,
    %24 = vector.extract_strided_slice %0 {offsets = [0, 0, 8], sizes = [1, 16, 120], strides = [1, 1, 1]} : vector<1x16x128xf32> to vector<1x16x120xf32>
    %c0_35 = arith.constant 0 : index
    %c0_36 = arith.constant 0 : index
    %c640 = arith.constant 640 : index
    %25 = vector.load %arg6[%c0_35, %c0_36, %c640] : memref<1x16x1152xf32, #tpu.memory_space<vmem>>, vector<1x16x120xf32>
    tpu.vector_store %arg6[%c0_35, %c0_36, %c640], %24 {strides = array<i32>} : memref<1x16x1152xf32, #tpu.memory_space<vmem>>, vector<1x16x120xf32>,
    %cst_37 = arith.constant 0.000000e+00 : f32
    %26 = vector.broadcast %cst_37 : f32 to vector<1x1x128xf32>
    %c0_38 = arith.constant 0 : index
    %c15 = arith.constant 15 : index
    %c768 = arith.constant 768 : index
    %27 = vector.load %arg6[%c0_38, %c15, %c768] : memref<1x16x1152xf32, #tpu.memory_space<vmem>>, vector<1x1x128xf32>
    tpu.vector_store %arg6[%c0_38, %c15, %c768], %26 {strides = array<i32>} : memref<1x16x1152xf32, #tpu.memory_space<vmem>>, vector<1x1x128xf32>,
    %cst_39 = arith.constant 0.000000e+00 : f32
    %28 = vector.broadcast %cst_39 : f32 to vector<1x15x8xf32>
    %c0_40 = arith.constant 0 : index
    %c0_41 = arith.constant 0 : index
    %c768_42 = arith.constant 768 : index
    %29 = vector.load %arg6[%c0_40, %c0_41, %c768_42] : memref<1x16x1152xf32, #tpu.memory_space<vmem>>, vector<1x15x8xf32>
    tpu.vector_store %arg6[%c0_40, %c0_41, %c768_42], %28 {strides = array<i32>} : memref<1x16x1152xf32, #tpu.memory_space<vmem>>, vector<1x15x8xf32>,
    %30 = vector.extract_strided_slice %0 {offsets = [0, 1, 0], sizes = [1, 15, 120], strides = [1, 1, 1]} : vector<1x16x128xf32> to vector<1x15x120xf32>
    %c0_43 = arith.constant 0 : index
    %c0_44 = arith.constant 0 : index
    %c776 = arith.constant 776 : index
    %31 = vector.load %arg6[%c0_43, %c0_44, %c776] : memref<1x16x1152xf32, #tpu.memory_space<vmem>>, vector<1x15x120xf32>
    tpu.vector_store %arg6[%c0_43, %c0_44, %c776], %30 {strides = array<i32>} : memref<1x16x1152xf32, #tpu.memory_space<vmem>>, vector<1x15x120xf32>,
    %cst_45 = arith.constant 0.000000e+00 : f32
    %32 = vector.broadcast %cst_45 : f32 to vector<1x1x128xf32>
    %c0_46 = arith.constant 0 : index
    %c15_47 = arith.constant 15 : index
    %c896 = arith.constant 896 : index
    %33 = vector.load %arg6[%c0_46, %c15_47, %c896] : memref<1x16x1152xf32, #tpu.memory_space<vmem>>, vector<1x1x128xf32>
    tpu.vector_store %arg6[%c0_46, %c15_47, %c896], %32 {strides = array<i32>} : memref<1x16x1152xf32, #tpu.memory_space<vmem>>, vector<1x1x128xf32>,
    %34 = vector.extract_strided_slice %0 {offsets = [0, 1, 0], sizes = [1, 15, 128], strides = [1, 1, 1]} : vector<1x16x128xf32> to vector<1x15x128xf32>
    %c0_48 = arith.constant 0 : index
    %c0_49 = arith.constant 0 : index
    %c896_50 = arith.constant 896 : index
    %35 = vector.load %arg6[%c0_48, %c0_49, %c896_50] : memref<1x16x1152xf32, #tpu.memory_space<vmem>>, vector<1x15x128xf32>
    tpu.vector_store %arg6[%c0_48, %c0_49, %c896_50], %34 {strides = array<i32>} : memref<1x16x1152xf32, #tpu.memory_space<vmem>>, vector<1x15x128xf32>,
    %cst_51 = arith.constant 0.000000e+00 : f32
    %36 = vector.broadcast %cst_51 : f32 to vector<1x1x128xf32>
    %c0_52 = arith.constant 0 : index
    %c15_53 = arith.constant 15 : index
    %c1024 = arith.constant 1024 : index
    %37 = vector.load %arg6[%c0_52, %c15_53, %c1024] : memref<1x16x1152xf32, #tpu.memory_space<vmem>>, vector<1x1x128xf32>
    tpu.vector_store %arg6[%c0_52, %c15_53, %c1024], %36 {strides = array<i32>} : memref<1x16x1152xf32, #tpu.memory_space<vmem>>, vector<1x1x128xf32>,
    %cst_54 = arith.constant 0.000000e+00 : f32
    %38 = vector.broadcast %cst_54 : f32 to vector<1x15x8xf32>
    %c0_55 = arith.constant 0 : index
    %c0_56 = arith.constant 0 : index
    %c1144 = arith.constant 1144 : index
    %39 = vector.load %arg6[%c0_55, %c0_56, %c1144] : memref<1x16x1152xf32, #tpu.memory_space<vmem>>, vector<1x15x8xf32>
    tpu.vector_store %arg6[%c0_55, %c0_56, %c1144], %38 {strides = array<i32>} : memref<1x16x1152xf32, #tpu.memory_space<vmem>>, vector<1x15x8xf32>,
    %40 = vector.extract_strided_slice %0 {offsets = [0, 1, 8], sizes = [1, 15, 120], strides = [1, 1, 1]} : vector<1x16x128xf32> to vector<1x15x120xf32>
    %c0_57 = arith.constant 0 : index
    %c0_58 = arith.constant 0 : index
    %c1024_59 = arith.constant 1024 : index
    %41 = vector.load %arg6[%c0_57, %c0_58, %c1024_59] : memref<1x16x1152xf32, #tpu.memory_space<vmem>>, vector<1x15x120xf32>
    tpu.vector_store %arg6[%c0_57, %c0_58, %c1024_59], %40 {strides = array<i32>} : memref<1x16x1152xf32, #tpu.memory_space<vmem>>, vector<1x15x120xf32>,
    %c0_60 = arith.constant 0 : index
    %c0_61 = arith.constant 0 : index
    %c0_62 = arith.constant 0 : index
    %42 = vector.load %arg6[%c0_60, %c0_61, %c0_62] : memref<1x16x1152xf32, #tpu.memory_space<vmem>>, vector<1x16x1152xf32>
    %43 = vector.shape_cast %42 : vector<1x16x1152xf32> to vector<16x1152xf32>
    %c0_63 = arith.constant 0 : index
    %c0_64 = arith.constant 0 : index
    %44 = vector.load %arg2[%c0_63, %c0_64] : memref<1152x256xf32, #tpu.memory_space<vmem>>, vector<1152x256xf32>
    %cst_65 = arith.constant dense<0.000000e+00> : vector<16x256xf32>
    %45 = tpu.matmul %43, %44, %cst_65 {dimension_numbers = #tpu.dot_dimension_numbers<[1], [0], [0], [1], [0, 0, 1, 1], [], []>} : vector<16x1152xf32>, vector<1152x256xf32>, vector<16x256xf32> -> vector<16x256xf32>
    %c0_66 = arith.constant 0 : index
    %c0_67 = arith.constant 0 : index
    %46 = vector.load %arg3[%c0_66, %c0_67] : memref<1x256xf32, #tpu.memory_space<vmem>>, vector<1x256xf32>
    %47 = vector.broadcast %46 : vector<1x256xf32> to vector<16x256xf32>
    %48 = arith.addf %45, %47 : vector<16x256xf32>
    %49 = vector.extract_strided_slice %48 {offsets = [0, 0], sizes = [16, 128], strides = [1, 1]} : vector<16x256xf32> to vector<16x128xf32>
    %cst_68 = arith.constant 0.000000e+00 : f32
    %50 = vector.broadcast %cst_68 : f32 to vector<16x128xf32>
    %51 = arith.maximumf %49, %50 : vector<16x128xf32>
    %52 = vector.extract_strided_slice %48 {offsets = [0, 128], sizes = [16, 128], strides = [1, 1]} : vector<16x256xf32> to vector<16x128xf32>
    %53 = vector.shape_cast %51 : vector<16x128xf32> to vector<1x16x128xf32>
    %cst_69 = arith.constant 0.000000e+00 : f32
    %54 = vector.broadcast %cst_69 : f32 to vector<1x1x128xf32>
    %c0_70 = arith.constant 0 : index
    %c0_71 = arith.constant 0 : index
    %c0_72 = arith.constant 0 : index
    %55 = vector.load %arg7[%c0_70, %c0_71, %c0_72] : memref<1x16x1152xf32, #tpu.memory_space<vmem>>, vector<1x1x128xf32>
    tpu.vector_store %arg7[%c0_70, %c0_71, %c0_72], %54 {strides = array<i32>} : memref<1x16x1152xf32, #tpu.memory_space<vmem>>, vector<1x1x128xf32>,
    %cst_73 = arith.constant 0.000000e+00 : f32
    %56 = vector.broadcast %cst_73 : f32 to vector<1x15x8xf32>
    %c0_74 = arith.constant 0 : index
    %c1_75 = arith.constant 1 : index
    %c0_76 = arith.constant 0 : index
    %57 = vector.load %arg7[%c0_74, %c1_75, %c0_76] : memref<1x16x1152xf32, #tpu.memory_space<vmem>>, vector<1x15x8xf32>
    tpu.vector_store %arg7[%c0_74, %c1_75, %c0_76], %56 {strides = array<i32>} : memref<1x16x1152xf32, #tpu.memory_space<vmem>>, vector<1x15x8xf32>,
    %58 = vector.extract_strided_slice %53 {offsets = [0, 0, 0], sizes = [1, 15, 120], strides = [1, 1, 1]} : vector<1x16x128xf32> to vector<1x15x120xf32>
    %c0_77 = arith.constant 0 : index
    %c1_78 = arith.constant 1 : index
    %c8_79 = arith.constant 8 : index
    %59 = vector.load %arg7[%c0_77, %c1_78, %c8_79] : memref<1x16x1152xf32, #tpu.memory_space<vmem>>, vector<1x15x120xf32>
    tpu.vector_store %arg7[%c0_77, %c1_78, %c8_79], %58 {strides = array<i32>} : memref<1x16x1152xf32, #tpu.memory_space<vmem>>, vector<1x15x120xf32>,
    %cst_80 = arith.constant 0.000000e+00 : f32
    %60 = vector.broadcast %cst_80 : f32 to vector<1x1x128xf32>
    %c0_81 = arith.constant 0 : index
    %c0_82 = arith.constant 0 : index
    %c128_83 = arith.constant 128 : index
    %61 = vector.load %arg7[%c0_81, %c0_82, %c128_83] : memref<1x16x1152xf32, #tpu.memory_space<vmem>>, vector<1x1x128xf32>
    tpu.vector_store %arg7[%c0_81, %c0_82, %c128_83], %60 {strides = array<i32>} : memref<1x16x1152xf32, #tpu.memory_space<vmem>>, vector<1x1x128xf32>,
    %62 = vector.extract_strided_slice %53 {offsets = [0, 0, 0], sizes = [1, 15, 128], strides = [1, 1, 1]} : vector<1x16x128xf32> to vector<1x15x128xf32>
    %c0_84 = arith.constant 0 : index
    %c1_85 = arith.constant 1 : index
    %c128_86 = arith.constant 128 : index
    %63 = vector.load %arg7[%c0_84, %c1_85, %c128_86] : memref<1x16x1152xf32, #tpu.memory_space<vmem>>, vector<1x15x128xf32>
    tpu.vector_store %arg7[%c0_84, %c1_85, %c128_86], %62 {strides = array<i32>} : memref<1x16x1152xf32, #tpu.memory_space<vmem>>, vector<1x15x128xf32>,
    %cst_87 = arith.constant 0.000000e+00 : f32
    %64 = vector.broadcast %cst_87 : f32 to vector<1x1x128xf32>
    %c0_88 = arith.constant 0 : index
    %c0_89 = arith.constant 0 : index
    %c256_90 = arith.constant 256 : index
    %65 = vector.load %arg7[%c0_88, %c0_89, %c256_90] : memref<1x16x1152xf32, #tpu.memory_space<vmem>>, vector<1x1x128xf32>
    tpu.vector_store %arg7[%c0_88, %c0_89, %c256_90], %64 {strides = array<i32>} : memref<1x16x1152xf32, #tpu.memory_space<vmem>>, vector<1x1x128xf32>,
    %cst_91 = arith.constant 0.000000e+00 : f32
    %66 = vector.broadcast %cst_91 : f32 to vector<1x15x8xf32>
    %c0_92 = arith.constant 0 : index
    %c1_93 = arith.constant 1 : index
    %c376_94 = arith.constant 376 : index
    %67 = vector.load %arg7[%c0_92, %c1_93, %c376_94] : memref<1x16x1152xf32, #tpu.memory_space<vmem>>, vector<1x15x8xf32>
    tpu.vector_store %arg7[%c0_92, %c1_93, %c376_94], %66 {strides = array<i32>} : memref<1x16x1152xf32, #tpu.memory_space<vmem>>, vector<1x15x8xf32>,
    %68 = vector.extract_strided_slice %53 {offsets = [0, 0, 8], sizes = [1, 15, 120], strides = [1, 1, 1]} : vector<1x16x128xf32> to vector<1x15x120xf32>
    %c0_95 = arith.constant 0 : index
    %c1_96 = arith.constant 1 : index
    %c256_97 = arith.constant 256 : index
    %69 = vector.load %arg7[%c0_95, %c1_96, %c256_97] : memref<1x16x1152xf32, #tpu.memory_space<vmem>>, vector<1x15x120xf32>
    tpu.vector_store %arg7[%c0_95, %c1_96, %c256_97], %68 {strides = array<i32>} : memref<1x16x1152xf32, #tpu.memory_space<vmem>>, vector<1x15x120xf32>,
    %cst_98 = arith.constant 0.000000e+00 : f32
    %70 = vector.broadcast %cst_98 : f32 to vector<1x16x8xf32>
    %c0_99 = arith.constant 0 : index
    %c0_100 = arith.constant 0 : index
    %c384_101 = arith.constant 384 : index
    %71 = vector.load %arg7[%c0_99, %c0_100, %c384_101] : memref<1x16x1152xf32, #tpu.memory_space<vmem>>, vector<1x16x8xf32>
    tpu.vector_store %arg7[%c0_99, %c0_100, %c384_101], %70 {strides = array<i32>} : memref<1x16x1152xf32, #tpu.memory_space<vmem>>, vector<1x16x8xf32>,
    %72 = vector.extract_strided_slice %53 {offsets = [0, 0, 0], sizes = [1, 16, 120], strides = [1, 1, 1]} : vector<1x16x128xf32> to vector<1x16x120xf32>
    %c0_102 = arith.constant 0 : index
    %c0_103 = arith.constant 0 : index
    %c392_104 = arith.constant 392 : index
    %73 = vector.load %arg7[%c0_102, %c0_103, %c392_104] : memref<1x16x1152xf32, #tpu.memory_space<vmem>>, vector<1x16x120xf32>
    tpu.vector_store %arg7[%c0_102, %c0_103, %c392_104], %72 {strides = array<i32>} : memref<1x16x1152xf32, #tpu.memory_space<vmem>>, vector<1x16x120xf32>,
    %c0_105 = arith.constant 0 : index
    %c0_106 = arith.constant 0 : index
    %c512_107 = arith.constant 512 : index
    %74 = vector.load %arg7[%c0_105, %c0_106, %c512_107] : memref<1x16x1152xf32, #tpu.memory_space<vmem>>, vector<1x16x128xf32>
    tpu.vector_store %arg7[%c0_105, %c0_106, %c512_107], %53 {strides = array<i32>} : memref<1x16x1152xf32, #tpu.memory_space<vmem>>, vector<1x16x128xf32>,
    %cst_108 = arith.constant 0.000000e+00 : f32
    %75 = vector.broadcast %cst_108 : f32 to vector<1x16x8xf32>
    %c0_109 = arith.constant 0 : index
    %c0_110 = arith.constant 0 : index
    %c760_111 = arith.constant 760 : index
    %76 = vector.load %arg7[%c0_109, %c0_110, %c760_111] : memref<1x16x1152xf32, #tpu.memory_space<vmem>>, vector<1x16x8xf32>
    tpu.vector_store %arg7[%c0_109, %c0_110, %c760_111], %75 {strides = array<i32>} : memref<1x16x1152xf32, #tpu.memory_space<vmem>>, vector<1x16x8xf32>,
    %77 = vector.extract_strided_slice %53 {offsets = [0, 0, 8], sizes = [1, 16, 120], strides = [1, 1, 1]} : vector<1x16x128xf32> to vector<1x16x120xf32>
    %c0_112 = arith.constant 0 : index
    %c0_113 = arith.constant 0 : index
    %c640_114 = arith.constant 640 : index
    %78 = vector.load %arg7[%c0_112, %c0_113, %c640_114] : memref<1x16x1152xf32, #tpu.memory_space<vmem>>, vector<1x16x120xf32>
    tpu.vector_store %arg7[%c0_112, %c0_113, %c640_114], %77 {strides = array<i32>} : memref<1x16x1152xf32, #tpu.memory_space<vmem>>, vector<1x16x120xf32>,
    %cst_115 = arith.constant 0.000000e+00 : f32
    %79 = vector.broadcast %cst_115 : f32 to vector<1x1x128xf32>
    %c0_116 = arith.constant 0 : index
    %c15_117 = arith.constant 15 : index
    %c768_118 = arith.constant 768 : index
    %80 = vector.load %arg7[%c0_116, %c15_117, %c768_118] : memref<1x16x1152xf32, #tpu.memory_space<vmem>>, vector<1x1x128xf32>
    tpu.vector_store %arg7[%c0_116, %c15_117, %c768_118], %79 {strides = array<i32>} : memref<1x16x1152xf32, #tpu.memory_space<vmem>>, vector<1x1x128xf32>,
    %cst_119 = arith.constant 0.000000e+00 : f32
    %81 = vector.broadcast %cst_119 : f32 to vector<1x15x8xf32>
    %c0_120 = arith.constant 0 : index
    %c0_121 = arith.constant 0 : index
    %c768_122 = arith.constant 768 : index
    %82 = vector.load %arg7[%c0_120, %c0_121, %c768_122] : memref<1x16x1152xf32, #tpu.memory_space<vmem>>, vector<1x15x8xf32>
    tpu.vector_store %arg7[%c0_120, %c0_121, %c768_122], %81 {strides = array<i32>} : memref<1x16x1152xf32, #tpu.memory_space<vmem>>, vector<1x15x8xf32>,
    %83 = vector.extract_strided_slice %53 {offsets = [0, 1, 0], sizes = [1, 15, 120], strides = [1, 1, 1]} : vector<1x16x128xf32> to vector<1x15x120xf32>
    %c0_123 = arith.constant 0 : index
    %c0_124 = arith.constant 0 : index
    %c776_125 = arith.constant 776 : index
    %84 = vector.load %arg7[%c0_123, %c0_124, %c776_125] : memref<1x16x1152xf32, #tpu.memory_space<vmem>>, vector<1x15x120xf32>
    tpu.vector_store %arg7[%c0_123, %c0_124, %c776_125], %83 {strides = array<i32>} : memref<1x16x1152xf32, #tpu.memory_space<vmem>>, vector<1x15x120xf32>,
    %cst_126 = arith.constant 0.000000e+00 : f32
    %85 = vector.broadcast %cst_126 : f32 to vector<1x1x128xf32>
    %c0_127 = arith.constant 0 : index
    %c15_128 = arith.constant 15 : index
    %c896_129 = arith.constant 896 : index
    %86 = vector.load %arg7[%c0_127, %c15_128, %c896_129] : memref<1x16x1152xf32, #tpu.memory_space<vmem>>, vector<1x1x128xf32>
    tpu.vector_store %arg7[%c0_127, %c15_128, %c896_129], %85 {strides = array<i32>} : memref<1x16x1152xf32, #tpu.memory_space<vmem>>, vector<1x1x128xf32>,
    %87 = vector.extract_strided_slice %53 {offsets = [0, 1, 0], sizes = [1, 15, 128], strides = [1, 1, 1]} : vector<1x16x128xf32> to vector<1x15x128xf32>
    %c0_130 = arith.constant 0 : index
    %c0_131 = arith.constant 0 : index
    %c896_132 = arith.constant 896 : index
    %88 = vector.load %arg7[%c0_130, %c0_131, %c896_132] : memref<1x16x1152xf32, #tpu.memory_space<vmem>>, vector<1x15x128xf32>
    tpu.vector_store %arg7[%c0_130, %c0_131, %c896_132], %87 {strides = array<i32>} : memref<1x16x1152xf32, #tpu.memory_space<vmem>>, vector<1x15x128xf32>,
    %cst_133 = arith.constant 0.000000e+00 : f32
    %89 = vector.broadcast %cst_133 : f32 to vector<1x1x128xf32>
    %c0_134 = arith.constant 0 : index
    %c15_135 = arith.constant 15 : index
    %c1024_136 = arith.constant 1024 : index
    %90 = vector.load %arg7[%c0_134, %c15_135, %c1024_136] : memref<1x16x1152xf32, #tpu.memory_space<vmem>>, vector<1x1x128xf32>
    tpu.vector_store %arg7[%c0_134, %c15_135, %c1024_136], %89 {strides = array<i32>} : memref<1x16x1152xf32, #tpu.memory_space<vmem>>, vector<1x1x128xf32>,
    %cst_137 = arith.constant 0.000000e+00 : f32
    %91 = vector.broadcast %cst_137 : f32 to vector<1x15x8xf32>
    %c0_138 = arith.constant 0 : index
    %c0_139 = arith.constant 0 : index
    %c1144_140 = arith.constant 1144 : index
    %92 = vector.load %arg7[%c0_138, %c0_139, %c1144_140] : memref<1x16x1152xf32, #tpu.memory_space<vmem>>, vector<1x15x8xf32>
    tpu.vector_store %arg7[%c0_138, %c0_139, %c1144_140], %91 {strides = array<i32>} : memref<1x16x1152xf32, #tpu.memory_space<vmem>>, vector<1x15x8xf32>,
    %93 = vector.extract_strided_slice %53 {offsets = [0, 1, 8], sizes = [1, 15, 120], strides = [1, 1, 1]} : vector<1x16x128xf32> to vector<1x15x120xf32>
    %c0_141 = arith.constant 0 : index
    %c0_142 = arith.constant 0 : index
    %c1024_143 = arith.constant 1024 : index
    %94 = vector.load %arg7[%c0_141, %c0_142, %c1024_143] : memref<1x16x1152xf32, #tpu.memory_space<vmem>>, vector<1x15x120xf32>
    tpu.vector_store %arg7[%c0_141, %c0_142, %c1024_143], %93 {strides = array<i32>} : memref<1x16x1152xf32, #tpu.memory_space<vmem>>, vector<1x15x120xf32>,
    %c0_144 = arith.constant 0 : index
    %c0_145 = arith.constant 0 : index
    %c0_146 = arith.constant 0 : index
    %95 = vector.load %arg7[%c0_144, %c0_145, %c0_146] : memref<1x16x1152xf32, #tpu.memory_space<vmem>>, vector<1x16x1152xf32>
    %96 = vector.shape_cast %95 : vector<1x16x1152xf32> to vector<16x1152xf32>
    %c0_147 = arith.constant 0 : index
    %c0_148 = arith.constant 0 : index
    %97 = vector.load %arg4[%c0_147, %c0_148] : memref<1152x128xf32, #tpu.memory_space<vmem>>, vector<1152x128xf32>
    %cst_149 = arith.constant dense<0.000000e+00> : vector<16x128xf32>
    %98 = tpu.matmul %96, %97, %cst_149 {dimension_numbers = #tpu.dot_dimension_numbers<[1], [0], [0], [1], [0, 0, 1, 1], [], []>} : vector<16x1152xf32>, vector<1152x128xf32>, vector<16x128xf32> -> vector<16x128xf32>
    %99 = arith.addf %98, %52 : vector<16x128xf32>
    %100 = vector.shape_cast %99 : vector<16x128xf32> to vector<1x16x128xf32>
    %c0_150 = arith.constant 0 : index
    %c0_151 = arith.constant 0 : index
    %c0_152 = arith.constant 0 : index
    %101 = vector.load %arg5[%c0_150, %c0_151, %c0_152] : memref<1x16x128xf32, #tpu.memory_space<vmem>>, vector<1x16x128xf32>
    tpu.vector_store %arg5[%c0_150, %c0_151, %c0_152], %100 {strides = array<i32>} : memref<1x16x128xf32, #tpu.memory_space<vmem>>, vector<1x16x128xf32>,
    return
  }
  func.func @transform_0(%arg0: i32) -> (i32, i32, i32) {
    %c0_i32 = arith.constant 0 : i32
    %c0_i32_0 = arith.constant 0 : i32
    %c0_i32_1 = arith.constant 0 : i32
    return %arg0, %c0_i32, %c0_i32_0 : i32, i32, i32
  }
  func.func @transform_1(%arg0: i32) -> (i32, i32) {
    %c0_i32 = arith.constant 0 : i32
    %c0_i32_0 = arith.constant 0 : i32
    %c0_i32_1 = arith.constant 0 : i32
    return %c0_i32, %c0_i32_0 : i32, i32
  }
  func.func @transform_2(%arg0: i32) -> (i32, i32) {
    %c0_i32 = arith.constant 0 : i32
    %c0_i32_0 = arith.constant 0 : i32
    %c0_i32_1 = arith.constant 0 : i32
    return %c0_i32, %c0_i32_0 : i32, i32
  }
  func.func @transform_3(%arg0: i32) -> (i32, i32) {
    %c0_i32 = arith.constant 0 : i32
    %c0_i32_0 = arith.constant 0 : i32
    %c0_i32_1 = arith.constant 0 : i32
    return %c0_i32, %c0_i32_0 : i32, i32
  }
  func.func @transform_4(%arg0: i32) -> (i32, i32, i32) {
    %c0_i32 = arith.constant 0 : i32
    %c0_i32_0 = arith.constant 0 : i32
    %c0_i32_1 = arith.constant 0 : i32
    return %arg0, %c0_i32, %c0_i32_0 : i32, i32, i32
  }
}

</mosaic_0001>

<bundles_post_ra>
// kernel: tpu_custom_call.1
= control target key start
LH: loop header
LB: loop body
LE: loop exit
PB: predicated region body
PF: predicated region fallthrough
CT: control target
= control target key end

     0   :  { %9 = vsyncpa [#allocation5], 0  ;;  %s2416_s0 = inlined_call_operand.hbm [shape: f32[2,16,128], index: 0, kind: input, shape index: {}]   ;;  %s2417_s1 = inlined_call_operand.hbm [shape: f32[1152,256], index: 1, kind: input, shape index: {}]   ;;  %s2418_s2 = inlined_call_operand.hbm [shape: f32[1,256], index: 2, kind: input, shape index: {}]   ;;  %s2419_s3 = inlined_call_operand.hbm [shape: f32[1152,128], index: 3, kind: input, shape index: {}]   ;;  %s2420_s4 = inlined_call_operand.hbm [shape: f32[2,16,128], index: 4, kind: output, shape index: {}]  }
   0x1   :  { %11 = vsyncpa [#allocation5 + $0x1], 0 }
   0x2   :  { %12 = vsyncpa [#allocation8], 0 }
   0x3   :  { %13 = vsyncpa [#allocation11], 0 }
   0x4   :  { %14 = vsyncpa [#allocation6], 0 }
   0x5   :  { %16 = vsyncpa [#allocation6 + $0x1], 0  ;;  %s2026_s15 = smov 0   ;;  %s2028_s16 = smov 0  }
   0x6   :  { %s2030_s17 = smov 0   ;;  %s2032_s18 = smov 0  }
   0x7 LB: > { %s2047_s19 = sadd.s32 4294967295, %s1988_s18   ;;  %s1667_s20 = sadd.s32 4294967294, %s1988_s18   ;;  %s1988_s18 = sphi %s2032_s18, %s2431_s18   ;;  %s1984_s17 = sphi %s2030_s17, %s2430_s17   ;;  %s1980_s16 = sphi %s2028_s16, %s2429_s16   ;;  %s1976_s15 = sphi %s2026_s15, %s2428_s15  }
   0x8   : > { %p42_p0 = scmp.ne.s32.totalorder %s1980_s16, %s1976_s15  ;;  %p43_p1 = scmp.eq.s32.totalorder %s2047_s19, 0 }
   0x9   : > { %p129_p2 = scmp.eq.s32.totalorder %s2047_s19, 1  ;;  %p135_p3 = scmp.eq.s32.totalorder %s1667_s20, 1 }
   0xa   : > { %p2056_p4 = por %p43_p1, %p42_p0  ;;  %p1668_p5 = scmp.ge.s32.totalorder %s1988_s18, 1 }
   0xb   : > { %p2061_p6 = por %p135_p3, %p42_p0  ;;  %p142_p7 = scmp.lt.s32.totalorder %s1988_s18, 3 }
   0xc   : > { %s153_s25 = sshll.u32 %s2417_s1, 4  ;;  %s1990_s27 = smov [#allocation7]   ;;  %s154_s25 = int_to_ptr.hbm [resolvable:$true] %s153_s25 }
   0xd   : > { %p2069_p8 = pnand %p1668_p5, %p142_p7  ;;  %s155_s28 = sshll.u32 %s1990_s27, 4  ;;  %s156_s28 = int_to_ptr.vmem [resolvable:$true] %s155_s28 }
   0xe   : > { %s168_s6 = sshll.u32 %s2418_s2, 4  ;;  %s1991_s7 = smov 256   ;;  %s169_s6 = int_to_ptr.hbm [resolvable:$true] %s168_s6 }
   0xf   : > { %p1721_p9 = pneg %p2069_p8  ;;  %s1992_s8 = smov 16  }
  0x10   : > { %s1993_s9 = smov [#allocation9]   ;;  %s179_s13 = sshll.u32 %s2419_s3, 4  ;;  %s180_s13 = int_to_ptr.hbm [resolvable:$true] %s179_s13 }
  0x11   : > { %p2077_p10 = pnand %p1721_p9, %p43_p1  ;;  %s170_s10 = sshll.u32 %s1993_s9, 4  ;;  %s171_s10 = int_to_ptr.vmem [resolvable:$true] %s170_s10 }
  0x12   : > { %s1994_s14 = smov [#allocation10]   ;;  %s1995_s23 = smov 128  }
  0x13   : > { %1724 = dma.hbm_to_vmem [thread:$0]  (!%p2077_p10), %s154_s25, 36864, %s156_s28, [#allocation8], %s1991_s7, %s1991_s7, %s1992_s8  }
  0x14   : > { %1727 = dma.hbm_to_vmem [thread:$0]  (!%p2077_p10), %s169_s6, 32, %s171_s10, [#allocation8]  }
  0x15   : > { %s181_s20 = sshll.u32 %s1994_s14, 4  ;;  %s1996_s24 = smov 8   ;;  %s182_s20 = int_to_ptr.vmem [resolvable:$true] %s181_s20 }
  0x16   : > { %1730 = dma.hbm_to_vmem [thread:$0]  (!%p2077_p10), %s180_s13, 18432, %s182_s20, [#allocation11], %s1995_s23, %s1995_s23, %s1996_s24  }
  0x17   : > { %s2098_s25 = sadd.s32 1, %s1988_s18   ;;  %s29_s28 = sadd.s32 1, %s1984_s17 }
  0x18   : > { %s26_s27 = ssub.s32 %s1988_s18, %s2098_s25  ;;  %p36_p13 = scmp.ne.s32.totalorder %s1984_s17, %s1980_s16 }
  0x19   : > { %p27_p12 = scmp.eq.s32.totalorder %s26_s27, 0  ;;  %p37_p0 = scmp.eq.s32.totalorder %s1988_s18, 0 }
  0x1a   : > { %p2111_p3 = por %p129_p2, %p36_p13  ;;  %p1742_p5 = scmp.lt.s32.totalorder %s1988_s18, 2 }
  0x1b   : > { %s2107_s30 = scalar_select %p27_p12, %s1984_s17, %s29_s28  }
  0x1c   : > { %s195_s29 = sand.u32 1, %s1984_s17   ;;  %s1687_s6 = sshll.u32 %s1988_s18, 4 }
  0x1d   : > { %p38_p7 = por %p37_p0, %p36_p13  ;;  %s1673_s7 = sshll.u32 %s195_s29, 4 }
  0x1e   : > { %s204_s10 = scalar_lea.hbm %s2416_s0, %s1687_s6  ;;  %s199_s12 = scalar_lea.vmem [#allocation4], %s1673_s7 }
  0x1f   : > { %s205_s11 = sshll.u32 %s204_s10, 4  ;;  %s207_s13 = sshll.u32 %s199_s12, 4  ;;  %s206_s11 = int_to_ptr.hbm [resolvable:$true] %s205_s11  ;;  %s208_s13 = int_to_ptr.vmem [resolvable:$true] %s207_s13 }
  0x20   : > { %p2121_p9 = pnand %p1742_p5, %p38_p7  ;;  %s196_s20 = scalar_lea.sflag [#allocation5], %s195_s29 }
  0x21   : > { %s1884_s27 = sshra.s32 %s206_s11, 4  ;;  %s1891_s7 = scalar_lea.hbm %s2416_s0, 32  ;;  %s1885_s27 = int_to_ptr.hbm [resolvable:$true] %s1884_s27 }
  0x22   : > { %s1886_s28 = scalar_lea.hbm %s1885_s27, 16  ;;  %p1888_p10 = pneg %p2121_p9 }
  0x23   : > { %p1887_p2 = scmp.ne.s32.totalorder %s1885_s27, %s1886_s28  ;;  %p1892_p0 = scmp.lt.s32.totalorder %s1885_s27, %s2416_s0 }
  0x24   : > { %p1893_p5 = scmp.lt.s32.totalorder %s1891_s7, %s1886_s28 }
  0x25   : > { %p1889_p12 = pnand %p1888_p10, %p1887_p2 }
  0x26   : > { %p1894_p7 = por %p1893_p5, %p1892_p0 }
  0x27   : > { %p1890_p13 = pneg %p1889_p12 }
  0x29   : > { %p1895_p11 = pnand %p1894_p7, %p1890_p13 }
  0x2b   : > { %1898 = shalt.err (!%p1895_p11)
}
  0x2c   : > { %1734 = dma.hbm_to_vmem [thread:$0]  (!%p2121_p9), %s206_s11, 256, %s208_s13, %s196_s20, %s1995_s23, %s1995_s23, %s1996_s24  }
  0x2d   : > { %219 = sbr.rel (%p2069_p8) target bundleno = 658 (0x292), region = 36  ;;  %s2141_s29 = sand.u32 (!%p2069_p8), 1, %s1980_s16  }
  0x2e   : > { %s1677_s12 = sshll.u32 (!%p2069_p8), %s2141_s29, 4  ;;  %s222_s27 = scalar_lea.sflag (!%p2069_p8), [#allocation5], %s2141_s29 }
  0x2f   : > { %s225_s28 = scalar_lea.vmem (!%p2069_p8), [#allocation4], %s1677_s12 }
  0x32   : > { %1959 = dma.done.wait (%p2056_p4), %s222_s27, 256  }
  0x33   : > { %1961 = vsyncadd (%p2056_p4), %s222_s27, 4294967040 }
  0x34   : > { %1963 = dma.done.wait (%p43_p1), [#allocation8], 36896  }
  0x35   : > { %1965 = vsyncadd (%p43_p1), [#allocation8], 4294930400 }
  0x36   : > { %1967 = dma.done.wait (%p43_p1), [#allocation11], 18432  }
  0x37   : > { %1969 = vsyncadd (%p43_p1), [#allocation11], 4294948864  ;;  %v2159_v0 = vld [vmem:[%s225_s28] sm:$0xff]  ;;  %v2161_v1 = vld [vmem:[%s225_s28 + $0x8] sm:$0xff]  ;;  %vm275_vm0 = vcmask 1040384   ;;  %vm335_vm1 = vcmask 1046528  }
  0x38   : > { %v446_v2 = vld [vmem:[#allocation7 + $0x1f0] sm:$0xff]  ;;  %v276_v3 = vrot.slane %v2159_v0, 7  ;;  %319 = vst [vmem:[#allocation2 + $0x20] sm:$0xff] %v2159_v0  ;;  %v277_v4 = vrot.slane %v2161_v1, 7  ;;  %v336_v5 = vrot.slane %v2159_v0, 1  ;;  %v2168_v6 = vrot.slane %v2161_v1, 1 }
  0x39   : > { %701 = vmatpush.msra.mxu1 %v446_v2  ;;  %v444_v7 = vld [vmem:[#allocation7 + $0x1e0] sm:$0xff]  ;;  %320 = vst [vmem:[#allocation2 + $0x68] sm:$0xff] %v2161_v1  ;;  %v442_v8 = vld [vmem:[#allocation7 + $0x1d0] sm:$0xff]  ;;  %s1997_s21 = smov 8   ;;  %s1998_s26 = smov 120   ;;  %v1999_v59 = vmov 0.0  }
  0x3a   : > { %279 = vrot.lane.b32.xlu0 %v276_v3, %s1997_s21  ;;  %292 = vst [vmem:[#allocation2 + $0x8] sm:$0xfe] %v276_v3  ;;  %v2173_v9 = vsel %vm275_vm0, %v276_v3, %v277_v4  ;;  %v414_v10 = vld [vmem:[#allocation7 + $0xf0] sm:$0xff]  ;;  %v2180_v11 = vsel %vm335_vm1, %v336_v5, %v2168_v6  ;;  %v440_v12 = vld [vmem:[#allocation7 + $0x1c0] sm:$0xff]  ;;  %vm269_vm2 = vcmask 64513   ;;  %vm271_vm3 = vcmask 64512  }
  0x3b   : > { %702 = vmatpush.msra.mxu1 %v444_v7  ;;  %281 = vrot.lane.b32.xlu1 %v2173_v9, %s1997_s21  ;;  %293 = vst [vmem:[#allocation2 + $0x50] sm:$0xff] %v2173_v9  ;;  %v412_v13 = vld [vmem:[#allocation7 + $0xe0] sm:$0xff]  ;;  %v438_v14 = vld [vmem:[#allocation7 + $0x1b0] sm:$0xff]  ;;  %vm295_vm4 = vcmask 1048513   ;;  %vm297_vm5 = vcmask 1048512   ;;  %vm307_vm6 = vcmask 982016  }
  0x3c   : > { %301 = vrot.lane.b32.xlu2 %v2173_v9, %s1998_s26  ;;  %351 = vst [vmem:[#allocation2 + $0x38] sm:$0xff] %v2180_v11  ;;  %678 = vmatpush.msra.mxu0 %v414_v10  ;;  %v410_v15 = vld [vmem:[#allocation7 + $0xd0] sm:$0xff]  ;;  %v436_v18 = vld [vmem:[#allocation7 + $0x1a0] sm:$0xff]  ;;  %vm287_vm7 = vcmask 1047616   ;;  %vm285_vm8 = vcmask 1047617   ;;  %vm333_vm9 = vcmask 63488  }
  0x3d   : > { %703 = vmatpush.msra.mxu1 %v442_v8  ;;  %352 = vst [vmem:[#allocation2 + $0x80] sm:$0x7f] %v2168_v6  ;;  %v478_v16 = vld [vmem:[#allocation7 + $0x2f0] sm:$0xff]  ;;  %v476_v19 = vld [vmem:[#allocation7 + $0x2e0] sm:$0xff]  ;;  %vm346_vm10 = vcmask 1046592   ;;  %vm305_vm11 = vcmask 982017  }
  0x3e   : > { %679 = vmatpush.msra.mxu0 %v412_v13  ;;  %v510_v17 = vld [vmem:[#allocation7 + $0x3f0] sm:$0xff]  ;;  %724 = vmatpush.msra.mxu2 %v478_v16  ;;  %v508_v20 = vld [vmem:[#allocation7 + $0x3e0] sm:$0xff]  ;;  %289 = vst [vmem:[#allocation2 + $0x8] sm:$0x1] %v1999_v59  ;;  %vm355_vm12 = vcmask 1047488   ;;  %vm364_vm13 = vcmask 980992  }
  0x3f   : > { %704 = vmatpush.msra.mxu1 %v440_v12  ;;  %747 = vmatpush.msra.mxu3 %v510_v17  ;;  %v434_v21 = vld [vmem:[#allocation7 + $0x190] sm:$0xff]  ;;  %v408_v22 = vld [vmem:[#allocation7 + $0xc0] sm:$0xff]  ;;  %268 = vst [vmem:[#allocation2] sm:$0x1] %v1999_v59  ;;  %s1688_s23 = sshll.u32 %s2047_s19, 4  ;;  %s265_s24 = scalar_lea.vmem [#allocation12], %s1677_s12 }
  0x40   : > { %680 = vmatpush.msra.mxu0 %v410_v15  ;;  %725 = vmatpush.msra.mxu2 %v476_v19  ;;  %v474_v23 = vld [vmem:[#allocation7 + $0x2d0] sm:$0xff]  ;;  %v432_v25 = vld [vmem:[#allocation7 + $0x180] sm:$0xff]  ;;  %294 = vst [vmem:[#allocation2 + $0x10] sm:$0x1] %v1999_v59  ;;  %s1561_s14 = scalar_lea.hbm %s2420_s4, %s1688_s23  ;;  %s1562_s20 = sshll.u32 %s265_s24, 4  ;;  %s1563_s20 = int_to_ptr.vmem [resolvable:$true] %s1562_s20 }
  0x41   : > { %705 = vmatpush.msra.mxu1 %v438_v14  ;;  %748 = vmatpush.msra.mxu3 %v508_v20  ;;  %v506_v24 = vld [vmem:[#allocation7 + $0x3d0] sm:$0xff]  ;;  %v472_v27 = vld [vmem:[#allocation7 + $0x2c0] sm:$0xff]  ;;  %331 = vst [vmem:[#allocation2 + $0x7f] sm:$0x1] %v1999_v59  ;;  %s1564_s6 = sshll.u32 %s1561_s14, 4  ;;  %s1550_s19 = scalar_lea.sflag [#allocation6], %s2141_s29  ;;  %s1565_s6 = int_to_ptr.hbm [resolvable:$true] %s1564_s6 }
  0x42   : > { %299 = vrot.lane.b32.xlu0 %v276_v3, %s1998_s26  ;;  %v406_v26 = vld [vmem:[#allocation7 + $0xb0] sm:$0xff]  ;;  %681 = vmatpush.msra.mxu0 %v408_v22  ;;  %v504_v28 = vld [vmem:[#allocation7 + $0x3c0] sm:$0xff]  ;;  %348 = vst [vmem:[#allocation2 + $0x87] sm:$0x1] %v1999_v59  ;;  %s1928_s8 = sshra.s32 %s1565_s6, 4  ;;  %s1934_s12 = scalar_lea.hbm %s2420_s4, 32  ;;  %s1929_s8 = int_to_ptr.hbm [resolvable:$true] %s1928_s8 }
  0x43   : > { %706 = vmatpush.msra.mxu1 %v436_v18  ;;  %311 = vrot.lane.b32.xlu1 %v2159_v0, %s1997_s21  ;;  %v430_v29 = vld [vmem:[#allocation7 + $0x170] sm:$0xff]  ;;  %v404_v30 = vld [vmem:[#allocation7 + $0xa0] sm:$0xff]  ;;  %353 = vst [vmem:[#allocation2 + $0x8f] sm:$0x1] %v1999_v59  ;;  %s1930_s7 = scalar_lea.hbm %s1929_s8, 16  ;;  %p1935_p11 = scmp.lt.s32.totalorder %s1929_s8, %s2420_s4 }
  0x44   : > { %313 = vrot.lane.b32.xlu2 %v2161_v1, %s1997_s21  ;;  %726 = vmatpush.msra.mxu2 %v474_v23  ;;  %v470_v31 = vld [vmem:[#allocation7 + $0x2b0] sm:$0xff]  ;;  %v428_v33 = vld [vmem:[#allocation7 + $0x160] sm:$0xff]  ;;  %1094 = vst [vmem:[#allocation3] sm:$0x1] %v1999_v59  ;;  %p1931_p1 = scmp.ne.s32.totalorder %s1929_s8, %s1930_s7  ;;  %p1936_p9 = scmp.lt.s32.totalorder %s1934_s12, %s1930_s7 }
  0x45   : > { %707 = vmatpush.msra.mxu1 %v434_v21  ;;  %749 = vmatpush.msra.mxu3 %v506_v24  ;;  %v502_v32 = vld [vmem:[#allocation7 + $0x3b0] sm:$0xff]  ;;  %v468_v36 = vld [vmem:[#allocation7 + $0x2a0] sm:$0xff]  ;;  %1110 = vst [vmem:[#allocation3 + $0x8] sm:$0x1] %v1999_v59 }
  0x46   : > { %682 = vmatpush.msra.mxu0 %v406_v26  ;;  %727 = vmatpush.msra.mxu2 %v472_v27  ;;  %v426_v34 = vld [vmem:[#allocation7 + $0x150] sm:$0xff]  ;;  %v500_v37 = vld [vmem:[#allocation7 + $0x3a0] sm:$0xff]  ;;  %1115 = vst [vmem:[#allocation3 + $0x10] sm:$0x1] %v1999_v59  ;;  %p1932_p4 = pnand %p1931_p1, %p2111_p3  ;;  %p1937_p2 = por %p1936_p9, %p1935_p11 }
  0x47   : > { %708 = vmatpush.msra.mxu1 %v432_v25  ;;  %750 = vmatpush.msra.mxu3 %v504_v28  ;;  %v402_v35 = vld [vmem:[#allocation7 + $0x90] sm:$0xff]  ;;  %v424_v38 = vld [vmem:[#allocation7 + $0x140] sm:$0xff]  ;;  %1148 = vst [vmem:[#allocation3 + $0x7f] sm:$0x1] %v1999_v59 }
  0x48   : > { %683 = vmatpush.msra.mxu0 %v404_v30  ;;  %728 = vmatpush.msra.mxu2 %v470_v31  ;;  %v400_v39 = vld [vmem:[#allocation7 + $0x80] sm:$0xff]  ;;  %v466_v40 = vld [vmem:[#allocation7 + $0x290] sm:$0xff]  ;;  %1162 = vst [vmem:[#allocation3 + $0x87] sm:$0x1] %v1999_v59  ;;  %p1933_p8 = pneg %p1932_p4 }
  0x49   : > { %709 = vmatpush.msra.mxu1 %v430_v29  ;;  %751 = vmatpush.msra.mxu3 %v502_v32  ;;  %v498_v41 = vld [vmem:[#allocation7 + $0x390] sm:$0xff]  ;;  %v464_v44 = vld [vmem:[#allocation7 + $0x280] sm:$0xff]  ;;  %1167 = vst [vmem:[#allocation3 + $0x8f] sm:$0x1] %v1999_v59 }
  0x4a   : > { %339 = vrot.lane.b32.xlu0 %v2180_v11, %s1997_s21  ;;  %684 = vmatpush.msra.mxu0 %v402_v35  ;;  %v422_v42 = vld [vmem:[#allocation7 + $0x130] sm:$0xff]  ;;  %v496_v45 = vld [vmem:[#allocation7 + $0x380] sm:$0xff]  ;;  %270 = vst.msk [vmem:[#allocation2] sm:$0xfe] %vm269_vm2, %v1999_v59  ;;  %p1938_p10 = pnand %p1937_p2, %p1933_p8 }
  0x4b   : > { %710 = vmatpush.msra.mxu1 %v428_v33  ;;  %323 = vrot.lane.b32.xlu1 %v2159_v0, %s1998_s26  ;;  %v398_v43 = vld [vmem:[#allocation7 + $0x70] sm:$0xff]  ;;  %v420_v46 = vld [vmem:[#allocation7 + $0x120] sm:$0xff]  ;;  %1095 = vst.msk [vmem:[#allocation3] sm:$0xfe] %vm269_vm2, %v1999_v59 }
  0x4c   : > { %341 = vrot.lane.b32.xlu2 %v2168_v6, %s1997_s21  ;;  %729 = vmatpush.msra.mxu2 %v468_v36  ;;  %v418_v47 = vld [vmem:[#allocation7 + $0x110] sm:$0xff]  ;;  %v396_v48 = vld [vmem:[#allocation7 + $0x60] sm:$0xff]  ;;  %272 = vst.msk [vmem:[#allocation2 + $0x48] sm:$0xff] %vm271_vm3, %v1999_v59 }
  0x4d   : > { %711 = vmatpush.msra.mxu1 %v426_v34  ;;  %752 = vmatpush.msra.mxu3 %v500_v37  ;;  %v462_v49 = vld [vmem:[#allocation7 + $0x270] sm:$0xff]  ;;  %v416_v51 = vld [vmem:[#allocation7 + $0x100] sm:$0xff]  ;;  %309 = vst.msk [vmem:[#allocation2 + $0x18] sm:$0xff] %vm271_vm3, %v1999_v59 }
  0x4e   : > { %685 = vmatpush.msra.mxu0 %v400_v39  ;;  %730 = vmatpush.msra.mxu2 %v466_v40  ;;  %v494_v50 = vld [vmem:[#allocation7 + $0x370] sm:$0xff]  ;;  %v460_v54 = vld [vmem:[#allocation7 + $0x260] sm:$0xff]  ;;  %310 = vst.msk [vmem:[#allocation2 + $0x60] sm:$0xff] %vm271_vm3, %v1999_v59 }
  0x4f   : > { %712 = vmatpush.msra.mxu1 %v424_v38  ;;  %753 = vmatpush.msra.mxu3 %v498_v41  ;;  %v394_v52 = vld [vmem:[#allocation7 + $0x50] sm:$0xff]  ;;  %v392_v55 = vld [vmem:[#allocation7 + $0x40] sm:$0xff]  ;;  %v2219_v41 = vld [vmem:[#allocation2 + $0x8] sm:$0xff]  ;;  %332 = vst.msk [vmem:[#allocation2 + $0x30] sm:$0xff] %vm271_vm3, %v1999_v59 }
  0x50   : > { %686 = vmatpush.msra.mxu0 %v398_v43  ;;  %731 = vmatpush.msra.mxu2 %v464_v44  ;;  %v574_v53 = vld [vmem:[#allocation7 + $0x5f0] sm:$0xff]  ;;  %v492_v56 = vld [vmem:[#allocation7 + $0x360] sm:$0xff]  ;;  %1096 = vst.msk [vmem:[#allocation3 + $0x48] sm:$0xff] %vm271_vm3, %v1999_v59 }
  0x51   : > { %713 = vmatpush.msra.mxu1 %v422_v42  ;;  %754 = vmatpush.msra.mxu3 %v496_v45  ;;  %v572_v57 = vld [vmem:[#allocation7 + $0x5e0] sm:$0xff]  ;;  %v458_v58 = vld [vmem:[#allocation7 + $0x250] sm:$0xff]  ;;  %1126 = vst.msk [vmem:[#allocation3 + $0x18] sm:$0xff] %vm271_vm3, %v1999_v59 }
  0x52   : > { %357 = vrot.lane.b32.xlu0 %v2180_v11, %s1998_s26  ;;  %687 = vmatpush.msra.mxu0 %v396_v48  ;;  %v390_v60 = vld [vmem:[#allocation7 + $0x30] sm:$0xff]  ;;  %v456_v63 = vld [vmem:[#allocation7 + $0x240] sm:$0xff]  ;;  %1127 = vst.msk [vmem:[#allocation3 + $0x60] sm:$0xff] %vm271_vm3, %v1999_v59 }
  0x53   : > { %714 = vmatpush.msra.mxu1 %v420_v46  ;;  %325 = vrot.lane.b32.xlu1 %v2161_v1, %s1998_s26  ;;  %v490_v61 = vld [vmem:[#allocation7 + $0x350] sm:$0xff]  ;;  %v388_v2 = vld [vmem:[#allocation7 + $0x20] sm:$0xff]  ;;  %1149 = vst.msk [vmem:[#allocation3 + $0x30] sm:$0xff] %vm271_vm3, %v1999_v59 }
  0x54   : > { %359 = vrot.lane.b32.xlu2 %v2168_v6, %s1998_s26  ;;  %732 = vmatpush.msra.mxu2 %v462_v49  ;;  %v570_v62 = vld [vmem:[#allocation7 + $0x5d0] sm:$0xff]  ;;  %v488_v3 = vld [vmem:[#allocation7 + $0x340] sm:$0xff]  ;;  %296 = vst.msk [vmem:[#allocation2 + $0x10] sm:$0xfe] %vm295_vm4, %v1999_v59 }
  0x55   : > { %715 = vmatpush.msra.mxu1 %v418_v47  ;;  %755 = vmatpush.msra.mxu3 %v494_v50  ;;  %v568_v4 = vld [vmem:[#allocation7 + $0x5c0] sm:$0xff]  ;;  %v454_v5 = vld [vmem:[#allocation7 + $0x230] sm:$0xff]  ;;  %1116 = vst.msk [vmem:[#allocation3 + $0x10] sm:$0xfe] %vm295_vm4, %v1999_v59 }
  0x56   : > { %688 = vmatpush.msra.mxu0 %v394_v52  ;;  %733 = vmatpush.msra.mxu2 %v460_v54  ;;  %v386_v6 = vld [vmem:[#allocation7 + $0x10] sm:$0xff]  ;;  %v452_v10 = vld [vmem:[#allocation7 + $0x220] sm:$0xff]  ;;  %298 = vst.msk [vmem:[#allocation2 + $0x58] sm:$0xff] %vm297_vm5, %v1999_v59 }
  0x57   : > { %716 = vmatpush.msra.mxu1 %v416_v51  ;;  %756 = vmatpush.msra.mxu3 %v492_v56  ;;  %v486_v7 = vld [vmem:[#allocation7 + $0x330] sm:$0xff]  ;;  %v384_v12 = vld [vmem:[#allocation7] sm:$0xff]  ;;  %v415_v56 = vld [vmem:[#allocation7 + $0xf8] sm:$0xff]  ;;  %321 = vst.msk [vmem:[#allocation2 + $0x28] sm:$0xff] %vm297_vm5, %v1999_v59 }
  0x58   : > { %689 = vmatpush.msra.mxu0 %v392_v55  ;;  %734 = vmatpush.msra.mxu2 %v458_v58  ;;  %v566_v8 = vld [vmem:[#allocation7 + $0x5b0] sm:$0xff]  ;;  %v484_v13 = vld [vmem:[#allocation7 + $0x320] sm:$0xff]  ;;  %v413_v58 = vld [vmem:[#allocation7 + $0xe8] sm:$0xff]  ;;  %322 = vst.msk [vmem:[#allocation2 + $0x70] sm:$0xff] %vm297_vm5, %v1999_v59 }
  0x59   : > { %793 = vmatpush.msrb.mxu1 %v574_v53  ;;  %757 = vmatpush.msra.mxu3 %v490_v61  ;;  %v564_v14 = vld [vmem:[#allocation7 + $0x5a0] sm:$0xff]  ;;  %v542_v15 = vld [vmem:[#allocation7 + $0x4f0] sm:$0xff]  ;;  %354 = vst.msk [vmem:[#allocation2 + $0x40] sm:$0xff] %vm297_vm5, %v1999_v59 }
  0x5a   : > { %690 = vmatpush.msra.mxu0 %v390_v60  ;;  %735 = vmatpush.msra.mxu2 %v456_v63  ;;  %v450_v16 = vld [vmem:[#allocation7 + $0x210] sm:$0xff]  ;;  %v540_v19 = vld [vmem:[#allocation7 + $0x4e0] sm:$0xff]  ;;  %v411_v60 = vld [vmem:[#allocation7 + $0xd8] sm:$0xff]  ;;  %1117 = vst.msk [vmem:[#allocation3 + $0x58] sm:$0xff] %vm297_vm5, %v1999_v59 }
  0x5b   : > { %794 = vmatpush.msrb.mxu1 %v572_v57  ;;  %758 = vmatpush.msra.mxu3 %v488_v3  ;;  %v482_v17 = vld [vmem:[#allocation7 + $0x310] sm:$0xff]  ;;  %v448_v20 = vld [vmem:[#allocation7 + $0x200] sm:$0xff]  ;;  %1138 = vst.msk [vmem:[#allocation3 + $0x28] sm:$0xff] %vm297_vm5, %v1999_v59 }
  0x5c   : > { %691 = vmatpush.msra.mxu0 %v388_v2  ;;  %736 = vmatpush.msra.mxu2 %v454_v5  ;;  %v562_v18 = vld [vmem:[#allocation7 + $0x590] sm:$0xff]  ;;  %v480_v21 = vld [vmem:[#allocation7 + $0x300] sm:$0xff]  ;;  %1139 = vst.msk [vmem:[#allocation3 + $0x70] sm:$0xff] %vm297_vm5, %v1999_v59 }
  0x5d   : > { %795 = vmatpush.msrb.mxu1 %v570_v62  ;;  %759 = vmatpush.msra.mxu3 %v486_v7  ;;  %v560_v22 = vld [vmem:[#allocation7 + $0x580] sm:$0xff]  ;;  %v538_v23 = vld [vmem:[#allocation7 + $0x4d0] sm:$0xff]  ;;  %v409_v62 = vld [vmem:[#allocation7 + $0xc8] sm:$0xff]  ;;  %1168 = vst.msk [vmem:[#allocation3 + $0x40] sm:$0xff] %vm297_vm5, %v1999_v59 }
  0x5e   : > { %692 = vmatpush.msra.mxu0 %v386_v6  ;;  %737 = vmatpush.msra.mxu2 %v452_v10  ;;  %v606_v24 = vld [vmem:[#allocation7 + $0x6f0] sm:$0xff]  ;;  %v536_v27 = vld [vmem:[#allocation7 + $0x4c0] sm:$0xff]  ;;  %v405_v7 = vld [vmem:[#allocation7 + $0xa8] sm:$0xff]  ;;  %334 = vst.msk [vmem:[#allocation2 + $0x78] sm:$0x7f] %vm333_vm9, %v1999_v59 }
  0x5f   : > { %796 = vmatpush.msrb.mxu1 %v568_v4  ;;  %760 = vmatpush.msra.mxu3 %v484_v13  ;;  %v638_v25 = vld [vmem:[#allocation7 + $0x7f0] sm:$0xff]  ;;  %v604_v28 = vld [vmem:[#allocation7 + $0x6e0] sm:$0xff]  ;;  %v407_v4 = vld [vmem:[#allocation7 + $0xb8] sm:$0xff]  ;;  %1150 = vst.msk [vmem:[#allocation3 + $0x78] sm:$0x7f] %vm333_vm9, %v1999_v59 }
  0x60   : > { %693 = vmatpush.msra.mxu0 %v384_v12  ;;  %738 = vmatpush.msra.mxu2 %v450_v16  ;;  %v558_v26 = vld [vmem:[#allocation7 + $0x570] sm:$0xff]  ;;  %v636_v29 = vld [vmem:[#allocation7 + $0x7e0] sm:$0xff]  ;;  %v403_v13 = vld [vmem:[#allocation7 + $0x98] sm:$0xff]  ;;  %356 = vst.msk [vmem:[#allocation2 + $0x88] sm:$0x7f] %vm355_vm12, %v1999_v59 }
  0x61   : > { %797 = vmatpush.msrb.mxu1 %v566_v8  ;;  %761 = vmatpush.msra.mxu3 %v482_v17  ;;  %v556_v30 = vld [vmem:[#allocation7 + $0x560] sm:$0xff]  ;;  %v534_v31 = vld [vmem:[#allocation7 + $0x4b0] sm:$0xff]  ;;  %v401_v17 = vld [vmem:[#allocation7 + $0x88] sm:$0xff]  ;;  %1169 = vst.msk [vmem:[#allocation3 + $0x88] sm:$0x7f] %vm355_vm12, %v1999_v59 }
  0x62   : > { %770 = vmatpush.msrb.mxu0 %v542_v15  ;;  %739 = vmatpush.msra.mxu2 %v448_v20  ;;  %v602_v32 = vld [vmem:[#allocation7 + $0x6d0] sm:$0xff]  ;;  %v532_v35 = vld [vmem:[#allocation7 + $0x4a0] sm:$0xff] }
  0x63   : > { %798 = vmatpush.msrb.mxu1 %v564_v14  ;;  %762 = vmatpush.msra.mxu3 %v480_v21  ;;  %v634_v33 = vld [vmem:[#allocation7 + $0x7d0] sm:$0xff]  ;;  %v600_v36 = vld [vmem:[#allocation7 + $0x6c0] sm:$0xff]  ;;  %v399_v21 = vld [vmem:[#allocation7 + $0x78] sm:$0xff] }
  0x64   : > { %771 = vmatpush.msrb.mxu0 %v540_v19  ;;  %816 = vmatpush.msrb.mxu2 %v606_v24  ;;  %v554_v34 = vld [vmem:[#allocation7 + $0x550] sm:$0xff]  ;;  %v632_v37 = vld [vmem:[#allocation7 + $0x7c0] sm:$0xff]  ;;  %v397_v24 = vld [vmem:[#allocation7 + $0x68] sm:$0xff] }
  0x65   : > { %799 = vmatpush.msrb.mxu1 %v562_v18  ;;  %839 = vmatpush.msrb.mxu3 %v638_v25  ;;  %v552_v38 = vld [vmem:[#allocation7 + $0x540] sm:$0xff]  ;;  %v530_v39 = vld [vmem:[#allocation7 + $0x490] sm:$0xff] }
  0x66   : > { %772 = vmatpush.msrb.mxu0 %v538_v23  ;;  %817 = vmatpush.msrb.mxu2 %v604_v28  ;;  %v598_v40 = vld [vmem:[#allocation7 + $0x6b0] sm:$0xff]  ;;  %v528_v43 = vld [vmem:[#allocation7 + $0x480] sm:$0xff] }
  0x67   : > { %800 = vmatpush.msrb.mxu1 %v560_v22  ;;  %840 = vmatpush.msrb.mxu3 %v636_v29  ;;  %v550_v42 = vld [vmem:[#allocation7 + $0x530] sm:$0xff]  ;;  %v596_v45 = vld [vmem:[#allocation7 + $0x6a0] sm:$0xff] }
  0x68   : > { %773 = vmatpush.msrb.mxu0 %v536_v27  ;;  %818 = vmatpush.msrb.mxu2 %v602_v32  ;;  %v630_v44 = vld [vmem:[#allocation7 + $0x7b0] sm:$0xff]  ;;  %v548_v46 = vld [vmem:[#allocation7 + $0x520] sm:$0xff]  ;;  %v395_v27 = vld [vmem:[#allocation7 + $0x58] sm:$0xff] }
  0x69   : > { %801 = vmatpush.msrb.mxu1 %v558_v26  ;;  %841 = vmatpush.msrb.mxu3 %v634_v33  ;;  %v526_v47 = vld [vmem:[#allocation7 + $0x470] sm:$0xff]  ;;  %v628_v48 = vld [vmem:[#allocation7 + $0x7a0] sm:$0xff]  ;;  %v391_v32 = vld [vmem:[#allocation7 + $0x38] sm:$0xff] }
  0x6a   : > { %774 = vmatpush.msrb.mxu0 %v534_v31  ;;  %819 = vmatpush.msrb.mxu2 %v600_v36  ;;  %v594_v49 = vld [vmem:[#allocation7 + $0x690] sm:$0xff]  ;;  %v524_v51 = vld [vmem:[#allocation7 + $0x460] sm:$0xff]  ;;  %v389_v33 = vld [vmem:[#allocation7 + $0x28] sm:$0xff] }
  0x6b   : > { %802 = vmatpush.msrb.mxu1 %v556_v30  ;;  %842 = vmatpush.msrb.mxu3 %v632_v37  ;;  %v546_v50 = vld [vmem:[#allocation7 + $0x510] sm:$0xff]  ;;  %v592_v53 = vld [vmem:[#allocation7 + $0x680] sm:$0xff]  ;;  %v393_v30 = vld [vmem:[#allocation7 + $0x48] sm:$0xff] }
  0x6c   : > { %775 = vmatpush.msrb.mxu0 %v532_v35  ;;  %820 = vmatpush.msrb.mxu2 %v598_v40  ;;  %v626_v52 = vld [vmem:[#allocation7 + $0x790] sm:$0xff]  ;;  %v544_v54 = vld [vmem:[#allocation7 + $0x500] sm:$0xff]  ;;  %v385_v35 = vld [vmem:[#allocation7 + $0x8] sm:$0xff] }
  0x6d   : > { %803 = vmatpush.msrb.mxu1 %v554_v34  ;;  %843 = vmatpush.msrb.mxu3 %v630_v44  ;;  %v522_v55 = vld [vmem:[#allocation7 + $0x450] sm:$0xff]  ;;  %v520_v57 = vld [vmem:[#allocation7 + $0x440] sm:$0xff]  ;;  %v387_v34 = vld [vmem:[#allocation7 + $0x18] sm:$0xff] }
  0x6e   : > { %776 = vmatpush.msrb.mxu0 %v530_v39  ;;  %717 = vmatmul.f32.vlgmr.msra.gmra.mxu1 %v2219_v41  ;;  %v624_v61 = vld [vmem:[#allocation7 + $0x780] sm:$0xff]  ;;  %v518_v63 = vld [vmem:[#allocation7 + $0x430] sm:$0xff] }
  0x6f   : > { %804 = vmatpush.msrb.mxu1 %v552_v38  ;;  %821 = vmatpush.msrb.mxu2 %v596_v45  ;;  %v590_v2 = vld [vmem:[#allocation7 + $0x670] sm:$0xff]  ;;  %v516_v5 = vld [vmem:[#allocation7 + $0x420] sm:$0xff] }
  0x70   : > { %777 = vmatpush.msrb.mxu0 %v528_v43  ;;  %844 = vmatpush.msrb.mxu3 %v628_v48  ;;  %v622_v3 = vld [vmem:[#allocation7 + $0x770] sm:$0xff]  ;;  %v620_v6 = vld [vmem:[#allocation7 + $0x760] sm:$0xff]  ;;  %v447_v48 = vld [vmem:[#allocation7 + $0x1f8] sm:$0xff] }
  0x71   : > { %805 = vmatpush.msrb.mxu1 %v550_v42  ;;  %822 = vmatpush.msrb.mxu2 %v594_v49  ;;  %v514_v8 = vld [vmem:[#allocation7 + $0x410] sm:$0xff]  ;;  %v512_v14 = vld [vmem:[#allocation7 + $0x400] sm:$0xff] }
  0x72   : > { %778 = vmatpush.msrb.mxu0 %v526_v47  ;;  %845 = vmatpush.msrb.mxu3 %v626_v52  ;;  %v586_v10 = vld [vmem:[#allocation7 + $0x650] sm:$0xff]  ;;  %v584_v15 = vld [vmem:[#allocation7 + $0x640] sm:$0xff] }
  0x73   : > { %806 = vmatpush.msrb.mxu1 %v548_v46  ;;  %823 = vmatpush.msrb.mxu2 %v592_v53  ;;  %v618_v12 = vld [vmem:[#allocation7 + $0x750] sm:$0xff]  ;;  %v616_v16 = vld [vmem:[#allocation7 + $0x740] sm:$0xff] }
  0x74   : > { %779 = vmatpush.msrb.mxu0 %v524_v51  ;;  %846 = vmatpush.msrb.mxu3 %v624_v61  ;;  %v582_v19 = vld [vmem:[#allocation7 + $0x630] sm:$0xff]  ;;  %v580_v22 = vld [vmem:[#allocation7 + $0x620] sm:$0xff]  ;;  %v443_v61 = vld [vmem:[#allocation7 + $0x1d8] sm:$0xff] }
  0x75   : > { %807 = vmatpush.msrb.mxu1 %v546_v50  ;;  %824 = vmatpush.msrb.mxu2 %v590_v2  ;;  %v614_v20 = vld [vmem:[#allocation7 + $0x730] sm:$0xff]  ;;  %v612_v23 = vld [vmem:[#allocation7 + $0x720] sm:$0xff]  ;;  %v441_v2 = vld [vmem:[#allocation7 + $0x1c8] sm:$0xff] }
  0x76   : > { %780 = vmatpush.msrb.mxu0 %v522_v55  ;;  %720 = vmatmul.f32.gmra.mxu1 %v2173_v9  ;;  %v588_v9 = vld [vmem:[#allocation7 + $0x660] sm:$0xff]  ;;  %v578_v25 = vld [vmem:[#allocation7 + $0x610] sm:$0xff]  ;;  %v479_v55 = vld [vmem:[#allocation7 + $0x2f8] sm:$0xff] }
  0x77   : > { %808 = vmatpush.msrb.mxu1 %v544_v54  ;;  %847 = vmatpush.msrb.mxu3 %v622_v3  ;;  %v610_v26 = vld [vmem:[#allocation7 + $0x710] sm:$0xff]  ;;  %v576_v28 = vld [vmem:[#allocation7 + $0x600] sm:$0xff]  ;;  %v473_v3 = vld [vmem:[#allocation7 + $0x2c8] sm:$0xff] }
  0x78   : > { %781 = vmatpush.msrb.mxu0 %v520_v57  ;;  %825 = vmatpush.msrb.mxu2 %v588_v9  ;;  %v608_v29 = vld [vmem:[#allocation7 + $0x700] sm:$0xff]  ;;  %v670_v39 = vld [vmem:[#allocation7 + $0x8f0] sm:$0xff]  ;;  %v445_v57 = vld [vmem:[#allocation7 + $0x1e8] sm:$0xff] }
  0x79   : > { %885 = vmatpush.msra.mxu1 %v415_v56  ;;  %848 = vmatpush.msrb.mxu3 %v620_v6  ;;  %v668_v44 = vld [vmem:[#allocation7 + $0x8e0] sm:$0xff]  ;;  %v666_v45 = vld [vmem:[#allocation7 + $0x8d0] sm:$0xff] }
  0x7a   : > { %782 = vmatpush.msrb.mxu0 %v518_v63  ;;  %826 = vmatpush.msrb.mxu2 %v586_v10  ;;  %v664_v46 = vld [vmem:[#allocation7 + $0x8c0] sm:$0xff]  ;;  %v662_v47 = vld [vmem:[#allocation7 + $0x8b0] sm:$0xff]  ;;  %v471_v10 = vld [vmem:[#allocation7 + $0x2b8] sm:$0xff] }
  0x7b   : > { %886 = vmatpush.msra.mxu1 %v413_v58  ;;  %849 = vmatpush.msrb.mxu3 %v618_v12  ;;  %v660_v56 = vld [vmem:[#allocation7 + $0x8a0] sm:$0xff]  ;;  %v477_v58 = vld [vmem:[#allocation7 + $0x2e8] sm:$0xff]  ;;  %v543_v12 = vld [vmem:[#allocation7 + $0x4f8] sm:$0xff] }
  0x7c   : > { %783 = vmatpush.msrb.mxu0 %v516_v5  ;;  %827 = vmatpush.msrb.mxu2 %v584_v15  ;;  %v656_v63 = vld [vmem:[#allocation7 + $0x880] sm:$0xff]  ;;  %v439_v5 = vld [vmem:[#allocation7 + $0x1b8] sm:$0xff]  ;;  %v469_v15 = vld [vmem:[#allocation7 + $0x2a8] sm:$0xff] }
  0x7d   : > { %887 = vmatpush.msra.mxu1 %v411_v60  ;;  %850 = vmatpush.msrb.mxu3 %v616_v16  ;;  %v658_v60 = vld [vmem:[#allocation7 + $0x890] sm:$0xff]  ;;  %v541_v16 = vld [vmem:[#allocation7 + $0x4e8] sm:$0xff] }
  0x7e   : > { %784 = vmatpush.msrb.mxu0 %v514_v8  ;;  %828 = vmatpush.msrb.mxu2 %v582_v19  ;;  %v539_v19 = vld [vmem:[#allocation7 + $0x4d8] sm:$0xff] }
  0x7f   : > { %888 = vmatpush.msra.mxu1 %v409_v62  ;;  %851 = vmatpush.msrb.mxu3 %v614_v20  ;;  %v475_v62 = vld [vmem:[#allocation7 + $0x2d8] sm:$0xff]  ;;  %v648_v20 = vld [vmem:[#allocation7 + $0x840] sm:$0xff] }
  0x80   : > { %785 = vmatpush.msrb.mxu0 %v512_v14  ;;  %829 = vmatpush.msrb.mxu2 %v580_v22  ;;  %v437_v14 = vld [vmem:[#allocation7 + $0x1a8] sm:$0xff] }
  0x81   : > { %889 = vmatpush.msra.mxu1 %v407_v4  ;;  %852 = vmatpush.msrb.mxu3 %v612_v23  ;;  %v654_v4 = vld [vmem:[#allocation7 + $0x870] sm:$0xff]  ;;  %v465_v22 = vld [vmem:[#allocation7 + $0x288] sm:$0xff] }
  0x82   : > { %830 = vmatpush.msrb.mxu2 %v578_v25  ;;  %v537_v23 = vld [vmem:[#allocation7 + $0x4c8] sm:$0xff]  ;;  %v646_v25 = vld [vmem:[#allocation7 + $0x830] sm:$0xff] }
  0x83   : > { %890 = vmatpush.msra.mxu1 %v405_v7  ;;  %853 = vmatpush.msrb.mxu3 %v610_v26  ;;  %v431_v26 = vld [vmem:[#allocation7 + $0x178] sm:$0xff] }
  0x84   : > { %831 = vmatpush.msrb.mxu2 %v576_v28  ;;  %v535_v28 = vld [vmem:[#allocation7 + $0x4b8] sm:$0xff] }
  0x85   : > { %891 = vmatpush.msra.mxu1 %v403_v13  ;;  %854 = vmatpush.msrb.mxu3 %v608_v29  ;;  %v652_v13 = vld [vmem:[#allocation7 + $0x860] sm:$0xff]  ;;  %v463_v29 = vld [vmem:[#allocation7 + $0x278] sm:$0xff] }
  0x87   : > { %892 = vmatpush.msra.mxu1 %v401_v17  ;;  %v435_v17 = vld [vmem:[#allocation7 + $0x198] sm:$0xff] }
  0x89   : > { %893 = vmatpush.msra.mxu1 %v399_v21  ;;  %v433_v21 = vld [vmem:[#allocation7 + $0x188] sm:$0xff] }
  0x8b   : > { %894 = vmatpush.msra.mxu1 %v397_v24 }
  0x8d   : > { %895 = vmatpush.msra.mxu1 %v395_v27 }
  0x8f   : > { %896 = vmatpush.msra.mxu1 %v393_v30  ;;  %v644_v30 = vld [vmem:[#allocation7 + $0x820] sm:$0xff] }
  0x91   : > { %897 = vmatpush.msra.mxu1 %v391_v32  ;;  %v461_v32 = vld [vmem:[#allocation7 + $0x268] sm:$0xff] }
  0x93   : > { %898 = vmatpush.msra.mxu1 %v389_v33  ;;  %v533_v33 = vld [vmem:[#allocation7 + $0x4a8] sm:$0xff] }
  0x95   : > { %899 = vmatpush.msra.mxu1 %v387_v34  ;;  %v642_v34 = vld [vmem:[#allocation7 + $0x810] sm:$0xff] }
  0x96   : > { %v302_v18 = vpop.permute.xlu2 %301 }
  0x97   : > { %308 = vst.msk [vmem:[#allocation2 + $0x58] sm:$0xff] %vm307_vm6, %v302_v18  ;;  %900 = vmatpush.msra.mxu1 %v385_v35  ;;  %v467_v18 = vld [vmem:[#allocation7 + $0x298] sm:$0xff] }
  0x98   : > { %v427_v35 = vld [vmem:[#allocation7 + $0x158] sm:$0xff] }
  0x9e   : > { %v314_v31 = vpop.permute.xlu2 %313  ;;  %v2285_v6 = vld [vmem:[#allocation2 + $0x58] sm:$0xff] }
  0x9f   : > { %318 = vst.msk [vmem:[#allocation2 + $0x60] sm:$0xff] %vm287_vm7, %v314_v31  ;;  %v429_v31 = vld [vmem:[#allocation7 + $0x168] sm:$0xff] }
  0xa6   : > { %v342_v38 = vpop.permute.xlu2 %341  ;;  %v2287_v8 = vld [vmem:[#allocation2 + $0x60] sm:$0xff] }
  0xa7   : > { %347 = vst.msk [vmem:[#allocation2 + $0x78] sm:$0x7f] %vm346_vm10, %v342_v38  ;;  %v640_v38 = vld [vmem:[#allocation7 + $0x800] sm:$0xff] }
  0xac   : > { %v280_v36 = vpop.permute.xlu0 %279 }
  0xad   : > { %286 = vst.msk [vmem:[#allocation2] sm:$0xfe] %vm285_vm8, %v280_v36  ;;  %v282_v37 = vpop.permute.xlu1 %281  ;;  %v459_v36 = vld [vmem:[#allocation7 + $0x258] sm:$0xff] }
  0xae   : > { %288 = vst.msk [vmem:[#allocation2 + $0x48] sm:$0xff] %vm287_vm7, %v282_v37  ;;  %v360_v52 = vpop.permute.xlu2 %359  ;;  %v531_v37 = vld [vmem:[#allocation7 + $0x498] sm:$0xff] }
  0xaf   : > { %365 = vst.msk [vmem:[#allocation2 + $0x88] sm:$0x7f] %vm364_vm13, %v360_v52  ;;  %v421_v52 = vld [vmem:[#allocation7 + $0x128] sm:$0xff] }
  0xb4   : > { %v300_v40 = vpop.permute.xlu0 %299  ;;  %v2264_v42 = vld [vmem:[#allocation2] sm:$0xff] }
  0xb5   : > { %306 = vst.msk [vmem:[#allocation2 + $0x10] sm:$0xfe] %vm305_vm11, %v300_v40  ;;  %694 = vmatmul.f32.vlgmr.msra.gmra.mxu0 %v2264_v42  ;;  %v312_v43 = vpop.permute.xlu1 %311  ;;  %v2271_v50 = vld [vmem:[#allocation2 + $0x48] sm:$0xff] }
  0xb6   : > { %862 = vmatpush.msra.mxu0 %v670_v39  ;;  %317 = vst.msk [vmem:[#allocation2 + $0x18] sm:$0xff] %vm287_vm7, %v312_v43  ;;  %v425_v39 = vld [vmem:[#allocation7 + $0x148] sm:$0xff] }
  0xb7   : > { %v457_v40 = vld [vmem:[#allocation7 + $0x248] sm:$0xff] }
  0xb8   : > { %863 = vmatpush.msra.mxu0 %v668_v44  ;;  %v529_v43 = vld [vmem:[#allocation7 + $0x488] sm:$0xff]  ;;  %v2305_v44 = vld [vmem:[#allocation2 + $0x78] sm:$0xff] }
  0xba   : > { %864 = vmatpush.msra.mxu0 %v666_v45  ;;  %v2307_v45 = vld [vmem:[#allocation2 + $0x80] sm:$0xff] }
  0xbc   : > { %865 = vmatpush.msra.mxu0 %v664_v46  ;;  %v2269_v49 = vld [vmem:[#allocation2 + $0x10] sm:$0xff]  ;;  %v340_v51 = vpop.permute.xlu0 %339  ;;  %v455_v46 = vld [vmem:[#allocation7 + $0x238] sm:$0xff] }
  0xbd   : > { %740 = vmatmul.f32.vlgmr.msra.gmra.mxu2 %v2269_v49  ;;  %697 = vmatmul.f32.gmra.mxu0 %v2271_v50  ;;  %v324_v53 = vpop.permute.xlu1 %323  ;;  %v2277_v54 = vld [vmem:[#allocation2 + $0x18] sm:$0xff]  ;;  %345 = vst.msk [vmem:[#allocation2 + $0x30] sm:$0xff] %vm287_vm7, %v340_v51 }
  0xbe   : > { %866 = vmatpush.msra.mxu0 %v662_v47  ;;  %908 = vmatpush.msra.mxu2 %v447_v48  ;;  %329 = vst.msk [vmem:[#allocation2 + $0x28] sm:$0xff] %vm307_vm6, %v324_v53  ;;  %v509_v47 = vld [vmem:[#allocation7 + $0x3e8] sm:$0xff]  ;;  %v527_v48 = vld [vmem:[#allocation7 + $0x478] sm:$0xff] }
  0xbf   : > { %763 = vmatmul.f32.vlgmr.msra.gmra.mxu3 %v2277_v54  ;;  %v453_v53 = vld [vmem:[#allocation7 + $0x228] sm:$0xff] }
  0xc0   : > { %931 = vmatpush.msra.mxu3 %v479_v55  ;;  %867 = vmatpush.msra.mxu0 %v660_v56  ;;  %v507_v55 = vld [vmem:[#allocation7 + $0x3d8] sm:$0xff]  ;;  %v525_v56 = vld [vmem:[#allocation7 + $0x468] sm:$0xff] }
  0xc1   : > { %909 = vmatpush.msra.mxu2 %v445_v57  ;;  %v419_v57 = vld [vmem:[#allocation7 + $0x118] sm:$0xff] }
  0xc2   : > { %932 = vmatpush.msra.mxu3 %v477_v58  ;;  %868 = vmatpush.msra.mxu0 %v658_v60  ;;  %v451_v58 = vld [vmem:[#allocation7 + $0x218] sm:$0xff]  ;;  %v505_v60 = vld [vmem:[#allocation7 + $0x3c8] sm:$0xff] }
  0xc3   : > { %910 = vmatpush.msra.mxu2 %v443_v61  ;;  %v523_v61 = vld [vmem:[#allocation7 + $0x458] sm:$0xff] }
  0xc4   : > { %933 = vmatpush.msra.mxu3 %v475_v62  ;;  %869 = vmatpush.msra.mxu0 %v656_v63  ;;  %v358_v9 = vpop.permute.xlu0 %357  ;;  %v2297_v24 = vld [vmem:[#allocation2 + $0x30] sm:$0xff]  ;;  %v417_v62 = vld [vmem:[#allocation7 + $0x108] sm:$0xff] }
  0xc5   : > { %911 = vmatpush.msra.mxu2 %v441_v2  ;;  %v326_v7 = vpop.permute.xlu1 %325  ;;  %v2289_v59 = vld [vmem:[#allocation2 + $0x28] sm:$0xff]  ;;  %786 = vmatmul.f32.vlgmr.msrb.gmra.mxu0 %v2159_v0  ;;  %363 = vst.msk [vmem:[#allocation2 + $0x40] sm:$0xff] %vm307_vm6, %v358_v9  ;;  %v650_v0 = vld [vmem:[#allocation7 + $0x850] sm:$0xff]  ;;  %v519_v9 = vld [vmem:[#allocation7 + $0x438] sm:$0xff] }
  0xc6   : > { %934 = vmatpush.msra.mxu3 %v473_v3  ;;  %743 = vmatmul.f32.gmra.mxu2 %v2285_v6  ;;  %330 = vst.msk [vmem:[#allocation2 + $0x70] sm:$0xff] %vm307_vm6, %v326_v7  ;;  %v449_v63 = vld [vmem:[#allocation7 + $0x208] sm:$0xff]  ;;  %v575_v3 = vld [vmem:[#allocation7 + $0x5f8] sm:$0xff] }
  0xc7   : > { %870 = vmatpush.msra.mxu0 %v654_v4  ;;  %912 = vmatpush.msra.mxu2 %v439_v5  ;;  %v521_v2 = vld [vmem:[#allocation7 + $0x448] sm:$0xff]  ;;  %v607_v4 = vld [vmem:[#allocation7 + $0x6f8] sm:$0xff] }
  0xc8   : > { %766 = vmatmul.f32.gmra.mxu3 %v2287_v8  ;;  %809 = vmatmul.f32.vlgmr.msrb.gmra.mxu1 %v2289_v59  ;;  %v501_v5 = vld [vmem:[#allocation7 + $0x3a8] sm:$0xff] }
  0xc9   : > { %935 = vmatpush.msra.mxu3 %v471_v10  ;;  %977 = vmatpush.msrb.mxu1 %v543_v12  ;;  %v573_v7 = vld [vmem:[#allocation7 + $0x5e8] sm:$0xff] }
  0xca   : > { %871 = vmatpush.msra.mxu0 %v652_v13  ;;  %913 = vmatpush.msra.mxu2 %v437_v14  ;;  %v2316_v10 = vld [vmem:[#allocation2 + $0x88] sm:$0xff]  ;;  %v499_v13 = vld [vmem:[#allocation7 + $0x398] sm:$0xff] }
  0xcb   : > { %936 = vmatpush.msra.mxu3 %v469_v15  ;;  %978 = vmatpush.msrb.mxu1 %v541_v16  ;;  %v605_v12 = vld [vmem:[#allocation7 + $0x6e8] sm:$0xff]  ;;  %v571_v15 = vld [vmem:[#allocation7 + $0x5d8] sm:$0xff] }
  0xcc   : > { %872 = vmatpush.msra.mxu0 %v650_v0  ;;  %914 = vmatpush.msra.mxu2 %v435_v17  ;;  %v2311_v51 = vld [vmem:[#allocation2 + $0x40] sm:$0xff]  ;;  %v517_v14 = vld [vmem:[#allocation7 + $0x428] sm:$0xff]  ;;  %v603_v16 = vld [vmem:[#allocation7 + $0x6d8] sm:$0xff] }
  0xcd   : > { %937 = vmatpush.msra.mxu3 %v467_v18  ;;  %979 = vmatpush.msrb.mxu1 %v539_v19  ;;  %v2299_v27 = vld [vmem:[#allocation2 + $0x70] sm:$0xff]  ;;  %v497_v0 = vld [vmem:[#allocation7 + $0x388] sm:$0xff]  ;;  %v495_v18 = vld [vmem:[#allocation7 + $0x378] sm:$0xff] }
  0xce   : > { %873 = vmatpush.msra.mxu0 %v648_v20  ;;  %915 = vmatpush.msra.mxu2 %v433_v21  ;;  %v569_v17 = vld [vmem:[#allocation7 + $0x5c8] sm:$0xff]  ;;  %v567_v19 = vld [vmem:[#allocation7 + $0x5b8] sm:$0xff] }
  0xcf   : > { %938 = vmatpush.msra.mxu3 %v465_v22  ;;  %980 = vmatpush.msrb.mxu1 %v537_v23  ;;  %v599_v20 = vld [vmem:[#allocation7 + $0x6b8] sm:$0xff]  ;;  %v493_v22 = vld [vmem:[#allocation7 + $0x368] sm:$0xff] }
  0xd0   : > { %832 = vmatmul.f32.vlgmr.msrb.gmra.mxu2 %v2297_v24  ;;  %874 = vmatpush.msra.mxu0 %v646_v25  ;;  %v671_v21 = vld [vmem:[#allocation7 + $0x8f8] sm:$0xff]  ;;  %v565_v23 = vld [vmem:[#allocation7 + $0x5a8] sm:$0xff]  ;;  %v1790_v25 = vld [vmem:[#allocation2 + $0x50] sm:$0xff] }
  0xd1   : > { %916 = vmatpush.msra.mxu2 %v431_v26  ;;  %812 = vmatmul.f32.gmra.mxu1 %v2299_v27  ;;  %v597_v26 = vld [vmem:[#allocation7 + $0x6a8] sm:$0xff] }
  0xd2   : > { %855 = vmatmul.f32.vlgmr.msrb.gmra.mxu3 %v2180_v11  ;;  %981 = vmatpush.msrb.mxu1 %v535_v28  ;;  %v511_v11 = vld [vmem:[#allocation7 + $0x3f8] sm:$0xff]  ;;  %v669_v28 = vld [vmem:[#allocation7 + $0x8e8] sm:$0xff] }
  0xd3   : > { %939 = vmatpush.msra.mxu3 %v463_v29  ;;  %789 = vmatmul.f32.gmra.mxu0 %v2161_v1  ;;  %v423_v1 = vld [vmem:[#allocation7 + $0x138] sm:$0xff] }
  0xd4   : > { %875 = vmatpush.msra.mxu0 %v644_v30  ;;  %917 = vmatpush.msra.mxu2 %v429_v31  ;;  %v491_v29 = vld [vmem:[#allocation7 + $0x358] sm:$0xff] }
  0xd5   : > { %940 = vmatpush.msra.mxu3 %v461_v32  ;;  %982 = vmatpush.msrb.mxu1 %v533_v33  ;;  %v563_v30 = vld [vmem:[#allocation7 + $0x598] sm:$0xff]  ;;  %v489_v33 = vld [vmem:[#allocation7 + $0x348] sm:$0xff] }
  0xd6   : > { %876 = vmatpush.msra.mxu0 %v642_v34  ;;  %918 = vmatpush.msra.mxu2 %v427_v35  ;;  %v595_v31 = vld [vmem:[#allocation7 + $0x698] sm:$0xff]  ;;  %v561_v34 = vld [vmem:[#allocation7 + $0x588] sm:$0xff] }
  0xd7   : > { %941 = vmatpush.msra.mxu3 %v459_v36  ;;  %983 = vmatpush.msrb.mxu1 %v531_v37  ;;  %v667_v32 = vld [vmem:[#allocation7 + $0x8d8] sm:$0xff]  ;;  %v593_v35 = vld [vmem:[#allocation7 + $0x688] sm:$0xff] }
  0xd8   : > { %877 = vmatpush.msra.mxu0 %v640_v38  ;;  %919 = vmatpush.msra.mxu2 %v425_v39  ;;  %v665_v36 = vld [vmem:[#allocation7 + $0x8c8] sm:$0xff]  ;;  %v487_v37 = vld [vmem:[#allocation7 + $0x338] sm:$0xff] }
  0xd9   : > { %942 = vmatpush.msra.mxu3 %v457_v40  ;;  %984 = vmatpush.msrb.mxu1 %v529_v43  ;;  %v559_v38 = vld [vmem:[#allocation7 + $0x578] sm:$0xff]  ;;  %v485_v40 = vld [vmem:[#allocation7 + $0x328] sm:$0xff] }
  0xda   : > { %954 = vmatpush.msrb.mxu0 %v511_v11  ;;  %835 = vmatmul.f32.gmra.mxu2 %v2305_v44  ;;  %v663_v39 = vld [vmem:[#allocation7 + $0x8b8] sm:$0xff]  ;;  %v557_v11 = vld [vmem:[#allocation7 + $0x568] sm:$0xff] }
  0xdb   : > { %920 = vmatpush.msra.mxu2 %v423_v1  ;;  %858 = vmatmul.f32.gmra.mxu3 %v2307_v45  ;;  %v589_v43 = vld [vmem:[#allocation7 + $0x668] sm:$0xff] }
  0xdc   : > { %901 = vmatmul.f32.vlgmr.msra.gmra.mxu1 %v2264_v42  ;;  %943 = vmatpush.msra.mxu3 %v455_v46  ;;  %v503_v42 = vld [vmem:[#allocation7 + $0x3b8] sm:$0xff]  ;;  %v661_v1 = vld [vmem:[#allocation7 + $0x8a8] sm:$0xff] }
  0xdd   : > { %955 = vmatpush.msrb.mxu0 %v509_v47  ;;  %985 = vmatpush.msrb.mxu1 %v527_v48  ;;  %v483_v46 = vld [vmem:[#allocation7 + $0x318] sm:$0xff] }
  0xde   : > { %878 = vmatmul.f32.vlgmr.msra.gmra.mxu0 %v2311_v51  ;;  %921 = vmatpush.msra.mxu2 %v421_v52  ;;  %v555_v47 = vld [vmem:[#allocation7 + $0x558] sm:$0xff] }
  0xdf   : > { %944 = vmatpush.msra.mxu3 %v453_v53  ;;  %956 = vmatpush.msrb.mxu0 %v507_v55  ;;  %v587_v48 = vld [vmem:[#allocation7 + $0x658] sm:$0xff]  ;;  %v481_v53 = vld [vmem:[#allocation7 + $0x308] sm:$0xff] }
  0xe0   : > { %986 = vmatpush.msrb.mxu1 %v525_v56  ;;  %922 = vmatpush.msra.mxu2 %v419_v57  ;;  %v659_v52 = vld [vmem:[#allocation7 + $0x898] sm:$0xff]  ;;  %v553_v55 = vld [vmem:[#allocation7 + $0x548] sm:$0xff] }
  0xe1   : > { %945 = vmatpush.msra.mxu3 %v451_v58  ;;  %957 = vmatpush.msrb.mxu0 %v505_v60  ;;  %v585_v56 = vld [vmem:[#allocation7 + $0x648] sm:$0xff]  ;;  %v639_v57 = vld [vmem:[#allocation7 + $0x7f8] sm:$0xff] }
  0xe2   : > { %987 = vmatpush.msrb.mxu1 %v523_v61  ;;  %923 = vmatpush.msra.mxu2 %v417_v62  ;;  %v657_v58 = vld [vmem:[#allocation7 + $0x888] sm:$0xff]  ;;  %v551_v60 = vld [vmem:[#allocation7 + $0x538] sm:$0xff] }
  0xe3   : > { %946 = vmatpush.msra.mxu3 %v449_v63  ;;  %958 = vmatpush.msrb.mxu0 %v503_v42  ;;  %v583_v61 = vld [vmem:[#allocation7 + $0x638] sm:$0xff]  ;;  %v637_v62 = vld [vmem:[#allocation7 + $0x7e8] sm:$0xff] }
  0xe4   : > { %988 = vmatpush.msrb.mxu1 %v521_v2  ;;  %1000 = vmatpush.msrb.mxu2 %v575_v3  ;;  %v655_v63 = vld [vmem:[#allocation7 + $0x878] sm:$0xff]  ;;  %v549_v42 = vld [vmem:[#allocation7 + $0x528] sm:$0xff]  ;;  %v1791_v2 = vld [vmem:[#allocation2 + $0x20] sm:$0xff] }
  0xe5   : > { %924 = vmatmul.f32.vlgmr.msra.gmra.mxu2 %v2219_v41  ;;  %1023 = vmatpush.msrb.mxu3 %v607_v4  ;;  %v515_v41 = vld [vmem:[#allocation7 + $0x418] sm:$0xff]  ;;  %v581_v3 = vld [vmem:[#allocation7 + $0x628] sm:$0xff] }
  0xe6   : > { %904 = vmatmul.f32.gmra.mxu1 %v2271_v50  ;;  %947 = vmatmul.f32.vlgmr.msra.gmra.mxu3 %v2269_v49  ;;  %v601_v50 = vld [vmem:[#allocation7 + $0x6c8] sm:$0xff]  ;;  %v635_v4 = vld [vmem:[#allocation7 + $0x7d8] sm:$0xff] }
  0xe7   : > { %959 = vmatpush.msrb.mxu0 %v501_v5  ;;  %989 = vmatpush.msrb.mxu1 %v519_v9  ;;  %v513_v49 = vld [vmem:[#allocation7 + $0x408] sm:$0xff]  ;;  %v547_v9 = vld [vmem:[#allocation7 + $0x518] sm:$0xff] }
  0xe8   : > { %1001 = vmatpush.msrb.mxu2 %v573_v7  ;;  %881 = vmatmul.f32.gmra.mxu0 %v2316_v10  ;;  %v653_v5 = vld [vmem:[#allocation7 + $0x868] sm:$0xff]  ;;  %v579_v7 = vld [vmem:[#allocation7 + $0x618] sm:$0xff] }
  0xe9   : > { %1024 = vmatpush.msrb.mxu3 %v605_v12  ;;  %960 = vmatpush.msrb.mxu0 %v499_v13  ;;  %v651_v12 = vld [vmem:[#allocation7 + $0x858] sm:$0xff]  ;;  %v545_v13 = vld [vmem:[#allocation7 + $0x508] sm:$0xff] }
  0xea   : > { %990 = vmatpush.msrb.mxu1 %v517_v14  ;;  %1002 = vmatpush.msrb.mxu2 %v571_v15  ;;  %v577_v14 = vld [vmem:[#allocation7 + $0x608] sm:$0xff]  ;;  %v631_v15 = vld [vmem:[#allocation7 + $0x7b8] sm:$0xff] }
  0xeb   : > { %1025 = vmatpush.msrb.mxu3 %v603_v16  ;;  %961 = vmatpush.msrb.mxu0 %v497_v0  ;;  %v649_v16 = vld [vmem:[#allocation7 + $0x848] sm:$0xff] }
  0xec   : > { %991 = vmatpush.msrb.mxu1 %v515_v41  ;;  %1003 = vmatpush.msrb.mxu2 %v569_v17  ;;  %v629_v0 = vld [vmem:[#allocation7 + $0x7a8] sm:$0xff]  ;;  %v647_v41 = vld [vmem:[#allocation7 + $0x838] sm:$0xff] }
  0xed   : > { %1026 = vmatpush.msrb.mxu3 %v601_v50  ;;  %962 = vmatpush.msrb.mxu0 %v495_v18  ;;  %v627_v17 = vld [vmem:[#allocation7 + $0x798] sm:$0xff]  ;;  %v1792_v50 = vld [vmem:[#allocation2 + $0x68] sm:$0xff] }
  0xee   : > { %992 = vmatpush.msrb.mxu1 %v513_v49  ;;  %1004 = vmatpush.msrb.mxu2 %v567_v19  ;;  %v645_v18 = vld [vmem:[#allocation7 + $0x828] sm:$0xff]  ;;  %v643_v19 = vld [vmem:[#allocation7 + $0x818] sm:$0xff] }
  0xef   : > { %927 = vmatmul.f32.gmra.mxu2 %v1790_v25  ;;  %1027 = vmatpush.msrb.mxu3 %v599_v20  ;;  %v625_v49 = vld [vmem:[#allocation7 + $0x788] sm:$0xff]  ;;  %v611_v25 = vld [vmem:[#allocation7 + $0x718] sm:$0xff] }
  0xf0   : > { %1069 = vmatpush.msra.mxu1 %v671_v21  ;;  %950 = vmatmul.f32.gmra.mxu3 %v2285_v6  ;;  %v591_v6 = vld [vmem:[#allocation7 + $0x678] sm:$0xff]  ;;  %v621_v20 = vld [vmem:[#allocation7 + $0x768] sm:$0xff] }
  0xf1   : > { %963 = vmatpush.msrb.mxu0 %v493_v22  ;;  %1005 = vmatpush.msrb.mxu2 %v565_v23  ;;  %v617_v21 = vld [vmem:[#allocation7 + $0x748] sm:$0xff]  ;;  %v615_v22 = vld [vmem:[#allocation7 + $0x738] sm:$0xff] }
  0xf2   : > { %1028 = vmatpush.msrb.mxu3 %v597_v26  ;;  %1070 = vmatpush.msra.mxu1 %v669_v28  ;;  %v613_v23 = vld [vmem:[#allocation7 + $0x728] sm:$0xff]  ;;  %v1793_v26 = vld [vmem:[#allocation2 + $0x38] sm:$0xff] }
  0xf3   : > { %964 = vmatpush.msrb.mxu0 %v491_v29  ;;  %1006 = vmatpush.msrb.mxu2 %v563_v30  ;;  %v1226_v28 = vld [vmem:[#allocation10 + $0xf0] sm:$0xff]  ;;  %v1224_v29 = vld [vmem:[#allocation10 + $0xe0] sm:$0xff]  ;;  %v1223_v30 = vld [vmem:[#allocation10 + $0xd8] sm:$0xff] }
  0xf4   : > { %1029 = vmatpush.msrb.mxu3 %v595_v31  ;;  %1071 = vmatpush.msra.mxu1 %v667_v32  ;;  %v1222_v31 = vld [vmem:[#allocation10 + $0xd0] sm:$0xff] }
  0xf5   : > { %965 = vmatpush.msrb.mxu0 %v489_v33  ;;  %1007 = vmatpush.msrb.mxu2 %v561_v34  ;;  %v1220_v33 = vld [vmem:[#allocation10 + $0xc0] sm:$0xff]  ;;  %v2331_v34 = vld [vmem:[#allocation9] sm:$0x3] }
  0xf6   : > { %1030 = vmatpush.msrb.mxu3 %v593_v35  ;;  %1072 = vmatpush.msra.mxu1 %v665_v36  ;;  %v674_v35 = vperm.slane %v2331_v34, 0  ;;  %v718_v36 = vpop.f32.mrf.mxu1 }
  0xf7   : > { %966 = vmatpush.msrb.mxu0 %v487_v37  ;;  %1008 = vmatpush.msrb.mxu2 %v559_v38 }
  0xf8   : > { %1031 = vmatpush.msrb.mxu3 %v591_v6  ;;  %1073 = vmatpush.msra.mxu1 %v663_v39  ;;  %v1219_v6 = vld [vmem:[#allocation10 + $0xb8] sm:$0xff]  ;;  %v1218_v39 = vld [vmem:[#allocation10 + $0xb0] sm:$0xff] }
  0xf9   : > { %967 = vmatpush.msrb.mxu0 %v485_v40  ;;  %1009 = vmatpush.msrb.mxu2 %v557_v11  ;;  %v1217_v11 = vld [vmem:[#allocation10 + $0xa8] sm:$0xff] }
  0xfa   : > { %1032 = vmatpush.msrb.mxu3 %v589_v43  ;;  %1074 = vmatpush.msra.mxu1 %v661_v1  ;;  %v1216_v1 = vld [vmem:[#allocation10 + $0xa0] sm:$0xff] }
  0xfb   : > { %968 = vmatpush.msrb.mxu0 %v483_v46  ;;  %1010 = vmatpush.msrb.mxu2 %v555_v47 }
  0xfc   : > { %1033 = vmatpush.msrb.mxu3 %v587_v48  ;;  %1075 = vmatpush.msra.mxu1 %v659_v52 }
  0xfd   : > { %969 = vmatpush.msrb.mxu0 %v481_v53  ;;  %1011 = vmatpush.msrb.mxu2 %v553_v55  ;;  %v1215_v53 = vld [vmem:[#allocation10 + $0x98] sm:$0xff] }
  0xfe   : > { %970 = vmatmul.f32.vlgmr.msrb.gmra.mxu0 %v2277_v54  ;;  %1034 = vmatpush.msrb.mxu3 %v585_v56  ;;  %v633_v54 = vld [vmem:[#allocation7 + $0x7c8] sm:$0xff]  ;;  %v721_v47 = vpop.f32.mrf.mxu1 }
  0xff   : > { %1046 = vmatpush.msra.mxu0 %v639_v57  ;;  %1076 = vmatpush.msra.mxu1 %v657_v58  ;;  %v1214_v57 = vld [vmem:[#allocation10 + $0x90] sm:$0xff] }
 0x100   : > { %993 = vmatmul.f32.vlgmr.msrb.gmra.mxu1 %v1791_v2  ;;  %1012 = vmatpush.msrb.mxu2 %v551_v60  ;;  %v1213_v60 = vld [vmem:[#allocation10 + $0x88] sm:$0xff] }
 0x101   : > { %1035 = vmatpush.msrb.mxu3 %v583_v61  ;;  %1047 = vmatpush.msra.mxu0 %v637_v62  ;;  %v1212_v61 = vld [vmem:[#allocation10 + $0x80] sm:$0xff] }
 0x102   : > { %1077 = vmatpush.msra.mxu1 %v655_v63  ;;  %1013 = vmatpush.msrb.mxu2 %v549_v42 }
 0x103   : > { %1036 = vmatpush.msrb.mxu3 %v581_v3  ;;  %1048 = vmatpush.msra.mxu0 %v635_v4 }
 0x104   : > { %1078 = vmatpush.msra.mxu1 %v653_v5  ;;  %1014 = vmatpush.msrb.mxu2 %v547_v9 }
 0x105   : > { %1037 = vmatpush.msrb.mxu3 %v579_v7  ;;  %1049 = vmatpush.msra.mxu0 %v633_v54 }
 0x106   : > { %1079 = vmatpush.msra.mxu1 %v651_v12  ;;  %1015 = vmatpush.msrb.mxu2 %v545_v13 }
 0x107   : > { %973 = vmatmul.f32.gmra.mxu0 %v2287_v8  ;;  %1016 = vmatmul.f32.vlgmr.msrb.gmra.mxu2 %v2289_v59  ;;  %v623_v8 = vld [vmem:[#allocation7 + $0x778] sm:$0xff]  ;;  %v641_v59 = vld [vmem:[#allocation7 + $0x808] sm:$0xff] }
 0x108   : > { %1038 = vmatpush.msrb.mxu3 %v577_v14  ;;  %1050 = vmatpush.msra.mxu0 %v631_v15 }
 0x109   : > { %1080 = vmatpush.msra.mxu1 %v649_v16  ;;  %1039 = vmatmul.f32.vlgmr.msrb.gmra.mxu3 %v2297_v24  ;;  %v619_v24 = vld [vmem:[#allocation7 + $0x758] sm:$0xff] }
 0x10a   : > { %996 = vmatmul.f32.gmra.mxu1 %v1792_v50  ;;  %1051 = vmatpush.msra.mxu0 %v629_v0 }
 0x10b   : > { %1081 = vmatpush.msra.mxu1 %v647_v41 }
 0x10c   : > { %1052 = vmatpush.msra.mxu0 %v627_v17 }
 0x10d   : > { %1082 = vmatpush.msra.mxu1 %v645_v18 }
 0x10e   : > { %1053 = vmatpush.msra.mxu0 %v625_v49 }
 0x10f   : > { %1083 = vmatpush.msra.mxu1 %v643_v19  ;;  %1019 = vmatmul.f32.gmra.mxu2 %v2299_v27  ;;  %v609_v27 = vld [vmem:[#allocation7 + $0x708] sm:$0xff] }
 0x110   : > { %1054 = vmatpush.msra.mxu0 %v623_v8 }
 0x111   : > { %1084 = vmatpush.msra.mxu1 %v641_v59  ;;  %1042 = vmatmul.f32.gmra.mxu3 %v2305_v44  ;;  %v1227_v44 = vld [vmem:[#allocation10 + $0xf8] sm:$0xff] }
 0x112   : > { %1085 = vmatmul.f32.vlgmr.msra.gmra.mxu1 %v2311_v51  ;;  %1055 = vmatpush.msra.mxu0 %v621_v20  ;;  %v1225_v51 = vld [vmem:[#allocation10 + $0xe8] sm:$0xff] }
 0x113   : > { %1363 = vmatpush.msra.mxu3 %v1227_v44  ;;  %v1258_v44 = vld [vmem:[#allocation10 + $0x1f0] sm:$0xff] }
 0x114   : > { %1056 = vmatpush.msra.mxu0 %v619_v24 }
 0x115   : > { %1364 = vmatpush.msra.mxu3 %v1226_v28  ;;  %v1257_v28 = vld [vmem:[#allocation10 + $0x1e8] sm:$0xff] }
 0x116   : > { %1057 = vmatpush.msra.mxu0 %v617_v21 }
 0x117   : > { %1365 = vmatpush.msra.mxu3 %v1225_v51  ;;  %v1256_v51 = vld [vmem:[#allocation10 + $0x1e0] sm:$0xff] }
 0x118   : > { %1058 = vmatpush.msra.mxu0 %v615_v22 }
 0x119   : > { %1366 = vmatpush.msra.mxu3 %v1224_v29  ;;  %v1255_v29 = vld [vmem:[#allocation10 + $0x1d8] sm:$0xff] }
 0x11a   : > { %1088 = vmatmul.f32.gmra.mxu1 %v2316_v10  ;;  %1059 = vmatpush.msra.mxu0 %v613_v23  ;;  %v1221_v10 = vld [vmem:[#allocation10 + $0xc8] sm:$0xff] }
 0x11b   : > { %1367 = vmatpush.msra.mxu3 %v1223_v30  ;;  %v1254_v30 = vld [vmem:[#allocation10 + $0x1d0] sm:$0xff] }
 0x11c   : > { %1060 = vmatpush.msra.mxu0 %v611_v25 }
 0x11d   : > { %1368 = vmatpush.msra.mxu3 %v1222_v31  ;;  %v1211_v31 = vld [vmem:[#allocation10 + $0x78] sm:$0xff] }
 0x11e   : > { %1061 = vmatpush.msra.mxu0 %v609_v27  ;;  %1340 = vmatpush.msra.mxu2 %v1211_v31  ;;  %v1281_v31 = vld [vmem:[#allocation10 + $0x2a8] sm:$0xff] }
 0x11f   : > { %1062 = vmatmul.f32.vlgmr.msra.gmra.mxu0 %v1793_v26  ;;  %1369 = vmatpush.msra.mxu3 %v1221_v10  ;;  %v1259_v26 = vld [vmem:[#allocation10 + $0x1f8] sm:$0xff]  ;;  %v1253_v10 = vld [vmem:[#allocation10 + $0x1c8] sm:$0xff] }
 0x120   : > { %1409 = vmatpush.msrb.mxu1 %v1259_v26  ;;  %v1238_v26 = vld [vmem:[#allocation10 + $0x150] sm:$0xff] }
 0x121   : > { %1370 = vmatpush.msra.mxu3 %v1220_v33  ;;  %v1252_v33 = vld [vmem:[#allocation10 + $0x1c0] sm:$0xff] }
 0x122   : > { %1410 = vmatpush.msrb.mxu1 %v1258_v44  ;;  %v1314_v44 = vld [vmem:[#allocation10 + $0x3b0] sm:$0xff] }
 0x123   : > { %1371 = vmatpush.msra.mxu3 %v1219_v6  ;;  %v1249_v6 = vld [vmem:[#allocation10 + $0x1a8] sm:$0xff] }
 0x124   : > { %1411 = vmatpush.msrb.mxu1 %v1257_v28  ;;  %v1271_v28 = vld [vmem:[#allocation10 + $0x258] sm:$0xff] }
 0x125   : > { %1372 = vmatpush.msra.mxu3 %v1218_v39  ;;  %v1206_v39 = vld [vmem:[#allocation10 + $0x50] sm:$0xff] }
 0x126   : > { %1412 = vmatpush.msrb.mxu1 %v1256_v51  ;;  %v1313_v51 = vld [vmem:[#allocation10 + $0x3a8] sm:$0xff] }
 0x127   : > { %1065 = vmatmul.f32.gmra.mxu0 %v2307_v45  ;;  %1373 = vmatpush.msra.mxu3 %v1217_v11  ;;  %v1290_v11 = vld [vmem:[#allocation10 + $0x2f0] sm:$0xff] }
 0x128   : > { %1413 = vmatpush.msrb.mxu1 %v1255_v29  ;;  %v1270_v29 = vld [vmem:[#allocation10 + $0x250] sm:$0xff] }
 0x129   : > { %1374 = vmatpush.msra.mxu3 %v1216_v1  ;;  %v1205_v1 = vld [vmem:[#allocation10 + $0x48] sm:$0xff] }
 0x12a   : > { %1414 = vmatpush.msrb.mxu1 %v1254_v30  ;;  %v1312_v30 = vld [vmem:[#allocation10 + $0x3a0] sm:$0xff] }
 0x12b   : > { %1375 = vmatpush.msra.mxu3 %v1215_v53  ;;  %v1245_v53 = vld [vmem:[#allocation10 + $0x188] sm:$0xff] }
 0x12c   : > { %1415 = vmatpush.msrb.mxu1 %v1253_v10  ;;  %v1237_v10 = vld [vmem:[#allocation10 + $0x148] sm:$0xff] }
 0x12d   : > { %1376 = vmatpush.msra.mxu3 %v1214_v57  ;;  %v1201_v57 = vld [vmem:[#allocation10 + $0x28] sm:$0xff] }
 0x12e   : > { %1416 = vmatpush.msrb.mxu1 %v1252_v33  ;;  %v1280_v33 = vld [vmem:[#allocation10 + $0x2a0] sm:$0xff] }
 0x12f   : > { %1377 = vmatpush.msra.mxu3 %v1213_v60  ;;  %v1200_v60 = vld [vmem:[#allocation10 + $0x20] sm:$0xff] }
 0x131   : > { %1378 = vmatpush.msra.mxu3 %v1212_v61  ;;  %v1322_v61 = vld [vmem:[#allocation10 + $0x3f0] sm:$0xff] }
 0x132   : > { %v695_v32 = vpop.f32.mrf.mxu0 }
 0x133   : > { %v696_v37 = vadd.f32 %v695_v32, %v674_v35  ;;  %v1210_v32 = vld [vmem:[#allocation10 + $0x70] sm:$0xff] }
 0x134   : > { %1341 = vmatpush.msra.mxu2 %v1210_v32  ;;  %v1269_v32 = vld [vmem:[#allocation10 + $0x248] sm:$0xff] }
 0x135   : > { %v719_v43 = vadd.f32 %v718_v36, %v696_v37  ;;  %v1251_v36 = vld [vmem:[#allocation10 + $0x1b8] sm:$0xff]  ;;  %v1250_v37 = vld [vmem:[#allocation10 + $0x1b0] sm:$0xff] }
 0x136   : > { %1417 = vmatpush.msrb.mxu1 %v1251_v36  ;;  %v1279_v36 = vld [vmem:[#allocation10 + $0x298] sm:$0xff] }
 0x138   : > { %1418 = vmatpush.msrb.mxu1 %v1250_v37  ;;  %v1268_v37 = vld [vmem:[#allocation10 + $0x240] sm:$0xff] }
 0x13a   : > { %v698_v45 = vpop.f32.mrf.mxu0  ;;  %1419 = vmatpush.msrb.mxu1 %v1249_v6  ;;  %v1278_v6 = vld [vmem:[#allocation10 + $0x290] sm:$0xff] }
 0x13b   : > { %v699_v55 = vadd.f32 %v698_v45, %v674_v35  ;;  %v1209_v35 = vld [vmem:[#allocation10 + $0x68] sm:$0xff]  ;;  %v1208_v45 = vld [vmem:[#allocation10 + $0x60] sm:$0xff] }
 0x13c   : > { %1342 = vmatpush.msra.mxu2 %v1209_v35  ;;  %v1236_v35 = vld [vmem:[#allocation10 + $0x140] sm:$0xff] }
 0x13d   : > { %v722_v62 = vadd.f32 %v721_v47, %v699_v55  ;;  %v1204_v47 = vld [vmem:[#allocation10 + $0x40] sm:$0xff]  ;;  %v1202_v55 = vld [vmem:[#allocation10 + $0x30] sm:$0xff] }
 0x13e   : > { %1343 = vmatpush.msra.mxu2 %v1208_v45  ;;  %v1311_v45 = vld [vmem:[#allocation10 + $0x398] sm:$0xff] }
 0x140   : > { %v741_v38 = vpop.f32.mrf.mxu2 }
 0x141   : > { %v742_v46 = vadd.f32 %v741_v38, %v719_v43  ;;  %v1207_v38 = vld [vmem:[#allocation10 + $0x58] sm:$0xff]  ;;  %v1248_v43 = vld [vmem:[#allocation10 + $0x1a0] sm:$0xff] }
 0x142   : > { %v764_v40 = vpop.f32.mrf.mxu3  ;;  %v787_v48 = vpop.f32.mrf.mxu0  ;;  %1344 = vmatpush.msra.mxu2 %v1207_v38  ;;  %1420 = vmatpush.msrb.mxu1 %v1248_v43  ;;  %v1235_v38 = vld [vmem:[#allocation10 + $0x138] sm:$0xff]  ;;  %v1309_v43 = vld [vmem:[#allocation10 + $0x388] sm:$0xff] }
 0x143   : > { %v765_v56 = vadd.f32 %v764_v40, %v742_v46  ;;  %v1291_v40 = vld [vmem:[#allocation10 + $0x2f8] sm:$0xff] }
 0x144   : > { %1455 = vmatpush.msrb.mxu3 %v1291_v40  ;;  %1345 = vmatpush.msra.mxu2 %v1206_v39  ;;  %v1247_v46 = vld [vmem:[#allocation10 + $0x198] sm:$0xff]  ;;  %v1234_v39 = vld [vmem:[#allocation10 + $0x130] sm:$0xff] }
 0x145   : > { %v788_v63 = vadd.f32 %v787_v48, %v765_v56  ;;  %v810_v2 = vpop.f32.mrf.mxu1  ;;  %v1246_v48 = vld [vmem:[#allocation10 + $0x190] sm:$0xff]  ;;  %1421 = vmatpush.msrb.mxu1 %v1247_v46  ;;  %v1244_v56 = vld [vmem:[#allocation10 + $0x180] sm:$0xff] }
 0x146   : > { %1456 = vmatpush.msrb.mxu3 %v1290_v11  ;;  %1346 = vmatpush.msra.mxu2 %v1205_v1  ;;  %v1310_v40 = vld [vmem:[#allocation10 + $0x390] sm:$0xff]  ;;  %v1267_v11 = vld [vmem:[#allocation10 + $0x238] sm:$0xff]  ;;  %v1308_v46 = vld [vmem:[#allocation10 + $0x380] sm:$0xff] }
 0x147   : > { %v811_v4 = vadd.f32 %v810_v2, %v788_v63  ;;  %1422 = vmatpush.msrb.mxu1 %v1246_v48  ;;  %v1289_v63 = vld [vmem:[#allocation10 + $0x2e8] sm:$0xff]  ;;  %v1288_v2 = vld [vmem:[#allocation10 + $0x2e0] sm:$0xff]  ;;  %v1266_v1 = vld [vmem:[#allocation10 + $0x230] sm:$0xff] }
 0x148   : > { %1347 = vmatpush.msra.mxu2 %v1204_v47  ;;  %1457 = vmatpush.msrb.mxu3 %v1289_v63  ;;  %v1277_v47 = vld [vmem:[#allocation10 + $0x288] sm:$0xff]  ;;  %v1263_v63 = vld [vmem:[#allocation10 + $0x218] sm:$0xff] }
 0x149   : > { %v744_v52 = vpop.f32.mrf.mxu2  ;;  %1423 = vmatpush.msrb.mxu1 %v1245_v53  ;;  %v1233_v48 = vld [vmem:[#allocation10 + $0x128] sm:$0xff]  ;;  %v1276_v53 = vld [vmem:[#allocation10 + $0x280] sm:$0xff] }
 0x14a   : > { %v745_v42 = vadd.f32 %v744_v52, %v722_v62  ;;  %v1203_v52 = vld [vmem:[#allocation10 + $0x38] sm:$0xff]  ;;  %1458 = vmatpush.msrb.mxu3 %v1288_v2  ;;  %v1262_v2 = vld [vmem:[#allocation10 + $0x210] sm:$0xff] }
 0x14b   : > { %v767_v58 = vpop.f32.mrf.mxu3  ;;  %1348 = vmatpush.msra.mxu2 %v1203_v52  ;;  %1424 = vmatpush.msrb.mxu1 %v1244_v56  ;;  %v1199_v62 = vld [vmem:[#allocation10 + $0x18] sm:$0xff]  ;;  %v1265_v52 = vld [vmem:[#allocation10 + $0x228] sm:$0xff] }
 0x14c   : > { %v768_v9 = vadd.f32 %v767_v58, %v745_v42  ;;  %v1323_v58 = vld [vmem:[#allocation10 + $0x3f8] sm:$0xff]  ;;  %v1321_v42 = vld [vmem:[#allocation10 + $0x3e8] sm:$0xff] }
 0x14d   : > { %1349 = vmatpush.msra.mxu2 %v1202_v55  ;;  %1501 = vmatpush.msra.mxu1 %v1323_v58  ;;  %v1232_v55 = vld [vmem:[#allocation10 + $0x120] sm:$0xff]  ;;  %v1307_v56 = vld [vmem:[#allocation10 + $0x378] sm:$0xff] }
 0x14e   : > { %v813_v14 = vpop.f32.mrf.mxu1  ;;  %v1264_v58 = vld [vmem:[#allocation10 + $0x220] sm:$0xff] }
 0x14f   : > { %1350 = vmatpush.msra.mxu2 %v1201_v57  ;;  %1502 = vmatpush.msra.mxu1 %v1322_v61  ;;  %v1231_v57 = vld [vmem:[#allocation10 + $0x118] sm:$0xff]  ;;  %v1230_v61 = vld [vmem:[#allocation10 + $0x110] sm:$0xff] }
 0x150   : > { %v790_v3 = vpop.f32.mrf.mxu0 }
 0x151   : > { %v791_v12 = vadd.f32 %v790_v3, %v768_v9  ;;  %1351 = vmatpush.msra.mxu2 %v1200_v60  ;;  %v1198_v3 = vld [vmem:[#allocation10 + $0x10] sm:$0xff]  ;;  %v1320_v9 = vld [vmem:[#allocation10 + $0x3e0] sm:$0xff]  ;;  %1503 = vmatpush.msra.mxu1 %v1321_v42  ;;  %v1305_v42 = vld [vmem:[#allocation10 + $0x368] sm:$0xff] }
 0x152   : > { %v1306_v60 = vld [vmem:[#allocation10 + $0x370] sm:$0xff] }
 0x153   : > { %v833_v5 = vpop.f32.mrf.mxu2  ;;  %v814_v0 = vadd.f32 %v813_v14, %v791_v12  ;;  %1352 = vmatpush.msra.mxu2 %v1199_v62  ;;  %v1242_v12 = vld [vmem:[#allocation10 + $0x170] sm:$0xff]  ;;  %1504 = vmatpush.msra.mxu1 %v1320_v9  ;;  %v1196_v14 = vld [vmem:[#allocation10] sm:$0xff] }
 0x154   : > { %v834_v7 = vadd.f32 %v833_v5, %v811_v4  ;;  %v1287_v4 = vld [vmem:[#allocation10 + $0x2d8] sm:$0xff]  ;;  %v1228_v9 = vld [vmem:[#allocation10 + $0x100] sm:$0xff] }
 0x155   : > { %v856_v54 = vpop.f32.mrf.mxu3  ;;  %v1243_v5 = vld [vmem:[#allocation10 + $0x178] sm:$0xff]  ;;  %1353 = vmatpush.msra.mxu2 %v1198_v3  ;;  %1459 = vmatpush.msrb.mxu3 %v1287_v4  ;;  %v1229_v3 = vld [vmem:[#allocation10 + $0x108] sm:$0xff]  ;;  %v1304_v4 = vld [vmem:[#allocation10 + $0x360] sm:$0xff] }
 0x156   : > { %v857_v13 = vadd.f32 %v856_v54, %v834_v7  ;;  %v1197_v7 = vld [vmem:[#allocation10 + $0x8] sm:$0xff]  ;;  %1386 = vmatpush.msrb.mxu0 %v1243_v5  ;;  %v1286_v54 = vld [vmem:[#allocation10 + $0x2d0] sm:$0xff] }
 0x157   : > { %1354 = vmatpush.msra.mxu2 %v1197_v7  ;;  %1460 = vmatpush.msrb.mxu3 %v1286_v54  ;;  %v1261_v5 = vld [vmem:[#allocation10 + $0x208] sm:$0xff]  ;;  %v1260_v7 = vld [vmem:[#allocation10 + $0x200] sm:$0xff]  ;;  %v1303_v54 = vld [vmem:[#allocation10 + $0x358] sm:$0xff] }
 0x158   : > { %1387 = vmatpush.msrb.mxu0 %v1242_v12  ;;  %v1302_v12 = vld [vmem:[#allocation10 + $0x350] sm:$0xff] }
 0x159   : > { %1355 = vmatpush.msra.mxu2 %v1196_v14  ;;  %v1301_v14 = vld [vmem:[#allocation10 + $0x348] sm:$0xff] }
 0x15b   : > { %v879_v15 = vpop.f32.mrf.mxu0 }
 0x15c   : > { %v880_v16 = vadd.f32 %v879_v15, %v857_v13  ;;  %v1319_v13 = vld [vmem:[#allocation10 + $0x3d8] sm:$0xff]  ;;  %v1318_v15 = vld [vmem:[#allocation10 + $0x3d0] sm:$0xff] }
 0x15d   : > { %v836_v41 = vpop.f32.mrf.mxu2  ;;  %1505 = vmatpush.msra.mxu1 %v1319_v13 }
 0x15e   : > { %v2334_v17 = vmax.f32 %v880_v16, 0.0  ;;  %v837_v50 = vadd.f32 %v836_v41, %v814_v0  ;;  %v859_v18 = vpop.f32.mrf.mxu3  ;;  %v1275_v16 = vld [vmem:[#allocation10 + $0x278] sm:$0xff]  ;;  %v1317_v0 = vld [vmem:[#allocation10 + $0x3c8] sm:$0xff]  ;;  %v1274_v41 = vld [vmem:[#allocation10 + $0x270] sm:$0xff] }
 0x15f   : > { %1506 = vmatpush.msra.mxu1 %v1318_v15  ;;  %1432 = vmatpush.msrb.mxu2 %v1275_v16  ;;  %v1300_v16 = vld [vmem:[#allocation10 + $0x340] sm:$0xff] }
 0x160   : > { %1128 = vrot.lane.b32.xlu2 %v2334_v17, %s1997_s21  ;;  %v1099_v49 = vrot.slane %v2334_v17, 7  ;;  %v860_v19 = vadd.f32 %v859_v18, %v837_v50  ;;  %v1151_v22 = vrot.slane %v2334_v17, 1  ;;  %v1316_v50 = vld [vmem:[#allocation10 + $0x3c0] sm:$0xff]  ;;  %v1285_v18 = vld [vmem:[#allocation10 + $0x2c8] sm:$0xff] }
 0x161   : > { %1461 = vmatpush.msrb.mxu3 %v1285_v18  ;;  %1507 = vmatpush.msra.mxu1 %v1317_v0  ;;  %v1299_v0 = vld [vmem:[#allocation10 + $0x338] sm:$0xff] }
 0x162   : > { %1102 = vrot.lane.b32.xlu0 %v1099_v49, %s1997_s21  ;;  %1113 = vst [vmem:[#allocation3 + $0x8] sm:$0xfe] %v1099_v49  ;;  %1433 = vmatpush.msrb.mxu2 %v1274_v41  ;;  %v1298_v41 = vld [vmem:[#allocation10 + $0x330] sm:$0xff] }
 0x163   : > { %1508 = vmatpush.msra.mxu1 %v1316_v50  ;;  %v1297_v50 = vld [vmem:[#allocation10 + $0x328] sm:$0xff] }
 0x165   : > { %v882_v8 = vpop.f32.mrf.mxu0 }
 0x166   : > { %v883_v59 = vadd.f32 %v882_v8, %v860_v19  ;;  %v1273_v19 = vld [vmem:[#allocation10 + $0x268] sm:$0xff]  ;;  %v1284_v8 = vld [vmem:[#allocation10 + $0x2c0] sm:$0xff] }
 0x167   : > { %1462 = vmatpush.msrb.mxu3 %v1284_v8  ;;  %1434 = vmatpush.msrb.mxu2 %v1273_v19  ;;  %v1296_v19 = vld [vmem:[#allocation10 + $0x320] sm:$0xff]  ;;  %v1295_v8 = vld [vmem:[#allocation10 + $0x318] sm:$0xff] }
 0x168   : > { %v2340_v20 = vmax.f32 %v883_v59, 0.0  ;;  %v1240_v59 = vld [vmem:[#allocation10 + $0x160] sm:$0xff] }
 0x169   : > { %v1179_v24 = vld [vmem:[#allocation3 + $0x8] sm:$0xff] }
 0x16a   : > { %1130 = vrot.lane.b32.xlu2 %v2340_v20, %s1997_s21  ;;  %1140 = vrot.lane.b32.xlu0 %v2334_v17, %s1998_s26  ;;  %v1100_v21 = vrot.slane %v2340_v20, 7  ;;  %v1152_v23 = vrot.slane %v2340_v20, 1 }
 0x16b   : > { %1379 = vmatmul.f32.vlgmr.msra.gmra.mxu3 %v1179_v24  ;;  %v1283_v24 = vld [vmem:[#allocation10 + $0x2b8] sm:$0xff] }
 0x16c   : > { %v1101_v25 = vsel %vm275_vm0, %v1099_v49, %v1100_v21  ;;  %v2351_v27 = vsel %vm335_vm1, %v1151_v22, %v1152_v23  ;;  %1166 = vst [vmem:[#allocation3 + $0x80] sm:$0x7f] %v1152_v23  ;;  %v1315_v21 = vld [vmem:[#allocation10 + $0x3b8] sm:$0xff]  ;;  %v1272_v22 = vld [vmem:[#allocation10 + $0x260] sm:$0xff]  ;;  %1463 = vmatpush.msrb.mxu3 %v1283_v24  ;;  %v1293_v24 = vld [vmem:[#allocation10 + $0x308] sm:$0xff] }
 0x16d   : > { %1104 = vrot.lane.b32.xlu1 %v1101_v25, %s1997_s21  ;;  %1509 = vmatpush.msra.mxu1 %v1315_v21 }
 0x16e   : > { %1435 = vmatpush.msrb.mxu2 %v1272_v22 }
 0x16f   : > { %1510 = vmatpush.msra.mxu1 %v1314_v44  ;;  %v1339_v44 = vld [vmem:[#allocation10 + $0x478] sm:$0xff] }
 0x170   : > { %1436 = vmatpush.msrb.mxu2 %v1271_v28 }
 0x171   : > { %1511 = vmatpush.msra.mxu1 %v1313_v51  ;;  %v1338_v51 = vld [vmem:[#allocation10 + $0x470] sm:$0xff] }
 0x172   : > { %1120 = vrot.lane.b32.xlu2 %v1101_v25, %s1998_s26  ;;  %1142 = vrot.lane.b32.xlu0 %v2340_v20, %s1998_s26 }
 0x173   : > { %1382 = vmatmul.f32.gmra.mxu3 %v1101_v25  ;;  %v1282_v25 = vld [vmem:[#allocation10 + $0x2b0] sm:$0xff]  ;;  %1437 = vmatpush.msrb.mxu2 %v1270_v29  ;;  %v1337_v29 = vld [vmem:[#allocation10 + $0x468] sm:$0xff] }
 0x174   : > { %1464 = vmatpush.msrb.mxu3 %v1282_v25  ;;  %1512 = vmatpush.msra.mxu1 %v1312_v30  ;;  %v1194_v25 = vld [vmem:[#allocation3 + $0x80] sm:$0xff]  ;;  %v1336_v30 = vld [vmem:[#allocation10 + $0x460] sm:$0xff] }
 0x175   : > { %1118 = vrot.lane.b32.xlu1 %v1099_v49, %s1998_s26  ;;  %v1241_v49 = vld [vmem:[#allocation10 + $0x168] sm:$0xff]  ;;  %1438 = vmatpush.msrb.mxu2 %v1269_v32  ;;  %v1335_v32 = vld [vmem:[#allocation10 + $0x458] sm:$0xff] }
 0x176   : > { %1388 = vmatpush.msrb.mxu0 %v1241_v49  ;;  %1465 = vmatpush.msrb.mxu3 %v1281_v31 }
 0x177   : > { %1513 = vmatpush.msra.mxu1 %v1311_v45  ;;  %1439 = vmatpush.msrb.mxu2 %v1268_v37  ;;  %v1333_v45 = vld [vmem:[#allocation10 + $0x448] sm:$0xff]  ;;  %v1332_v37 = vld [vmem:[#allocation10 + $0x440] sm:$0xff] }
 0x178   : > { %1389 = vmatpush.msrb.mxu0 %v1240_v59  ;;  %1466 = vmatpush.msrb.mxu3 %v1280_v33  ;;  %v1294_v59 = vld [vmem:[#allocation10 + $0x310] sm:$0xff] }
 0x179   : > { %1514 = vmatpush.msra.mxu1 %v1310_v40  ;;  %1440 = vmatpush.msrb.mxu2 %v1267_v11  ;;  %v1334_v33 = vld [vmem:[#allocation10 + $0x450] sm:$0xff] }
 0x17a   : > { %1154 = vrot.lane.b32.xlu2 %v2351_v27, %s1997_s21  ;;  %1156 = vrot.lane.b32.xlu0 %v1152_v23, %s1997_s21  ;;  %v1330_v40 = vld [vmem:[#allocation10 + $0x430] sm:$0xff] }
 0x17b   : > { %1467 = vmatpush.msrb.mxu3 %v1279_v36  ;;  %1515 = vmatpush.msra.mxu1 %v1309_v43 }
 0x17c   : > { %1441 = vmatpush.msrb.mxu2 %v1266_v1  ;;  %v1329_v1 = vld [vmem:[#allocation10 + $0x428] sm:$0xff] }
 0x17d   : > { %1170 = vrot.lane.b32.xlu1 %v2351_v27, %s1998_s26  ;;  %1468 = vmatpush.msrb.mxu3 %v1278_v6 }
 0x17e   : > { %1516 = vmatpush.msra.mxu1 %v1308_v46  ;;  %1442 = vmatpush.msrb.mxu2 %v1265_v52  ;;  %v1328_v46 = vld [vmem:[#allocation10 + $0x420] sm:$0xff]  ;;  %v1326_v52 = vld [vmem:[#allocation10 + $0x410] sm:$0xff] }
 0x17f   : > { %1469 = vmatpush.msrb.mxu3 %v1277_v47 }
 0x180   : > { %1443 = vmatpush.msrb.mxu2 %v1264_v58 }
 0x181   : > { %1470 = vmatpush.msrb.mxu3 %v1276_v53 }
 0x182   : > { %1444 = vmatpush.msrb.mxu2 %v1263_v63 }
 0x183   : > { %1689 = vmatpush.msra.mxu3 %v1307_v56 }
 0x184   : > { %1445 = vmatpush.msrb.mxu2 %v1262_v2 }
 0x185   : > { %1172 = vrot.lane.b32.xlu1 %v1152_v23, %s1998_s26  ;;  %v1239_v23 = vld [vmem:[#allocation10 + $0x158] sm:$0xff]  ;;  %1690 = vmatpush.msra.mxu3 %v1306_v60 }
 0x186   : > { %1390 = vmatpush.msrb.mxu0 %v1239_v23  ;;  %1446 = vmatpush.msrb.mxu2 %v1261_v5  ;;  %v1292_v23 = vld [vmem:[#allocation10 + $0x300] sm:$0xff]  ;;  %v971_v5 = vpop.f32.mrf.mxu0 }
 0x187   : > { %1691 = vmatpush.msra.mxu3 %v1305_v42 }
 0x188   : > { %1391 = vmatpush.msrb.mxu0 %v1238_v26  ;;  %1447 = vmatpush.msrb.mxu2 %v1260_v7 }
 0x189   : > { %1692 = vmatpush.msra.mxu3 %v1304_v4 }
 0x18a   : > { %1392 = vmatpush.msrb.mxu0 %v1237_v10 }
 0x18b   : > { %1693 = vmatpush.msra.mxu3 %v1303_v54 }
 0x18c   : > { %1393 = vmatpush.msrb.mxu0 %v1236_v35 }
 0x18d   : > { %1694 = vmatpush.msra.mxu3 %v1302_v12 }
 0x18e   : > { %1394 = vmatpush.msrb.mxu0 %v1235_v38 }
 0x18f   : > { %1695 = vmatpush.msra.mxu3 %v1301_v14 }
 0x190   : > { %1395 = vmatpush.msrb.mxu0 %v1234_v39  ;;  %v1331_v39 = vld [vmem:[#allocation10 + $0x438] sm:$0xff] }
 0x191   : > { %1696 = vmatpush.msra.mxu3 %v1300_v16 }
 0x192   : > { %1396 = vmatpush.msrb.mxu0 %v1233_v48  ;;  %v1327_v48 = vld [vmem:[#allocation10 + $0x418] sm:$0xff] }
 0x193   : > { %1697 = vmatpush.msra.mxu3 %v1299_v0 }
 0x194   : > { %1397 = vmatpush.msrb.mxu0 %v1232_v55 }
 0x195   : > { %1698 = vmatpush.msra.mxu3 %v1298_v41 }
 0x196   : > { %1398 = vmatpush.msrb.mxu0 %v1231_v57 }
 0x197   : > { %1699 = vmatpush.msra.mxu3 %v1297_v50 }
 0x198   : > { %1399 = vmatpush.msrb.mxu0 %v1230_v61  ;;  %v902_v61 = vpop.f32.mrf.mxu1 }
 0x199   : > { %1700 = vmatpush.msra.mxu3 %v1296_v19 }
 0x19a   : > { %1400 = vmatpush.msrb.mxu0 %v1229_v3 }
 0x19b   : > { %1701 = vmatpush.msra.mxu3 %v1295_v8 }
 0x19c   : > { %1401 = vmatpush.msrb.mxu0 %v1228_v9  ;;  %v675_v9 = vperm.slane %v2331_v34, 1 }
 0x19d   : > { %1702 = vmatpush.msra.mxu3 %v1294_v59 }
 0x19e   : > { %1478 = vmatpush.msra.mxu0 %v1307_v56  ;;  %v1325_v56 = vld [vmem:[#allocation10 + $0x408] sm:$0xff] }
 0x19f   : > { %1703 = vmatpush.msra.mxu3 %v1293_v24 }
 0x1a0   : > { %1479 = vmatpush.msra.mxu0 %v1306_v60  ;;  %v905_v63 = vpop.f32.mrf.mxu1 }
 0x1a1   : > { %1704 = vmatpush.msra.mxu3 %v1292_v23 }
 0x1a2   : > { %1480 = vmatpush.msra.mxu0 %v1305_v42  ;;  %v925_v42 = vpop.f32.mrf.mxu2 }
 0x1a4   : > { %1481 = vmatpush.msra.mxu0 %v1304_v4 }
 0x1a6   : > { %1482 = vmatpush.msra.mxu0 %v1303_v54 }
 0x1a8   : > { %1483 = vmatpush.msra.mxu0 %v1302_v12  ;;  %v994_v3 = vpop.f32.mrf.mxu1  ;;  %v903_v12 = vadd.f32 %v902_v61, %v675_v9 }
 0x1aa   : > { %1484 = vmatpush.msra.mxu0 %v1301_v14  ;;  %v928_v4 = vpop.f32.mrf.mxu2  ;;  %v926_v14 = vadd.f32 %v925_v42, %v903_v12 }
 0x1ac   : > { %1485 = vmatpush.msra.mxu0 %v1300_v16  ;;  %v906_v16 = vadd.f32 %v905_v63, %v675_v9 }
 0x1ae   : > { %1486 = vmatpush.msra.mxu0 %v1299_v0 }
 0x1b0   : > { %1487 = vmatpush.msra.mxu0 %v1298_v41  ;;  %v997_v7 = vpop.f32.mrf.mxu1 }
 0x1b2   : > { %1488 = vmatpush.msra.mxu0 %v1297_v50  ;;  %v1017_v54 = vpop.f32.mrf.mxu2 }
 0x1b4   : > { %1489 = vmatpush.msra.mxu0 %v1296_v19 }
 0x1b6   : > { %1490 = vmatpush.msra.mxu0 %v1295_v8 }
 0x1b8   : > { %1491 = vmatpush.msra.mxu0 %v1294_v59  ;;  %v1086_v41 = vpop.f32.mrf.mxu1 }
 0x1ba   : > { %v1129_v62 = vpop.permute.xlu2 %1128  ;;  %1492 = vmatpush.msra.mxu0 %v1293_v24  ;;  %v1020_v50 = vpop.f32.mrf.mxu2 }
 0x1bb   : > { %1134 = vst.msk [vmem:[#allocation3 + $0x18] sm:$0xff] %vm287_vm7, %v1129_v62  ;;  %v948_v62 = vpop.f32.mrf.mxu3 }
 0x1bc   : > { %1493 = vmatpush.msra.mxu0 %v1292_v23  ;;  %v949_v0 = vadd.f32 %v948_v62, %v926_v14 }
 0x1c0   : > { %v1089_v34 = vpop.f32.mrf.mxu1 }
 0x1c2   : > { %v1181_v13 = vld [vmem:[#allocation3 + $0x18] sm:$0xff] }
 0x1c3   : > { %1425 = vmatmul.f32.vlgmr.msrb.gmra.mxu1 %v1181_v13  ;;  %v951_v2 = vpop.f32.mrf.mxu3  ;;  %v974_v13 = vpop.f32.mrf.mxu0 }
 0x1c4   : > { %v1131_v15 = vpop.permute.xlu2 %1130 }
 0x1c5   : > { %1135 = vst.msk [vmem:[#allocation3 + $0x60] sm:$0xff] %vm287_vm7, %v1131_v15 }
 0x1cb   : > { %v1063_v19 = vpop.f32.mrf.mxu0 }
 0x1cc   : > { %v1121_v18 = vpop.permute.xlu2 %1120  ;;  %v1190_v49 = vld [vmem:[#allocation3 + $0x60] sm:$0xff] }
 0x1cd   : > { %1125 = vst.msk [vmem:[#allocation3 + $0x58] sm:$0xff] %vm307_vm6, %v1121_v18  ;;  %1428 = vmatmul.f32.gmra.mxu1 %v1190_v49  ;;  %v929_v18 = vadd.f32 %v928_v4, %v906_v16  ;;  %v972_v49 = vadd.f32 %v971_v5, %v949_v0 }
 0x1cf   : > { %v952_v8 = vadd.f32 %v951_v2, %v929_v18  ;;  %v995_v59 = vadd.f32 %v994_v3, %v972_v49 }
 0x1d4   : > { %v1155_v21 = vpop.permute.xlu2 %1154  ;;  %v1103_v22 = vpop.permute.xlu0 %1102  ;;  %v1189_v55 = vld [vmem:[#allocation3 + $0x58] sm:$0xff] }
 0x1d5   : > { %1160 = vst.msk [vmem:[#allocation3 + $0x30] sm:$0xff] %vm287_vm7, %v1155_v21  ;;  %1517 = vmatmul.f32.vlgmr.msra.gmra.mxu1 %v2351_v27  ;;  %v975_v21 = vadd.f32 %v974_v13, %v952_v8 }
 0x1d6   : > { %1108 = vst.msk [vmem:[#allocation3] sm:$0xfe] %vm285_vm8, %v1103_v22  ;;  %v1018_v22 = vadd.f32 %v1017_v54, %v995_v59 }
 0x1dc   : > { %v1141_v26 = vpop.permute.xlu0 %1140  ;;  %v1184_v57 = vld [vmem:[#allocation3 + $0x30] sm:$0xff] }
 0x1dd   : > { %1520 = vmatmul.f32.gmra.mxu1 %v1194_v25  ;;  %1146 = vst.msk [vmem:[#allocation3 + $0x28] sm:$0xff] %vm307_vm6, %v1141_v26  ;;  %v1178_v28 = vld [vmem:[#allocation3] sm:$0xff]  ;;  %v998_v25 = vadd.f32 %v997_v7, %v975_v21 }
 0x1de   : > { %1356 = vmatmul.f32.vlgmr.msra.gmra.mxu2 %v1178_v28 }
 0x1df   : > { %v1105_v27 = vpop.permute.xlu1 %1104  ;;  %1524 = vmatpush.msra.mxu2 %v1339_v44  ;;  %v1066_v44 = vpop.f32.mrf.mxu0  ;;  %v1021_v28 = vadd.f32 %v1020_v50, %v998_v25 }
 0x1e0   : > { %1109 = vst.msk [vmem:[#allocation3 + $0x48] sm:$0xff] %vm287_vm7, %v1105_v27 }
 0x1e1   : > { %1525 = vmatpush.msra.mxu2 %v1338_v51 }
 0x1e3   : > { %1526 = vmatpush.msra.mxu2 %v1337_v29 }
 0x1e4   : > { %v1143_v31 = vpop.permute.xlu0 %1142  ;;  %v1183_v10 = vld [vmem:[#allocation3 + $0x28] sm:$0xff] }
 0x1e5   : > { %1147 = vst.msk [vmem:[#allocation3 + $0x70] sm:$0xff] %vm307_vm6, %v1143_v31  ;;  %1527 = vmatpush.msra.mxu2 %v1336_v30  ;;  %1471 = vmatmul.f32.vlgmr.msrb.gmra.mxu3 %v1183_v10 }
 0x1e7   : > { %v1119_v35 = vpop.permute.xlu1 %1118  ;;  %v1187_v36 = vld [vmem:[#allocation3 + $0x48] sm:$0xff]  ;;  %1528 = vmatpush.msra.mxu2 %v1335_v32 }
 0x1e8   : > { %1124 = vst.msk [vmem:[#allocation3 + $0x10] sm:$0xfe] %vm305_vm11, %v1119_v35  ;;  %1359 = vmatmul.f32.gmra.mxu2 %v1187_v36 }
 0x1e9   : > { %1529 = vmatpush.msra.mxu2 %v1334_v33 }
 0x1eb   : > { %1530 = vmatpush.msra.mxu2 %v1333_v45 }
 0x1ec   : > { %v1157_v38 = vpop.permute.xlu0 %1156  ;;  %v1192_v6 = vld [vmem:[#allocation3 + $0x70] sm:$0xff] }
 0x1ed   : > { %1161 = vst.msk [vmem:[#allocation3 + $0x78] sm:$0x7f] %vm346_vm10, %v1157_v38  ;;  %1531 = vmatpush.msra.mxu2 %v1332_v37  ;;  %1474 = vmatmul.f32.gmra.mxu3 %v1192_v6 }
 0x1ef   : > { %v1171_v11 = vpop.permute.xlu1 %1170  ;;  %v1180_v43 = vld [vmem:[#allocation3 + $0x10] sm:$0xff]  ;;  %1532 = vmatpush.msra.mxu2 %v1331_v39 }
 0x1f0   : > { %1176 = vst.msk [vmem:[#allocation3 + $0x40] sm:$0xff] %vm307_vm6, %v1171_v11  ;;  %1402 = vmatmul.f32.vlgmr.msrb.gmra.mxu0 %v1180_v43  ;;  %1448 = vmatmul.f32.vlgmr.msrb.gmra.mxu2 %v2334_v17  ;;  %v1324_v17 = vld [vmem:[#allocation10 + $0x400] sm:$0xff] }
 0x1f1   : > { %1533 = vmatpush.msra.mxu2 %v1330_v40 }
 0x1f3   : > { %1534 = vmatpush.msra.mxu2 %v1329_v1 }
 0x1f4   : > { %v1193_v47 = vld [vmem:[#allocation3 + $0x78] sm:$0xff] }
 0x1f5   : > { %1535 = vmatpush.msra.mxu2 %v1328_v46  ;;  %1497 = vmatmul.f32.vlgmr.msra.gmra.mxu3 %v1193_v47 }
 0x1f7   : > { %v1173_v53 = vpop.permute.xlu1 %1172  ;;  %1536 = vmatpush.msra.mxu2 %v1327_v48  ;;  %v1186_v58 = vld [vmem:[#allocation3 + $0x40] sm:$0xff] }
 0x1f8   : > { %1177 = vst.msk [vmem:[#allocation3 + $0x88] sm:$0x7f] %vm364_vm13, %v1173_v53  ;;  %1405 = vmatmul.f32.gmra.mxu0 %v1189_v55  ;;  %1451 = vmatmul.f32.gmra.mxu2 %v2340_v20  ;;  %v1040_v20 = vpop.f32.mrf.mxu3 }
 0x1f9   : > { %1537 = vmatpush.msra.mxu2 %v1326_v52  ;;  %v1041_v26 = vadd.f32 %v1040_v20, %v1018_v22 }
 0x1fb   : > { %1538 = vmatpush.msra.mxu2 %v1325_v56  ;;  %v1064_v51 = vadd.f32 %v1063_v19, %v1041_v26 }
 0x1fd   : > { %1539 = vmatpush.msra.mxu2 %v1324_v17  ;;  %v1087_v30 = vadd.f32 %v1086_v41, %v1064_v51 }
 0x1ff   : > { %v1195_v60 = vld [vmem:[#allocation3 + $0x88] sm:$0xff] }
 0x200   : > { %1494 = vmatmul.f32.vlgmr.msra.gmra.mxu0 %v1184_v57  ;;  %1540 = vmatmul.f32.vlgmr.msra.gmra.mxu2 %v1186_v58  ;;  %v1043_v15 = vpop.f32.mrf.mxu3 }
 0x201   : > { %v1044_v29 = vadd.f32 %v1043_v15, %v1021_v28 }
 0x203   : > { %v1067_v32 = vadd.f32 %v1066_v44, %v1044_v29 }
 0x205   : > { %v1090_v36 = vadd.f32 %v1089_v34, %v1067_v32 }
 0x208   : > { %1543 = vmatmul.f32.gmra.mxu2 %v1195_v60  ;;  %v1380_v24 = vpop.f32.mrf.mxu3 }
 0x210   : > { %v1383_v27 = vpop.f32.mrf.mxu3 }
 0x240   : > { %v1426_v31 = vpop.f32.mrf.mxu1 }
 0x24a   : > { %v1429_v40 = vpop.f32.mrf.mxu1 }
 0x252   : > { %v1518_v58 = vpop.f32.mrf.mxu1 }
 0x25a   : > { %v1521_v3 = vpop.f32.mrf.mxu1 }
 0x261   : > { %v1357_v23 = vpop.f32.mrf.mxu2 }
 0x262   : > { %v1358_v33 = vadd.f32 %v1357_v23, %v1087_v30 }
 0x264   : > { %v1381_v45 = vadd.f32 %v1380_v24, %v1358_v33 }
 0x268   : > { %v1472_v37 = vpop.f32.mrf.mxu3 }
 0x26b   : > { %v1360_v10 = vpop.f32.mrf.mxu2 }
 0x26c   : > { %v1361_v38 = vadd.f32 %v1360_v10, %v1090_v36 }
 0x26d   : > { %v1403_v35 = vpop.f32.mrf.mxu0 }
 0x26e   : > { %v1404_v6 = vadd.f32 %v1403_v35, %v1381_v45  ;;  %v1384_v1 = vadd.f32 %v1383_v27, %v1361_v38 }
 0x270   : > { %v1427_v43 = vadd.f32 %v1426_v31, %v1404_v6  ;;  %v1475_v48 = vpop.f32.mrf.mxu3 }
 0x273   : > { %v1449_v39 = vpop.f32.mrf.mxu2 }
 0x274   : > { %v1450_v46 = vadd.f32 %v1449_v39, %v1427_v43 }
 0x275   : > { %v1406_v11 = vpop.f32.mrf.mxu0 }
 0x276   : > { %v1407_v47 = vadd.f32 %v1406_v11, %v1384_v1  ;;  %v1473_v55 = vadd.f32 %v1472_v37, %v1450_v46 }
 0x278   : > { %v1430_v53 = vadd.f32 %v1429_v40, %v1407_v47  ;;  %v1498_v42 = vpop.f32.mrf.mxu3 }
 0x27b   : > { %v1452_v52 = vpop.f32.mrf.mxu2 }
 0x27c   : > { %v1453_v17 = vadd.f32 %v1452_v52, %v1430_v53 }
 0x27d   : > { %v1495_v56 = vpop.f32.mrf.mxu0 }
 0x27e   : > { %v1496_v57 = vadd.f32 %v1495_v56, %v1473_v55  ;;  %v1476_v60 = vadd.f32 %v1475_v48, %v1453_v17 }
 0x280   : > { %v1519_v61 = vadd.f32 %v1518_v58, %v1496_v57  ;;  %v1499_v2 = vadd.f32 %v1498_v42, %v1476_v60 }
 0x282   : > { %v1522_v4 = vadd.f32 %v1521_v3, %v1499_v2 }
 0x283   : > { %v1541_v62 = vpop.f32.mrf.mxu2 }
 0x284   : > { %v1542_v63 = vadd.f32 %v1541_v62, %v1519_v61 }
 0x286   : > { %1547 = vst [vmem:[%s265_s24] sm:$0xff] %v1542_v63 }
 0x28b   : > { %v1544_v5 = vpop.f32.mrf.mxu2 }
 0x28c   : > { %v1545_v20 = vadd.f32 %v1544_v5, %v1522_v4 }
 0x28e   : > { %1548 = vst [vmem:[%s265_s24 + $0x8] sm:$0xff] %v1545_v20 }
 0x28f   : > { %1941 = shalt.err (!%p1938_p10)
}
 0x290   : > { %s2000_s29 = smov 128  }
 0x291   : > { %1719 = dma.vmem_to_hbm [thread:$0]  (%p2111_p3), %s1563_s20, 256, %s1565_s6, %s1550_s19, %s2000_s29, %s2000_s29, %s1997_s21  }
 0x292 PF: > { %s1579_s26 = sand.u32 1, %s1976_s15   ;;  %p2427_p12 = scmp.ge.s32.totalorder %s1988_s18, 2 }
 0x293   : > { %s1580_s23 = scalar_lea.sflag [#allocation6], %s1579_s26 }
 0x294   : > { %p1736_p13 = pnand %p2427_p12, %p2061_p6 }
 0x296   : > { %p1737_p0 = pneg %p1736_p13 }
 0x298   : > { %1971 = dma.done.wait (%p1737_p0), %s1580_s23, 256  }
 0x299   : > { %1973 = vsyncadd (%p1737_p0), %s1580_s23, 4294967040  ;;  %p19_p5 = scmp.ge.s32.totalorder %s2098_s25, 4   ;;  %s2428_s15 = smov %s1980_s16 }
 0x29a   : > { %s2429_s16 = smov %s1984_s17  ;;  %s2430_s17 = smov %s2107_s30 }
 0x29b   : > { %s2431_s18 = smov %s2098_s25  ;;  %21 = sbr.rel (!%p19_p5) target bundleno = 7 (0x7), region = 93 }
 0x2a0   :  { %1586 = vsyncpa [#allocation5], 1 }
 0x2a1   :  { %1588 = vsyncpa [#allocation5 + $0x1], 1 }
 0x2a2   :  { %1589 = vsyncpa [#allocation8], 1 }
 0x2a3   :  { %1590 = vsyncpa [#allocation11], 1 }
 0x2a4   :  { %1591 = vsyncpa [#allocation6], 1 }
 0x2a5   :  { %1593 = vsyncpa [#allocation6 + $0x1], 1 }

// kernel: tpu_custom_call.1
= control target key start
LH: loop header
LB: loop body
LE: loop exit
PB: predicated region body
PF: predicated region fallthrough
CT: control target
= control target key end

     0   :  { %9 = vsyncpa [#allocation5], 0  ;;  %s2416_s0 = inlined_call_operand.hbm [shape: f32[2,16,128], index: 0, kind: input, shape index: {}]   ;;  %s2417_s1 = inlined_call_operand.hbm [shape: f32[1152,256], index: 1, kind: input, shape index: {}]   ;;  %s2418_s2 = inlined_call_operand.hbm [shape: f32[1,256], index: 2, kind: input, shape index: {}]   ;;  %s2419_s3 = inlined_call_operand.hbm [shape: f32[1152,128], index: 3, kind: input, shape index: {}]   ;;  %s2420_s4 = inlined_call_operand.hbm [shape: f32[2,16,128], index: 4, kind: output, shape index: {}]  }
   0x1   :  { %11 = vsyncpa [#allocation5 + $0x1], 0 }
   0x2   :  { %12 = vsyncpa [#allocation8], 0 }
   0x3   :  { %13 = vsyncpa [#allocation11], 0 }
   0x4   :  { %14 = vsyncpa [#allocation6], 0 }
   0x5   :  { %16 = vsyncpa [#allocation6 + $0x1], 0  ;;  %s2026_s15 = smov 0   ;;  %s2028_s16 = smov 0  }
   0x6   :  { %s2030_s17 = smov 0   ;;  %s2032_s18 = smov 0  }
   0x7 LB: > { %s2047_s19 = sadd.s32 4294967295, %s1988_s18   ;;  %s1667_s20 = sadd.s32 4294967294, %s1988_s18   ;;  %s1988_s18 = sphi %s2032_s18, %s2431_s18   ;;  %s1984_s17 = sphi %s2030_s17, %s2430_s17   ;;  %s1980_s16 = sphi %s2028_s16, %s2429_s16   ;;  %s1976_s15 = sphi %s2026_s15, %s2428_s15  }
   0x8   : > { %p42_p0 = scmp.ne.s32.totalorder %s1980_s16, %s1976_s15  ;;  %p43_p1 = scmp.eq.s32.totalorder %s2047_s19, 0 }
   0x9   : > { %p129_p2 = scmp.eq.s32.totalorder %s2047_s19, 1  ;;  %p135_p3 = scmp.eq.s32.totalorder %s1667_s20, 1 }
   0xa   : > { %p2056_p4 = por %p43_p1, %p42_p0  ;;  %p1668_p5 = scmp.ge.s32.totalorder %s1988_s18, 1 }
   0xb   : > { %p2061_p6 = por %p135_p3, %p42_p0  ;;  %p142_p7 = scmp.lt.s32.totalorder %s1988_s18, 3 }
   0xc   : > { %s153_s25 = sshll.u32 %s2417_s1, 4  ;;  %s1990_s27 = smov [#allocation7]   ;;  %s154_s25 = int_to_ptr.hbm [resolvable:$true] %s153_s25 }
   0xd   : > { %p2069_p8 = pnand %p1668_p5, %p142_p7  ;;  %s155_s28 = sshll.u32 %s1990_s27, 4  ;;  %s156_s28 = int_to_ptr.vmem [resolvable:$true] %s155_s28 }
   0xe   : > { %s168_s6 = sshll.u32 %s2418_s2, 4  ;;  %s1991_s7 = smov 256   ;;  %s169_s6 = int_to_ptr.hbm [resolvable:$true] %s168_s6 }
   0xf   : > { %p1721_p9 = pneg %p2069_p8  ;;  %s1992_s8 = smov 16  }
  0x10   : > { %s1993_s9 = smov [#allocation9]   ;;  %s179_s13 = sshll.u32 %s2419_s3, 4  ;;  %s180_s13 = int_to_ptr.hbm [resolvable:$true] %s179_s13 }
  0x11   : > { %p2077_p10 = pnand %p1721_p9, %p43_p1  ;;  %s170_s10 = sshll.u32 %s1993_s9, 4  ;;  %s171_s10 = int_to_ptr.vmem [resolvable:$true] %s170_s10 }
  0x12   : > { %s1994_s14 = smov [#allocation10]   ;;  %s1995_s23 = smov 128  }
  0x13   : > { %1724 = dma.hbm_to_vmem [thread:$0]  (!%p2077_p10), %s154_s25, 36864, %s156_s28, [#allocation8], %s1991_s7, %s1991_s7, %s1992_s8  }
  0x14   : > { %1727 = dma.hbm_to_vmem [thread:$0]  (!%p2077_p10), %s169_s6, 32, %s171_s10, [#allocation8]  }
  0x15   : > { %s181_s20 = sshll.u32 %s1994_s14, 4  ;;  %s1996_s24 = smov 8   ;;  %s182_s20 = int_to_ptr.vmem [resolvable:$true] %s181_s20 }
  0x16   : > { %1730 = dma.hbm_to_vmem [thread:$0]  (!%p2077_p10), %s180_s13, 18432, %s182_s20, [#allocation11], %s1995_s23, %s1995_s23, %s1996_s24  }
  0x17   : > { %s2098_s25 = sadd.s32 1, %s1988_s18   ;;  %s29_s28 = sadd.s32 1, %s1984_s17 }
  0x18   : > { %s26_s27 = ssub.s32 %s1988_s18, %s2098_s25  ;;  %p36_p13 = scmp.ne.s32.totalorder %s1984_s17, %s1980_s16 }
  0x19   : > { %p27_p12 = scmp.eq.s32.totalorder %s26_s27, 0  ;;  %p37_p0 = scmp.eq.s32.totalorder %s1988_s18, 0 }
  0x1a   : > { %p2111_p3 = por %p129_p2, %p36_p13  ;;  %p1742_p5 = scmp.lt.s32.totalorder %s1988_s18, 2 }
  0x1b   : > { %s2107_s30 = scalar_select %p27_p12, %s1984_s17, %s29_s28  }
  0x1c   : > { %s195_s29 = sand.u32 1, %s1984_s17   ;;  %s1687_s6 = sshll.u32 %s1988_s18, 4 }
  0x1d   : > { %p38_p7 = por %p37_p0, %p36_p13  ;;  %s1673_s7 = sshll.u32 %s195_s29, 4 }
  0x1e   : > { %s204_s10 = scalar_lea.hbm %s2416_s0, %s1687_s6  ;;  %s199_s12 = scalar_lea.vmem [#allocation4], %s1673_s7 }
  0x1f   : > { %s205_s11 = sshll.u32 %s204_s10, 4  ;;  %s207_s13 = sshll.u32 %s199_s12, 4  ;;  %s206_s11 = int_to_ptr.hbm [resolvable:$true] %s205_s11  ;;  %s208_s13 = int_to_ptr.vmem [resolvable:$true] %s207_s13 }
  0x20   : > { %p2121_p9 = pnand %p1742_p5, %p38_p7  ;;  %s196_s20 = scalar_lea.sflag [#allocation5], %s195_s29 }
  0x21   : > { %s1884_s27 = sshra.s32 %s206_s11, 4  ;;  %s1891_s7 = scalar_lea.hbm %s2416_s0, 32  ;;  %s1885_s27 = int_to_ptr.hbm [resolvable:$true] %s1884_s27 }
  0x22   : > { %s1886_s28 = scalar_lea.hbm %s1885_s27, 16  ;;  %p1888_p10 = pneg %p2121_p9 }
  0x23   : > { %p1887_p2 = scmp.ne.s32.totalorder %s1885_s27, %s1886_s28  ;;  %p1892_p0 = scmp.lt.s32.totalorder %s1885_s27, %s2416_s0 }
  0x24   : > { %p1893_p5 = scmp.lt.s32.totalorder %s1891_s7, %s1886_s28 }
  0x25   : > { %p1889_p12 = pnand %p1888_p10, %p1887_p2 }
  0x26   : > { %p1894_p7 = por %p1893_p5, %p1892_p0 }
  0x27   : > { %p1890_p13 = pneg %p1889_p12 }
  0x29   : > { %p1895_p11 = pnand %p1894_p7, %p1890_p13 }
  0x2b   : > { %1898 = shalt.err (!%p1895_p11)
}
  0x2c   : > { %1734 = dma.hbm_to_vmem [thread:$0]  (!%p2121_p9), %s206_s11, 256, %s208_s13, %s196_s20, %s1995_s23, %s1995_s23, %s1996_s24  }
  0x2d   : > { %219 = sbr.rel (%p2069_p8) target bundleno = 658 (0x292), region = 36  ;;  %s2141_s29 = sand.u32 (!%p2069_p8), 1, %s1980_s16  }
  0x2e   : > { %s1677_s12 = sshll.u32 (!%p2069_p8), %s2141_s29, 4  ;;  %s222_s27 = scalar_lea.sflag (!%p2069_p8), [#allocation5], %s2141_s29 }
  0x2f   : > { %s225_s28 = scalar_lea.vmem (!%p2069_p8), [#allocation4], %s1677_s12 }
  0x32   : > { %1959 = dma.done.wait (%p2056_p4), %s222_s27, 256  }
  0x33   : > { %1961 = vsyncadd (%p2056_p4), %s222_s27, 4294967040 }
  0x34   : > { %1963 = dma.done.wait (%p43_p1), [#allocation8], 36896  }
  0x35   : > { %1965 = vsyncadd (%p43_p1), [#allocation8], 4294930400 }
  0x36   : > { %1967 = dma.done.wait (%p43_p1), [#allocation11], 18432  }
  0x37   : > { %1969 = vsyncadd (%p43_p1), [#allocation11], 4294948864  ;;  %v2159_v0 = vld [vmem:[%s225_s28] sm:$0xff]  ;;  %v2161_v1 = vld [vmem:[%s225_s28 + $0x8] sm:$0xff]  ;;  %vm275_vm0 = vcmask 1040384   ;;  %vm335_vm1 = vcmask 1046528  }
  0x38   : > { %v446_v2 = vld [vmem:[#allocation7 + $0x1f0] sm:$0xff]  ;;  %v276_v3 = vrot.slane %v2159_v0, 7  ;;  %319 = vst [vmem:[#allocation2 + $0x20] sm:$0xff] %v2159_v0  ;;  %v277_v4 = vrot.slane %v2161_v1, 7  ;;  %v336_v5 = vrot.slane %v2159_v0, 1  ;;  %v2168_v6 = vrot.slane %v2161_v1, 1 }
  0x39   : > { %701 = vmatpush.msra.mxu1 %v446_v2  ;;  %v444_v7 = vld [vmem:[#allocation7 + $0x1e0] sm:$0xff]  ;;  %320 = vst [vmem:[#allocation2 + $0x68] sm:$0xff] %v2161_v1  ;;  %v442_v8 = vld [vmem:[#allocation7 + $0x1d0] sm:$0xff]  ;;  %s1997_s21 = smov 8   ;;  %s1998_s26 = smov 120   ;;  %v1999_v59 = vmov 0.0  }
  0x3a   : > { %279 = vrot.lane.b32.xlu0 %v276_v3, %s1997_s21  ;;  %292 = vst [vmem:[#allocation2 + $0x8] sm:$0xfe] %v276_v3  ;;  %v2173_v9 = vsel %vm275_vm0, %v276_v3, %v277_v4  ;;  %v414_v10 = vld [vmem:[#allocation7 + $0xf0] sm:$0xff]  ;;  %v2180_v11 = vsel %vm335_vm1, %v336_v5, %v2168_v6  ;;  %v440_v12 = vld [vmem:[#allocation7 + $0x1c0] sm:$0xff]  ;;  %vm269_vm2 = vcmask 64513   ;;  %vm271_vm3 = vcmask 64512  }
  0x3b   : > { %702 = vmatpush.msra.mxu1 %v444_v7  ;;  %281 = vrot.lane.b32.xlu1 %v2173_v9, %s1997_s21  ;;  %293 = vst [vmem:[#allocation2 + $0x50] sm:$0xff] %v2173_v9  ;;  %v412_v13 = vld [vmem:[#allocation7 + $0xe0] sm:$0xff]  ;;  %v438_v14 = vld [vmem:[#allocation7 + $0x1b0] sm:$0xff]  ;;  %vm295_vm4 = vcmask 1048513   ;;  %vm297_vm5 = vcmask 1048512   ;;  %vm307_vm6 = vcmask 982016  }
  0x3c   : > { %301 = vrot.lane.b32.xlu2 %v2173_v9, %s1998_s26  ;;  %351 = vst [vmem:[#allocation2 + $0x38] sm:$0xff] %v2180_v11  ;;  %678 = vmatpush.msra.mxu0 %v414_v10  ;;  %v410_v15 = vld [vmem:[#allocation7 + $0xd0] sm:$0xff]  ;;  %v436_v18 = vld [vmem:[#allocation7 + $0x1a0] sm:$0xff]  ;;  %vm287_vm7 = vcmask 1047616   ;;  %vm285_vm8 = vcmask 1047617   ;;  %vm333_vm9 = vcmask 63488  }
  0x3d   : > { %703 = vmatpush.msra.mxu1 %v442_v8  ;;  %352 = vst [vmem:[#allocation2 + $0x80] sm:$0x7f] %v2168_v6  ;;  %v478_v16 = vld [vmem:[#allocation7 + $0x2f0] sm:$0xff]  ;;  %v476_v19 = vld [vmem:[#allocation7 + $0x2e0] sm:$0xff]  ;;  %vm346_vm10 = vcmask 1046592   ;;  %vm305_vm11 = vcmask 982017  }
  0x3e   : > { %679 = vmatpush.msra.mxu0 %v412_v13  ;;  %v510_v17 = vld [vmem:[#allocation7 + $0x3f0] sm:$0xff]  ;;  %724 = vmatpush.msra.mxu2 %v478_v16  ;;  %v508_v20 = vld [vmem:[#allocation7 + $0x3e0] sm:$0xff]  ;;  %289 = vst [vmem:[#allocation2 + $0x8] sm:$0x1] %v1999_v59  ;;  %vm355_vm12 = vcmask 1047488   ;;  %vm364_vm13 = vcmask 980992  }
  0x3f   : > { %704 = vmatpush.msra.mxu1 %v440_v12  ;;  %747 = vmatpush.msra.mxu3 %v510_v17  ;;  %v434_v21 = vld [vmem:[#allocation7 + $0x190] sm:$0xff]  ;;  %v408_v22 = vld [vmem:[#allocation7 + $0xc0] sm:$0xff]  ;;  %268 = vst [vmem:[#allocation2] sm:$0x1] %v1999_v59  ;;  %s1688_s23 = sshll.u32 %s2047_s19, 4  ;;  %s265_s24 = scalar_lea.vmem [#allocation12], %s1677_s12 }
  0x40   : > { %680 = vmatpush.msra.mxu0 %v410_v15  ;;  %725 = vmatpush.msra.mxu2 %v476_v19  ;;  %v474_v23 = vld [vmem:[#allocation7 + $0x2d0] sm:$0xff]  ;;  %v432_v25 = vld [vmem:[#allocation7 + $0x180] sm:$0xff]  ;;  %294 = vst [vmem:[#allocation2 + $0x10] sm:$0x1] %v1999_v59  ;;  %s1561_s14 = scalar_lea.hbm %s2420_s4, %s1688_s23  ;;  %s1562_s20 = sshll.u32 %s265_s24, 4  ;;  %s1563_s20 = int_to_ptr.vmem [resolvable:$true] %s1562_s20 }
  0x41   : > { %705 = vmatpush.msra.mxu1 %v438_v14  ;;  %748 = vmatpush.msra.mxu3 %v508_v20  ;;  %v506_v24 = vld [vmem:[#allocation7 + $0x3d0] sm:$0xff]  ;;  %v472_v27 = vld [vmem:[#allocation7 + $0x2c0] sm:$0xff]  ;;  %331 = vst [vmem:[#allocation2 + $0x7f] sm:$0x1] %v1999_v59  ;;  %s1564_s6 = sshll.u32 %s1561_s14, 4  ;;  %s1550_s19 = scalar_lea.sflag [#allocation6], %s2141_s29  ;;  %s1565_s6 = int_to_ptr.hbm [resolvable:$true] %s1564_s6 }
  0x42   : > { %299 = vrot.lane.b32.xlu0 %v276_v3, %s1998_s26  ;;  %v406_v26 = vld [vmem:[#allocation7 + $0xb0] sm:$0xff]  ;;  %681 = vmatpush.msra.mxu0 %v408_v22  ;;  %v504_v28 = vld [vmem:[#allocation7 + $0x3c0] sm:$0xff]  ;;  %348 = vst [vmem:[#allocation2 + $0x87] sm:$0x1] %v1999_v59  ;;  %s1928_s8 = sshra.s32 %s1565_s6, 4  ;;  %s1934_s12 = scalar_lea.hbm %s2420_s4, 32  ;;  %s1929_s8 = int_to_ptr.hbm [resolvable:$true] %s1928_s8 }
  0x43   : > { %706 = vmatpush.msra.mxu1 %v436_v18  ;;  %311 = vrot.lane.b32.xlu1 %v2159_v0, %s1997_s21  ;;  %v430_v29 = vld [vmem:[#allocation7 + $0x170] sm:$0xff]  ;;  %v404_v30 = vld [vmem:[#allocation7 + $0xa0] sm:$0xff]  ;;  %353 = vst [vmem:[#allocation2 + $0x8f] sm:$0x1] %v1999_v59  ;;  %s1930_s7 = scalar_lea.hbm %s1929_s8, 16  ;;  %p1935_p11 = scmp.lt.s32.totalorder %s1929_s8, %s2420_s4 }
  0x44   : > { %313 = vrot.lane.b32.xlu2 %v2161_v1, %s1997_s21  ;;  %726 = vmatpush.msra.mxu2 %v474_v23  ;;  %v470_v31 = vld [vmem:[#allocation7 + $0x2b0] sm:$0xff]  ;;  %v428_v33 = vld [vmem:[#allocation7 + $0x160] sm:$0xff]  ;;  %1094 = vst [vmem:[#allocation3] sm:$0x1] %v1999_v59  ;;  %p1931_p1 = scmp.ne.s32.totalorder %s1929_s8, %s1930_s7  ;;  %p1936_p9 = scmp.lt.s32.totalorder %s1934_s12, %s1930_s7 }
  0x45   : > { %707 = vmatpush.msra.mxu1 %v434_v21  ;;  %749 = vmatpush.msra.mxu3 %v506_v24  ;;  %v502_v32 = vld [vmem:[#allocation7 + $0x3b0] sm:$0xff]  ;;  %v468_v36 = vld [vmem:[#allocation7 + $0x2a0] sm:$0xff]  ;;  %1110 = vst [vmem:[#allocation3 + $0x8] sm:$0x1] %v1999_v59 }
  0x46   : > { %682 = vmatpush.msra.mxu0 %v406_v26  ;;  %727 = vmatpush.msra.mxu2 %v472_v27  ;;  %v426_v34 = vld [vmem:[#allocation7 + $0x150] sm:$0xff]  ;;  %v500_v37 = vld [vmem:[#allocation7 + $0x3a0] sm:$0xff]  ;;  %1115 = vst [vmem:[#allocation3 + $0x10] sm:$0x1] %v1999_v59  ;;  %p1932_p4 = pnand %p1931_p1, %p2111_p3  ;;  %p1937_p2 = por %p1936_p9, %p1935_p11 }
  0x47   : > { %708 = vmatpush.msra.mxu1 %v432_v25  ;;  %750 = vmatpush.msra.mxu3 %v504_v28  ;;  %v402_v35 = vld [vmem:[#allocation7 + $0x90] sm:$0xff]  ;;  %v424_v38 = vld [vmem:[#allocation7 + $0x140] sm:$0xff]  ;;  %1148 = vst [vmem:[#allocation3 + $0x7f] sm:$0x1] %v1999_v59 }
  0x48   : > { %683 = vmatpush.msra.mxu0 %v404_v30  ;;  %728 = vmatpush.msra.mxu2 %v470_v31  ;;  %v400_v39 = vld [vmem:[#allocation7 + $0x80] sm:$0xff]  ;;  %v466_v40 = vld [vmem:[#allocation7 + $0x290] sm:$0xff]  ;;  %1162 = vst [vmem:[#allocation3 + $0x87] sm:$0x1] %v1999_v59  ;;  %p1933_p8 = pneg %p1932_p4 }
  0x49   : > { %709 = vmatpush.msra.mxu1 %v430_v29  ;;  %751 = vmatpush.msra.mxu3 %v502_v32  ;;  %v498_v41 = vld [vmem:[#allocation7 + $0x390] sm:$0xff]  ;;  %v464_v44 = vld [vmem:[#allocation7 + $0x280] sm:$0xff]  ;;  %1167 = vst [vmem:[#allocation3 + $0x8f] sm:$0x1] %v1999_v59 }
  0x4a   : > { %339 = vrot.lane.b32.xlu0 %v2180_v11, %s1997_s21  ;;  %684 = vmatpush.msra.mxu0 %v402_v35  ;;  %v422_v42 = vld [vmem:[#allocation7 + $0x130] sm:$0xff]  ;;  %v496_v45 = vld [vmem:[#allocation7 + $0x380] sm:$0xff]  ;;  %270 = vst.msk [vmem:[#allocation2] sm:$0xfe] %vm269_vm2, %v1999_v59  ;;  %p1938_p10 = pnand %p1937_p2, %p1933_p8 }
  0x4b   : > { %710 = vmatpush.msra.mxu1 %v428_v33  ;;  %323 = vrot.lane.b32.xlu1 %v2159_v0, %s1998_s26  ;;  %v398_v43 = vld [vmem:[#allocation7 + $0x70] sm:$0xff]  ;;  %v420_v46 = vld [vmem:[#allocation7 + $0x120] sm:$0xff]  ;;  %1095 = vst.msk [vmem:[#allocation3] sm:$0xfe] %vm269_vm2, %v1999_v59 }
  0x4c   : > { %341 = vrot.lane.b32.xlu2 %v2168_v6, %s1997_s21  ;;  %729 = vmatpush.msra.mxu2 %v468_v36  ;;  %v418_v47 = vld [vmem:[#allocation7 + $0x110] sm:$0xff]  ;;  %v396_v48 = vld [vmem:[#allocation7 + $0x60] sm:$0xff]  ;;  %272 = vst.msk [vmem:[#allocation2 + $0x48] sm:$0xff] %vm271_vm3, %v1999_v59 }
  0x4d   : > { %711 = vmatpush.msra.mxu1 %v426_v34  ;;  %752 = vmatpush.msra.mxu3 %v500_v37  ;;  %v462_v49 = vld [vmem:[#allocation7 + $0x270] sm:$0xff]  ;;  %v416_v51 = vld [vmem:[#allocation7 + $0x100] sm:$0xff]  ;;  %309 = vst.msk [vmem:[#allocation2 + $0x18] sm:$0xff] %vm271_vm3, %v1999_v59 }
  0x4e   : > { %685 = vmatpush.msra.mxu0 %v400_v39  ;;  %730 = vmatpush.msra.mxu2 %v466_v40  ;;  %v494_v50 = vld [vmem:[#allocation7 + $0x370] sm:$0xff]  ;;  %v460_v54 = vld [vmem:[#allocation7 + $0x260] sm:$0xff]  ;;  %310 = vst.msk [vmem:[#allocation2 + $0x60] sm:$0xff] %vm271_vm3, %v1999_v59 }
  0x4f   : > { %712 = vmatpush.msra.mxu1 %v424_v38  ;;  %753 = vmatpush.msra.mxu3 %v498_v41  ;;  %v394_v52 = vld [vmem:[#allocation7 + $0x50] sm:$0xff]  ;;  %v392_v55 = vld [vmem:[#allocation7 + $0x40] sm:$0xff]  ;;  %v2219_v41 = vld [vmem:[#allocation2 + $0x8] sm:$0xff]  ;;  %332 = vst.msk [vmem:[#allocation2 + $0x30] sm:$0xff] %vm271_vm3, %v1999_v59 }
  0x50   : > { %686 = vmatpush.msra.mxu0 %v398_v43  ;;  %731 = vmatpush.msra.mxu2 %v464_v44  ;;  %v574_v53 = vld [vmem:[#allocation7 + $0x5f0] sm:$0xff]  ;;  %v492_v56 = vld [vmem:[#allocation7 + $0x360] sm:$0xff]  ;;  %1096 = vst.msk [vmem:[#allocation3 + $0x48] sm:$0xff] %vm271_vm3, %v1999_v59 }
  0x51   : > { %713 = vmatpush.msra.mxu1 %v422_v42  ;;  %754 = vmatpush.msra.mxu3 %v496_v45  ;;  %v572_v57 = vld [vmem:[#allocation7 + $0x5e0] sm:$0xff]  ;;  %v458_v58 = vld [vmem:[#allocation7 + $0x250] sm:$0xff]  ;;  %1126 = vst.msk [vmem:[#allocation3 + $0x18] sm:$0xff] %vm271_vm3, %v1999_v59 }
  0x52   : > { %357 = vrot.lane.b32.xlu0 %v2180_v11, %s1998_s26  ;;  %687 = vmatpush.msra.mxu0 %v396_v48  ;;  %v390_v60 = vld [vmem:[#allocation7 + $0x30] sm:$0xff]  ;;  %v456_v63 = vld [vmem:[#allocation7 + $0x240] sm:$0xff]  ;;  %1127 = vst.msk [vmem:[#allocation3 + $0x60] sm:$0xff] %vm271_vm3, %v1999_v59 }
  0x53   : > { %714 = vmatpush.msra.mxu1 %v420_v46  ;;  %325 = vrot.lane.b32.xlu1 %v2161_v1, %s1998_s26  ;;  %v490_v61 = vld [vmem:[#allocation7 + $0x350] sm:$0xff]  ;;  %v388_v2 = vld [vmem:[#allocation7 + $0x20] sm:$0xff]  ;;  %1149 = vst.msk [vmem:[#allocation3 + $0x30] sm:$0xff] %vm271_vm3, %v1999_v59 }
  0x54   : > { %359 = vrot.lane.b32.xlu2 %v2168_v6, %s1998_s26  ;;  %732 = vmatpush.msra.mxu2 %v462_v49  ;;  %v570_v62 = vld [vmem:[#allocation7 + $0x5d0] sm:$0xff]  ;;  %v488_v3 = vld [vmem:[#allocation7 + $0x340] sm:$0xff]  ;;  %296 = vst.msk [vmem:[#allocation2 + $0x10] sm:$0xfe] %vm295_vm4, %v1999_v59 }
  0x55   : > { %715 = vmatpush.msra.mxu1 %v418_v47  ;;  %755 = vmatpush.msra.mxu3 %v494_v50  ;;  %v568_v4 = vld [vmem:[#allocation7 + $0x5c0] sm:$0xff]  ;;  %v454_v5 = vld [vmem:[#allocation7 + $0x230] sm:$0xff]  ;;  %1116 = vst.msk [vmem:[#allocation3 + $0x10] sm:$0xfe] %vm295_vm4, %v1999_v59 }
  0x56   : > { %688 = vmatpush.msra.mxu0 %v394_v52  ;;  %733 = vmatpush.msra.mxu2 %v460_v54  ;;  %v386_v6 = vld [vmem:[#allocation7 + $0x10] sm:$0xff]  ;;  %v452_v10 = vld [vmem:[#allocation7 + $0x220] sm:$0xff]  ;;  %298 = vst.msk [vmem:[#allocation2 + $0x58] sm:$0xff] %vm297_vm5, %v1999_v59 }
  0x57   : > { %716 = vmatpush.msra.mxu1 %v416_v51  ;;  %756 = vmatpush.msra.mxu3 %v492_v56  ;;  %v486_v7 = vld [vmem:[#allocation7 + $0x330] sm:$0xff]  ;;  %v384_v12 = vld [vmem:[#allocation7] sm:$0xff]  ;;  %v415_v56 = vld [vmem:[#allocation7 + $0xf8] sm:$0xff]  ;;  %321 = vst.msk [vmem:[#allocation2 + $0x28] sm:$0xff] %vm297_vm5, %v1999_v59 }
  0x58   : > { %689 = vmatpush.msra.mxu0 %v392_v55  ;;  %734 = vmatpush.msra.mxu2 %v458_v58  ;;  %v566_v8 = vld [vmem:[#allocation7 + $0x5b0] sm:$0xff]  ;;  %v484_v13 = vld [vmem:[#allocation7 + $0x320] sm:$0xff]  ;;  %v413_v58 = vld [vmem:[#allocation7 + $0xe8] sm:$0xff]  ;;  %322 = vst.msk [vmem:[#allocation2 + $0x70] sm:$0xff] %vm297_vm5, %v1999_v59 }
  0x59   : > { %793 = vmatpush.msrb.mxu1 %v574_v53  ;;  %757 = vmatpush.msra.mxu3 %v490_v61  ;;  %v564_v14 = vld [vmem:[#allocation7 + $0x5a0] sm:$0xff]  ;;  %v542_v15 = vld [vmem:[#allocation7 + $0x4f0] sm:$0xff]  ;;  %354 = vst.msk [vmem:[#allocation2 + $0x40] sm:$0xff] %vm297_vm5, %v1999_v59 }
  0x5a   : > { %690 = vmatpush.msra.mxu0 %v390_v60  ;;  %735 = vmatpush.msra.mxu2 %v456_v63  ;;  %v450_v16 = vld [vmem:[#allocation7 + $0x210] sm:$0xff]  ;;  %v540_v19 = vld [vmem:[#allocation7 + $0x4e0] sm:$0xff]  ;;  %v411_v60 = vld [vmem:[#allocation7 + $0xd8] sm:$0xff]  ;;  %1117 = vst.msk [vmem:[#allocation3 + $0x58] sm:$0xff] %vm297_vm5, %v1999_v59 }
  0x5b   : > { %794 = vmatpush.msrb.mxu1 %v572_v57  ;;  %758 = vmatpush.msra.mxu3 %v488_v3  ;;  %v482_v17 = vld [vmem:[#allocation7 + $0x310] sm:$0xff]  ;;  %v448_v20 = vld [vmem:[#allocation7 + $0x200] sm:$0xff]  ;;  %1138 = vst.msk [vmem:[#allocation3 + $0x28] sm:$0xff] %vm297_vm5, %v1999_v59 }
  0x5c   : > { %691 = vmatpush.msra.mxu0 %v388_v2  ;;  %736 = vmatpush.msra.mxu2 %v454_v5  ;;  %v562_v18 = vld [vmem:[#allocation7 + $0x590] sm:$0xff]  ;;  %v480_v21 = vld [vmem:[#allocation7 + $0x300] sm:$0xff]  ;;  %1139 = vst.msk [vmem:[#allocation3 + $0x70] sm:$0xff] %vm297_vm5, %v1999_v59 }
  0x5d   : > { %795 = vmatpush.msrb.mxu1 %v570_v62  ;;  %759 = vmatpush.msra.mxu3 %v486_v7  ;;  %v560_v22 = vld [vmem:[#allocation7 + $0x580] sm:$0xff]  ;;  %v538_v23 = vld [vmem:[#allocation7 + $0x4d0] sm:$0xff]  ;;  %v409_v62 = vld [vmem:[#allocation7 + $0xc8] sm:$0xff]  ;;  %1168 = vst.msk [vmem:[#allocation3 + $0x40] sm:$0xff] %vm297_vm5, %v1999_v59 }
  0x5e   : > { %692 = vmatpush.msra.mxu0 %v386_v6  ;;  %737 = vmatpush.msra.mxu2 %v452_v10  ;;  %v606_v24 = vld [vmem:[#allocation7 + $0x6f0] sm:$0xff]  ;;  %v536_v27 = vld [vmem:[#allocation7 + $0x4c0] sm:$0xff]  ;;  %v405_v7 = vld [vmem:[#allocation7 + $0xa8] sm:$0xff]  ;;  %334 = vst.msk [vmem:[#allocation2 + $0x78] sm:$0x7f] %vm333_vm9, %v1999_v59 }
  0x5f   : > { %796 = vmatpush.msrb.mxu1 %v568_v4  ;;  %760 = vmatpush.msra.mxu3 %v484_v13  ;;  %v638_v25 = vld [vmem:[#allocation7 + $0x7f0] sm:$0xff]  ;;  %v604_v28 = vld [vmem:[#allocation7 + $0x6e0] sm:$0xff]  ;;  %v407_v4 = vld [vmem:[#allocation7 + $0xb8] sm:$0xff]  ;;  %1150 = vst.msk [vmem:[#allocation3 + $0x78] sm:$0x7f] %vm333_vm9, %v1999_v59 }
  0x60   : > { %693 = vmatpush.msra.mxu0 %v384_v12  ;;  %738 = vmatpush.msra.mxu2 %v450_v16  ;;  %v558_v26 = vld [vmem:[#allocation7 + $0x570] sm:$0xff]  ;;  %v636_v29 = vld [vmem:[#allocation7 + $0x7e0] sm:$0xff]  ;;  %v403_v13 = vld [vmem:[#allocation7 + $0x98] sm:$0xff]  ;;  %356 = vst.msk [vmem:[#allocation2 + $0x88] sm:$0x7f] %vm355_vm12, %v1999_v59 }
  0x61   : > { %797 = vmatpush.msrb.mxu1 %v566_v8  ;;  %761 = vmatpush.msra.mxu3 %v482_v17  ;;  %v556_v30 = vld [vmem:[#allocation7 + $0x560] sm:$0xff]  ;;  %v534_v31 = vld [vmem:[#allocation7 + $0x4b0] sm:$0xff]  ;;  %v401_v17 = vld [vmem:[#allocation7 + $0x88] sm:$0xff]  ;;  %1169 = vst.msk [vmem:[#allocation3 + $0x88] sm:$0x7f] %vm355_vm12, %v1999_v59 }
  0x62   : > { %770 = vmatpush.msrb.mxu0 %v542_v15  ;;  %739 = vmatpush.msra.mxu2 %v448_v20  ;;  %v602_v32 = vld [vmem:[#allocation7 + $0x6d0] sm:$0xff]  ;;  %v532_v35 = vld [vmem:[#allocation7 + $0x4a0] sm:$0xff] }
  0x63   : > { %798 = vmatpush.msrb.mxu1 %v564_v14  ;;  %762 = vmatpush.msra.mxu3 %v480_v21  ;;  %v634_v33 = vld [vmem:[#allocation7 + $0x7d0] sm:$0xff]  ;;  %v600_v36 = vld [vmem:[#allocation7 + $0x6c0] sm:$0xff]  ;;  %v399_v21 = vld [vmem:[#allocation7 + $0x78] sm:$0xff] }
  0x64   : > { %771 = vmatpush.msrb.mxu0 %v540_v19  ;;  %816 = vmatpush.msrb.mxu2 %v606_v24  ;;  %v554_v34 = vld [vmem:[#allocation7 + $0x550] sm:$0xff]  ;;  %v632_v37 = vld [vmem:[#allocation7 + $0x7c0] sm:$0xff]  ;;  %v397_v24 = vld [vmem:[#allocation7 + $0x68] sm:$0xff] }
  0x65   : > { %799 = vmatpush.msrb.mxu1 %v562_v18  ;;  %839 = vmatpush.msrb.mxu3 %v638_v25  ;;  %v552_v38 = vld [vmem:[#allocation7 + $0x540] sm:$0xff]  ;;  %v530_v39 = vld [vmem:[#allocation7 + $0x490] sm:$0xff] }
  0x66   : > { %772 = vmatpush.msrb.mxu0 %v538_v23  ;;  %817 = vmatpush.msrb.mxu2 %v604_v28  ;;  %v598_v40 = vld [vmem:[#allocation7 + $0x6b0] sm:$0xff]  ;;  %v528_v43 = vld [vmem:[#allocation7 + $0x480] sm:$0xff] }
  0x67   : > { %800 = vmatpush.msrb.mxu1 %v560_v22  ;;  %840 = vmatpush.msrb.mxu3 %v636_v29  ;;  %v550_v42 = vld [vmem:[#allocation7 + $0x530] sm:$0xff]  ;;  %v596_v45 = vld [vmem:[#allocation7 + $0x6a0] sm:$0xff] }
  0x68   : > { %773 = vmatpush.msrb.mxu0 %v536_v27  ;;  %818 = vmatpush.msrb.mxu2 %v602_v32  ;;  %v630_v44 = vld [vmem:[#allocation7 + $0x7b0] sm:$0xff]  ;;  %v548_v46 = vld [vmem:[#allocation7 + $0x520] sm:$0xff]  ;;  %v395_v27 = vld [vmem:[#allocation7 + $0x58] sm:$0xff] }
  0x69   : > { %801 = vmatpush.msrb.mxu1 %v558_v26  ;;  %841 = vmatpush.msrb.mxu3 %v634_v33  ;;  %v526_v47 = vld [vmem:[#allocation7 + $0x470] sm:$0xff]  ;;  %v628_v48 = vld [vmem:[#allocation7 + $0x7a0] sm:$0xff]  ;;  %v391_v32 = vld [vmem:[#allocation7 + $0x38] sm:$0xff] }
  0x6a   : > { %774 = vmatpush.msrb.mxu0 %v534_v31  ;;  %819 = vmatpush.msrb.mxu2 %v600_v36  ;;  %v594_v49 = vld [vmem:[#allocation7 + $0x690] sm:$0xff]  ;;  %v524_v51 = vld [vmem:[#allocation7 + $0x460] sm:$0xff]  ;;  %v389_v33 = vld [vmem:[#allocation7 + $0x28] sm:$0xff] }
  0x6b   : > { %802 = vmatpush.msrb.mxu1 %v556_v30  ;;  %842 = vmatpush.msrb.mxu3 %v632_v37  ;;  %v546_v50 = vld [vmem:[#allocation7 + $0x510] sm:$0xff]  ;;  %v592_v53 = vld [vmem:[#allocation7 + $0x680] sm:$0xff]  ;;  %v393_v30 = vld [vmem:[#allocation7 + $0x48] sm:$0xff] }
  0x6c   : > { %775 = vmatpush.msrb.mxu0 %v532_v35  ;;  %820 = vmatpush.msrb.mxu2 %v598_v40  ;;  %v626_v52 = vld [vmem:[#allocation7 + $0x790] sm:$0xff]  ;;  %v544_v54 = vld [vmem:[#allocation7 + $0x500] sm:$0xff]  ;;  %v385_v35 = vld [vmem:[#allocation7 + $0x8] sm:$0xff] }
  0x6d   : > { %803 = vmatpush.msrb.mxu1 %v554_v34  ;;  %843 = vmatpush.msrb.mxu3 %v630_v44  ;;  %v522_v55 = vld [vmem:[#allocation7 + $0x450] sm:$0xff]  ;;  %v520_v57 = vld [vmem:[#allocation7 + $0x440] sm:$0xff]  ;;  %v387_v34 = vld [vmem:[#allocation7 + $0x18] sm:$0xff] }
  0x6e   : > { %776 = vmatpush.msrb.mxu0 %v530_v39  ;;  %717 = vmatmul.f32.vlgmr.msra.gmra.mxu1 %v2219_v41  ;;  %v624_v61 = vld [vmem:[#allocation7 + $0x780] sm:$0xff]  ;;  %v518_v63 = vld [vmem:[#allocation7 + $0x430] sm:$0xff] }
  0x6f   : > { %804 = vmatpush.msrb.mxu1 %v552_v38  ;;  %821 = vmatpush.msrb.mxu2 %v596_v45  ;;  %v590_v2 = vld [vmem:[#allocation7 + $0x670] sm:$0xff]  ;;  %v516_v5 = vld [vmem:[#allocation7 + $0x420] sm:$0xff] }
  0x70   : > { %777 = vmatpush.msrb.mxu0 %v528_v43  ;;  %844 = vmatpush.msrb.mxu3 %v628_v48  ;;  %v622_v3 = vld [vmem:[#allocation7 + $0x770] sm:$0xff]  ;;  %v620_v6 = vld [vmem:[#allocation7 + $0x760] sm:$0xff]  ;;  %v447_v48 = vld [vmem:[#allocation7 + $0x1f8] sm:$0xff] }
  0x71   : > { %805 = vmatpush.msrb.mxu1 %v550_v42  ;;  %822 = vmatpush.msrb.mxu2 %v594_v49  ;;  %v514_v8 = vld [vmem:[#allocation7 + $0x410] sm:$0xff]  ;;  %v512_v14 = vld [vmem:[#allocation7 + $0x400] sm:$0xff] }
  0x72   : > { %778 = vmatpush.msrb.mxu0 %v526_v47  ;;  %845 = vmatpush.msrb.mxu3 %v626_v52  ;;  %v586_v10 = vld [vmem:[#allocation7 + $0x650] sm:$0xff]  ;;  %v584_v15 = vld [vmem:[#allocation7 + $0x640] sm:$0xff] }
  0x73   : > { %806 = vmatpush.msrb.mxu1 %v548_v46  ;;  %823 = vmatpush.msrb.mxu2 %v592_v53  ;;  %v618_v12 = vld [vmem:[#allocation7 + $0x750] sm:$0xff]  ;;  %v616_v16 = vld [vmem:[#allocation7 + $0x740] sm:$0xff] }
  0x74   : > { %779 = vmatpush.msrb.mxu0 %v524_v51  ;;  %846 = vmatpush.msrb.mxu3 %v624_v61  ;;  %v582_v19 = vld [vmem:[#allocation7 + $0x630] sm:$0xff]  ;;  %v580_v22 = vld [vmem:[#allocation7 + $0x620] sm:$0xff]  ;;  %v443_v61 = vld [vmem:[#allocation7 + $0x1d8] sm:$0xff] }
  0x75   : > { %807 = vmatpush.msrb.mxu1 %v546_v50  ;;  %824 = vmatpush.msrb.mxu2 %v590_v2  ;;  %v614_v20 = vld [vmem:[#allocation7 + $0x730] sm:$0xff]  ;;  %v612_v23 = vld [vmem:[#allocation7 + $0x720] sm:$0xff]  ;;  %v441_v2 = vld [vmem:[#allocation7 + $0x1c8] sm:$0xff] }
  0x76   : > { %780 = vmatpush.msrb.mxu0 %v522_v55  ;;  %720 = vmatmul.f32.gmra.mxu1 %v2173_v9  ;;  %v588_v9 = vld [vmem:[#allocation7 + $0x660] sm:$0xff]  ;;  %v578_v25 = vld [vmem:[#allocation7 + $0x610] sm:$0xff]  ;;  %v479_v55 = vld [vmem:[#allocation7 + $0x2f8] sm:$0xff] }
  0x77   : > { %808 = vmatpush.msrb.mxu1 %v544_v54  ;;  %847 = vmatpush.msrb.mxu3 %v622_v3  ;;  %v610_v26 = vld [vmem:[#allocation7 + $0x710] sm:$0xff]  ;;  %v576_v28 = vld [vmem:[#allocation7 + $0x600] sm:$0xff]  ;;  %v473_v3 = vld [vmem:[#allocation7 + $0x2c8] sm:$0xff] }
  0x78   : > { %781 = vmatpush.msrb.mxu0 %v520_v57  ;;  %825 = vmatpush.msrb.mxu2 %v588_v9  ;;  %v608_v29 = vld [vmem:[#allocation7 + $0x700] sm:$0xff]  ;;  %v670_v39 = vld [vmem:[#allocation7 + $0x8f0] sm:$0xff]  ;;  %v445_v57 = vld [vmem:[#allocation7 + $0x1e8] sm:$0xff] }
  0x79   : > { %885 = vmatpush.msra.mxu1 %v415_v56  ;;  %848 = vmatpush.msrb.mxu3 %v620_v6  ;;  %v668_v44 = vld [vmem:[#allocation7 + $0x8e0] sm:$0xff]  ;;  %v666_v45 = vld [vmem:[#allocation7 + $0x8d0] sm:$0xff] }
  0x7a   : > { %782 = vmatpush.msrb.mxu0 %v518_v63  ;;  %826 = vmatpush.msrb.mxu2 %v586_v10  ;;  %v664_v46 = vld [vmem:[#allocation7 + $0x8c0] sm:$0xff]  ;;  %v662_v47 = vld [vmem:[#allocation7 + $0x8b0] sm:$0xff]  ;;  %v471_v10 = vld [vmem:[#allocation7 + $0x2b8] sm:$0xff] }
  0x7b   : > { %886 = vmatpush.msra.mxu1 %v413_v58  ;;  %849 = vmatpush.msrb.mxu3 %v618_v12  ;;  %v660_v56 = vld [vmem:[#allocation7 + $0x8a0] sm:$0xff]  ;;  %v477_v58 = vld [vmem:[#allocation7 + $0x2e8] sm:$0xff]  ;;  %v543_v12 = vld [vmem:[#allocation7 + $0x4f8] sm:$0xff] }
  0x7c   : > { %783 = vmatpush.msrb.mxu0 %v516_v5  ;;  %827 = vmatpush.msrb.mxu2 %v584_v15  ;;  %v656_v63 = vld [vmem:[#allocation7 + $0x880] sm:$0xff]  ;;  %v439_v5 = vld [vmem:[#allocation7 + $0x1b8] sm:$0xff]  ;;  %v469_v15 = vld [vmem:[#allocation7 + $0x2a8] sm:$0xff] }
  0x7d   : > { %887 = vmatpush.msra.mxu1 %v411_v60  ;;  %850 = vmatpush.msrb.mxu3 %v616_v16  ;;  %v658_v60 = vld [vmem:[#allocation7 + $0x890] sm:$0xff]  ;;  %v541_v16 = vld [vmem:[#allocation7 + $0x4e8] sm:$0xff] }
  0x7e   : > { %784 = vmatpush.msrb.mxu0 %v514_v8  ;;  %828 = vmatpush.msrb.mxu2 %v582_v19  ;;  %v539_v19 = vld [vmem:[#allocation7 + $0x4d8] sm:$0xff] }
  0x7f   : > { %888 = vmatpush.msra.mxu1 %v409_v62  ;;  %851 = vmatpush.msrb.mxu3 %v614_v20  ;;  %v475_v62 = vld [vmem:[#allocation7 + $0x2d8] sm:$0xff]  ;;  %v648_v20 = vld [vmem:[#allocation7 + $0x840] sm:$0xff] }
  0x80   : > { %785 = vmatpush.msrb.mxu0 %v512_v14  ;;  %829 = vmatpush.msrb.mxu2 %v580_v22  ;;  %v437_v14 = vld [vmem:[#allocation7 + $0x1a8] sm:$0xff] }
  0x81   : > { %889 = vmatpush.msra.mxu1 %v407_v4  ;;  %852 = vmatpush.msrb.mxu3 %v612_v23  ;;  %v654_v4 = vld [vmem:[#allocation7 + $0x870] sm:$0xff]  ;;  %v465_v22 = vld [vmem:[#allocation7 + $0x288] sm:$0xff] }
  0x82   : > { %830 = vmatpush.msrb.mxu2 %v578_v25  ;;  %v537_v23 = vld [vmem:[#allocation7 + $0x4c8] sm:$0xff]  ;;  %v646_v25 = vld [vmem:[#allocation7 + $0x830] sm:$0xff] }
  0x83   : > { %890 = vmatpush.msra.mxu1 %v405_v7  ;;  %853 = vmatpush.msrb.mxu3 %v610_v26  ;;  %v431_v26 = vld [vmem:[#allocation7 + $0x178] sm:$0xff] }
  0x84   : > { %831 = vmatpush.msrb.mxu2 %v576_v28  ;;  %v535_v28 = vld [vmem:[#allocation7 + $0x4b8] sm:$0xff] }
  0x85   : > { %891 = vmatpush.msra.mxu1 %v403_v13  ;;  %854 = vmatpush.msrb.mxu3 %v608_v29  ;;  %v652_v13 = vld [vmem:[#allocation7 + $0x860] sm:$0xff]  ;;  %v463_v29 = vld [vmem:[#allocation7 + $0x278] sm:$0xff] }
  0x87   : > { %892 = vmatpush.msra.mxu1 %v401_v17  ;;  %v435_v17 = vld [vmem:[#allocation7 + $0x198] sm:$0xff] }
  0x89   : > { %893 = vmatpush.msra.mxu1 %v399_v21  ;;  %v433_v21 = vld [vmem:[#allocation7 + $0x188] sm:$0xff] }
  0x8b   : > { %894 = vmatpush.msra.mxu1 %v397_v24 }
  0x8d   : > { %895 = vmatpush.msra.mxu1 %v395_v27 }
  0x8f   : > { %896 = vmatpush.msra.mxu1 %v393_v30  ;;  %v644_v30 = vld [vmem:[#allocation7 + $0x820] sm:$0xff] }
  0x91   : > { %897 = vmatpush.msra.mxu1 %v391_v32  ;;  %v461_v32 = vld [vmem:[#allocation7 + $0x268] sm:$0xff] }
  0x93   : > { %898 = vmatpush.msra.mxu1 %v389_v33  ;;  %v533_v33 = vld [vmem:[#allocation7 + $0x4a8] sm:$0xff] }
  0x95   : > { %899 = vmatpush.msra.mxu1 %v387_v34  ;;  %v642_v34 = vld [vmem:[#allocation7 + $0x810] sm:$0xff] }
  0x96   : > { %v302_v18 = vpop.permute.xlu2 %301 }
  0x97   : > { %308 = vst.msk [vmem:[#allocation2 + $0x58] sm:$0xff] %vm307_vm6, %v302_v18  ;;  %900 = vmatpush.msra.mxu1 %v385_v35  ;;  %v467_v18 = vld [vmem:[#allocation7 + $0x298] sm:$0xff] }
  0x98   : > { %v427_v35 = vld [vmem:[#allocation7 + $0x158] sm:$0xff] }
  0x9e   : > { %v314_v31 = vpop.permute.xlu2 %313  ;;  %v2285_v6 = vld [vmem:[#allocation2 + $0x58] sm:$0xff] }
  0x9f   : > { %318 = vst.msk [vmem:[#allocation2 + $0x60] sm:$0xff] %vm287_vm7, %v314_v31  ;;  %v429_v31 = vld [vmem:[#allocation7 + $0x168] sm:$0xff] }
  0xa6   : > { %v342_v38 = vpop.permute.xlu2 %341  ;;  %v2287_v8 = vld [vmem:[#allocation2 + $0x60] sm:$0xff] }
  0xa7   : > { %347 = vst.msk [vmem:[#allocation2 + $0x78] sm:$0x7f] %vm346_vm10, %v342_v38  ;;  %v640_v38 = vld [vmem:[#allocation7 + $0x800] sm:$0xff] }
  0xac   : > { %v280_v36 = vpop.permute.xlu0 %279 }
  0xad   : > { %286 = vst.msk [vmem:[#allocation2] sm:$0xfe] %vm285_vm8, %v280_v36  ;;  %v282_v37 = vpop.permute.xlu1 %281  ;;  %v459_v36 = vld [vmem:[#allocation7 + $0x258] sm:$0xff] }
  0xae   : > { %288 = vst.msk [vmem:[#allocation2 + $0x48] sm:$0xff] %vm287_vm7, %v282_v37  ;;  %v360_v52 = vpop.permute.xlu2 %359  ;;  %v531_v37 = vld [vmem:[#allocation7 + $0x498] sm:$0xff] }
  0xaf   : > { %365 = vst.msk [vmem:[#allocation2 + $0x88] sm:$0x7f] %vm364_vm13, %v360_v52  ;;  %v421_v52 = vld [vmem:[#allocation7 + $0x128] sm:$0xff] }
  0xb4   : > { %v300_v40 = vpop.permute.xlu0 %299  ;;  %v2264_v42 = vld [vmem:[#allocation2] sm:$0xff] }
  0xb5   : > { %306 = vst.msk [vmem:[#allocation2 + $0x10] sm:$0xfe] %vm305_vm11, %v300_v40  ;;  %694 = vmatmul.f32.vlgmr.msra.gmra.mxu0 %v2264_v42  ;;  %v312_v43 = vpop.permute.xlu1 %311  ;;  %v2271_v50 = vld [vmem:[#allocation2 + $0x48] sm:$0xff] }
  0xb6   : > { %862 = vmatpush.msra.mxu0 %v670_v39  ;;  %317 = vst.msk [vmem:[#allocation2 + $0x18] sm:$0xff] %vm287_vm7, %v312_v43  ;;  %v425_v39 = vld [vmem:[#allocation7 + $0x148] sm:$0xff] }
  0xb7   : > { %v457_v40 = vld [vmem:[#allocation7 + $0x248] sm:$0xff] }
  0xb8   : > { %863 = vmatpush.msra.mxu0 %v668_v44  ;;  %v529_v43 = vld [vmem:[#allocation7 + $0x488] sm:$0xff]  ;;  %v2305_v44 = vld [vmem:[#allocation2 + $0x78] sm:$0xff] }
  0xba   : > { %864 = vmatpush.msra.mxu0 %v666_v45  ;;  %v2307_v45 = vld [vmem:[#allocation2 + $0x80] sm:$0xff] }
  0xbc   : > { %865 = vmatpush.msra.mxu0 %v664_v46  ;;  %v2269_v49 = vld [vmem:[#allocation2 + $0x10] sm:$0xff]  ;;  %v340_v51 = vpop.permute.xlu0 %339  ;;  %v455_v46 = vld [vmem:[#allocation7 + $0x238] sm:$0xff] }
  0xbd   : > { %740 = vmatmul.f32.vlgmr.msra.gmra.mxu2 %v2269_v49  ;;  %697 = vmatmul.f32.gmra.mxu0 %v2271_v50  ;;  %v324_v53 = vpop.permute.xlu1 %323  ;;  %v2277_v54 = vld [vmem:[#allocation2 + $0x18] sm:$0xff]  ;;  %345 = vst.msk [vmem:[#allocation2 + $0x30] sm:$0xff] %vm287_vm7, %v340_v51 }
  0xbe   : > { %866 = vmatpush.msra.mxu0 %v662_v47  ;;  %908 = vmatpush.msra.mxu2 %v447_v48  ;;  %329 = vst.msk [vmem:[#allocation2 + $0x28] sm:$0xff] %vm307_vm6, %v324_v53  ;;  %v509_v47 = vld [vmem:[#allocation7 + $0x3e8] sm:$0xff]  ;;  %v527_v48 = vld [vmem:[#allocation7 + $0x478] sm:$0xff] }
  0xbf   : > { %763 = vmatmul.f32.vlgmr.msra.gmra.mxu3 %v2277_v54  ;;  %v453_v53 = vld [vmem:[#allocation7 + $0x228] sm:$0xff] }
  0xc0   : > { %931 = vmatpush.msra.mxu3 %v479_v55  ;;  %867 = vmatpush.msra.mxu0 %v660_v56  ;;  %v507_v55 = vld [vmem:[#allocation7 + $0x3d8] sm:$0xff]  ;;  %v525_v56 = vld [vmem:[#allocation7 + $0x468] sm:$0xff] }
  0xc1   : > { %909 = vmatpush.msra.mxu2 %v445_v57  ;;  %v419_v57 = vld [vmem:[#allocation7 + $0x118] sm:$0xff] }
  0xc2   : > { %932 = vmatpush.msra.mxu3 %v477_v58  ;;  %868 = vmatpush.msra.mxu0 %v658_v60  ;;  %v451_v58 = vld [vmem:[#allocation7 + $0x218] sm:$0xff]  ;;  %v505_v60 = vld [vmem:[#allocation7 + $0x3c8] sm:$0xff] }
  0xc3   : > { %910 = vmatpush.msra.mxu2 %v443_v61  ;;  %v523_v61 = vld [vmem:[#allocation7 + $0x458] sm:$0xff] }
  0xc4   : > { %933 = vmatpush.msra.mxu3 %v475_v62  ;;  %869 = vmatpush.msra.mxu0 %v656_v63  ;;  %v358_v9 = vpop.permute.xlu0 %357  ;;  %v2297_v24 = vld [vmem:[#allocation2 + $0x30] sm:$0xff]  ;;  %v417_v62 = vld [vmem:[#allocation7 + $0x108] sm:$0xff] }
  0xc5   : > { %911 = vmatpush.msra.mxu2 %v441_v2  ;;  %v326_v7 = vpop.permute.xlu1 %325  ;;  %v2289_v59 = vld [vmem:[#allocation2 + $0x28] sm:$0xff]  ;;  %786 = vmatmul.f32.vlgmr.msrb.gmra.mxu0 %v2159_v0  ;;  %363 = vst.msk [vmem:[#allocation2 + $0x40] sm:$0xff] %vm307_vm6, %v358_v9  ;;  %v650_v0 = vld [vmem:[#allocation7 + $0x850] sm:$0xff]  ;;  %v519_v9 = vld [vmem:[#allocation7 + $0x438] sm:$0xff] }
  0xc6   : > { %934 = vmatpush.msra.mxu3 %v473_v3  ;;  %743 = vmatmul.f32.gmra.mxu2 %v2285_v6  ;;  %330 = vst.msk [vmem:[#allocation2 + $0x70] sm:$0xff] %vm307_vm6, %v326_v7  ;;  %v449_v63 = vld [vmem:[#allocation7 + $0x208] sm:$0xff]  ;;  %v575_v3 = vld [vmem:[#allocation7 + $0x5f8] sm:$0xff] }
  0xc7   : > { %870 = vmatpush.msra.mxu0 %v654_v4  ;;  %912 = vmatpush.msra.mxu2 %v439_v5  ;;  %v521_v2 = vld [vmem:[#allocation7 + $0x448] sm:$0xff]  ;;  %v607_v4 = vld [vmem:[#allocation7 + $0x6f8] sm:$0xff] }
  0xc8   : > { %766 = vmatmul.f32.gmra.mxu3 %v2287_v8  ;;  %809 = vmatmul.f32.vlgmr.msrb.gmra.mxu1 %v2289_v59  ;;  %v501_v5 = vld [vmem:[#allocation7 + $0x3a8] sm:$0xff] }
  0xc9   : > { %935 = vmatpush.msra.mxu3 %v471_v10  ;;  %977 = vmatpush.msrb.mxu1 %v543_v12  ;;  %v573_v7 = vld [vmem:[#allocation7 + $0x5e8] sm:$0xff] }
  0xca   : > { %871 = vmatpush.msra.mxu0 %v652_v13  ;;  %913 = vmatpush.msra.mxu2 %v437_v14  ;;  %v2316_v10 = vld [vmem:[#allocation2 + $0x88] sm:$0xff]  ;;  %v499_v13 = vld [vmem:[#allocation7 + $0x398] sm:$0xff] }
  0xcb   : > { %936 = vmatpush.msra.mxu3 %v469_v15  ;;  %978 = vmatpush.msrb.mxu1 %v541_v16  ;;  %v605_v12 = vld [vmem:[#allocation7 + $0x6e8] sm:$0xff]  ;;  %v571_v15 = vld [vmem:[#allocation7 + $0x5d8] sm:$0xff] }
  0xcc   : > { %872 = vmatpush.msra.mxu0 %v650_v0  ;;  %914 = vmatpush.msra.mxu2 %v435_v17  ;;  %v2311_v51 = vld [vmem:[#allocation2 + $0x40] sm:$0xff]  ;;  %v517_v14 = vld [vmem:[#allocation7 + $0x428] sm:$0xff]  ;;  %v603_v16 = vld [vmem:[#allocation7 + $0x6d8] sm:$0xff] }
  0xcd   : > { %937 = vmatpush.msra.mxu3 %v467_v18  ;;  %979 = vmatpush.msrb.mxu1 %v539_v19  ;;  %v2299_v27 = vld [vmem:[#allocation2 + $0x70] sm:$0xff]  ;;  %v497_v0 = vld [vmem:[#allocation7 + $0x388] sm:$0xff]  ;;  %v495_v18 = vld [vmem:[#allocation7 + $0x378] sm:$0xff] }
  0xce   : > { %873 = vmatpush.msra.mxu0 %v648_v20  ;;  %915 = vmatpush.msra.mxu2 %v433_v21  ;;  %v569_v17 = vld [vmem:[#allocation7 + $0x5c8] sm:$0xff]  ;;  %v567_v19 = vld [vmem:[#allocation7 + $0x5b8] sm:$0xff] }
  0xcf   : > { %938 = vmatpush.msra.mxu3 %v465_v22  ;;  %980 = vmatpush.msrb.mxu1 %v537_v23  ;;  %v599_v20 = vld [vmem:[#allocation7 + $0x6b8] sm:$0xff]  ;;  %v493_v22 = vld [vmem:[#allocation7 + $0x368] sm:$0xff] }
  0xd0   : > { %832 = vmatmul.f32.vlgmr.msrb.gmra.mxu2 %v2297_v24  ;;  %874 = vmatpush.msra.mxu0 %v646_v25  ;;  %v671_v21 = vld [vmem:[#allocation7 + $0x8f8] sm:$0xff]  ;;  %v565_v23 = vld [vmem:[#allocation7 + $0x5a8] sm:$0xff]  ;;  %v1790_v25 = vld [vmem:[#allocation2 + $0x50] sm:$0xff] }
  0xd1   : > { %916 = vmatpush.msra.mxu2 %v431_v26  ;;  %812 = vmatmul.f32.gmra.mxu1 %v2299_v27  ;;  %v597_v26 = vld [vmem:[#allocation7 + $0x6a8] sm:$0xff] }
  0xd2   : > { %855 = vmatmul.f32.vlgmr.msrb.gmra.mxu3 %v2180_v11  ;;  %981 = vmatpush.msrb.mxu1 %v535_v28  ;;  %v511_v11 = vld [vmem:[#allocation7 + $0x3f8] sm:$0xff]  ;;  %v669_v28 = vld [vmem:[#allocation7 + $0x8e8] sm:$0xff] }
  0xd3   : > { %939 = vmatpush.msra.mxu3 %v463_v29  ;;  %789 = vmatmul.f32.gmra.mxu0 %v2161_v1  ;;  %v423_v1 = vld [vmem:[#allocation7 + $0x138] sm:$0xff] }
  0xd4   : > { %875 = vmatpush.msra.mxu0 %v644_v30  ;;  %917 = vmatpush.msra.mxu2 %v429_v31  ;;  %v491_v29 = vld [vmem:[#allocation7 + $0x358] sm:$0xff] }
  0xd5   : > { %940 = vmatpush.msra.mxu3 %v461_v32  ;;  %982 = vmatpush.msrb.mxu1 %v533_v33  ;;  %v563_v30 = vld [vmem:[#allocation7 + $0x598] sm:$0xff]  ;;  %v489_v33 = vld [vmem:[#allocation7 + $0x348] sm:$0xff] }
  0xd6   : > { %876 = vmatpush.msra.mxu0 %v642_v34  ;;  %918 = vmatpush.msra.mxu2 %v427_v35  ;;  %v595_v31 = vld [vmem:[#allocation7 + $0x698] sm:$0xff]  ;;  %v561_v34 = vld [vmem:[#allocation7 + $0x588] sm:$0xff] }
  0xd7   : > { %941 = vmatpush.msra.mxu3 %v459_v36  ;;  %983 = vmatpush.msrb.mxu1 %v531_v37  ;;  %v667_v32 = vld [vmem:[#allocation7 + $0x8d8] sm:$0xff]  ;;  %v593_v35 = vld [vmem:[#allocation7 + $0x688] sm:$0xff] }
  0xd8   : > { %877 = vmatpush.msra.mxu0 %v640_v38  ;;  %919 = vmatpush.msra.mxu2 %v425_v39  ;;  %v665_v36 = vld [vmem:[#allocation7 + $0x8c8] sm:$0xff]  ;;  %v487_v37 = vld [vmem:[#allocation7 + $0x338] sm:$0xff] }
  0xd9   : > { %942 = vmatpush.msra.mxu3 %v457_v40  ;;  %984 = vmatpush.msrb.mxu1 %v529_v43  ;;  %v559_v38 = vld [vmem:[#allocation7 + $0x578] sm:$0xff]  ;;  %v485_v40 = vld [vmem:[#allocation7 + $0x328] sm:$0xff] }
  0xda   : > { %954 = vmatpush.msrb.mxu0 %v511_v11  ;;  %835 = vmatmul.f32.gmra.mxu2 %v2305_v44  ;;  %v663_v39 = vld [vmem:[#allocation7 + $0x8b8] sm:$0xff]  ;;  %v557_v11 = vld [vmem:[#allocation7 + $0x568] sm:$0xff] }
  0xdb   : > { %920 = vmatpush.msra.mxu2 %v423_v1  ;;  %858 = vmatmul.f32.gmra.mxu3 %v2307_v45  ;;  %v589_v43 = vld [vmem:[#allocation7 + $0x668] sm:$0xff] }
  0xdc   : > { %901 = vmatmul.f32.vlgmr.msra.gmra.mxu1 %v2264_v42  ;;  %943 = vmatpush.msra.mxu3 %v455_v46  ;;  %v503_v42 = vld [vmem:[#allocation7 + $0x3b8] sm:$0xff]  ;;  %v661_v1 = vld [vmem:[#allocation7 + $0x8a8] sm:$0xff] }
  0xdd   : > { %955 = vmatpush.msrb.mxu0 %v509_v47  ;;  %985 = vmatpush.msrb.mxu1 %v527_v48  ;;  %v483_v46 = vld [vmem:[#allocation7 + $0x318] sm:$0xff] }
  0xde   : > { %878 = vmatmul.f32.vlgmr.msra.gmra.mxu0 %v2311_v51  ;;  %921 = vmatpush.msra.mxu2 %v421_v52  ;;  %v555_v47 = vld [vmem:[#allocation7 + $0x558] sm:$0xff] }
  0xdf   : > { %944 = vmatpush.msra.mxu3 %v453_v53  ;;  %956 = vmatpush.msrb.mxu0 %v507_v55  ;;  %v587_v48 = vld [vmem:[#allocation7 + $0x658] sm:$0xff]  ;;  %v481_v53 = vld [vmem:[#allocation7 + $0x308] sm:$0xff] }
  0xe0   : > { %986 = vmatpush.msrb.mxu1 %v525_v56  ;;  %922 = vmatpush.msra.mxu2 %v419_v57  ;;  %v659_v52 = vld [vmem:[#allocation7 + $0x898] sm:$0xff]  ;;  %v553_v55 = vld [vmem:[#allocation7 + $0x548] sm:$0xff] }
  0xe1   : > { %945 = vmatpush.msra.mxu3 %v451_v58  ;;  %957 = vmatpush.msrb.mxu0 %v505_v60  ;;  %v585_v56 = vld [vmem:[#allocation7 + $0x648] sm:$0xff]  ;;  %v639_v57 = vld [vmem:[#allocation7 + $0x7f8] sm:$0xff] }
  0xe2   : > { %987 = vmatpush.msrb.mxu1 %v523_v61  ;;  %923 = vmatpush.msra.mxu2 %v417_v62  ;;  %v657_v58 = vld [vmem:[#allocation7 + $0x888] sm:$0xff]  ;;  %v551_v60 = vld [vmem:[#allocation7 + $0x538] sm:$0xff] }
  0xe3   : > { %946 = vmatpush.msra.mxu3 %v449_v63  ;;  %958 = vmatpush.msrb.mxu0 %v503_v42  ;;  %v583_v61 = vld [vmem:[#allocation7 + $0x638] sm:$0xff]  ;;  %v637_v62 = vld [vmem:[#allocation7 + $0x7e8] sm:$0xff] }
  0xe4   : > { %988 = vmatpush.msrb.mxu1 %v521_v2  ;;  %1000 = vmatpush.msrb.mxu2 %v575_v3  ;;  %v655_v63 = vld [vmem:[#allocation7 + $0x878] sm:$0xff]  ;;  %v549_v42 = vld [vmem:[#allocation7 + $0x528] sm:$0xff]  ;;  %v1791_v2 = vld [vmem:[#allocation2 + $0x20] sm:$0xff] }
  0xe5   : > { %924 = vmatmul.f32.vlgmr.msra.gmra.mxu2 %v2219_v41  ;;  %1023 = vmatpush.msrb.mxu3 %v607_v4  ;;  %v515_v41 = vld [vmem:[#allocation7 + $0x418] sm:$0xff]  ;;  %v581_v3 = vld [vmem:[#allocation7 + $0x628] sm:$0xff] }
  0xe6   : > { %904 = vmatmul.f32.gmra.mxu1 %v2271_v50  ;;  %947 = vmatmul.f32.vlgmr.msra.gmra.mxu3 %v2269_v49  ;;  %v601_v50 = vld [vmem:[#allocation7 + $0x6c8] sm:$0xff]  ;;  %v635_v4 = vld [vmem:[#allocation7 + $0x7d8] sm:$0xff] }
  0xe7   : > { %959 = vmatpush.msrb.mxu0 %v501_v5  ;;  %989 = vmatpush.msrb.mxu1 %v519_v9  ;;  %v513_v49 = vld [vmem:[#allocation7 + $0x408] sm:$0xff]  ;;  %v547_v9 = vld [vmem:[#allocation7 + $0x518] sm:$0xff] }
  0xe8   : > { %1001 = vmatpush.msrb.mxu2 %v573_v7  ;;  %881 = vmatmul.f32.gmra.mxu0 %v2316_v10  ;;  %v653_v5 = vld [vmem:[#allocation7 + $0x868] sm:$0xff]  ;;  %v579_v7 = vld [vmem:[#allocation7 + $0x618] sm:$0xff] }
  0xe9   : > { %1024 = vmatpush.msrb.mxu3 %v605_v12  ;;  %960 = vmatpush.msrb.mxu0 %v499_v13  ;;  %v651_v12 = vld [vmem:[#allocation7 + $0x858] sm:$0xff]  ;;  %v545_v13 = vld [vmem:[#allocation7 + $0x508] sm:$0xff] }
  0xea   : > { %990 = vmatpush.msrb.mxu1 %v517_v14  ;;  %1002 = vmatpush.msrb.mxu2 %v571_v15  ;;  %v577_v14 = vld [vmem:[#allocation7 + $0x608] sm:$0xff]  ;;  %v631_v15 = vld [vmem:[#allocation7 + $0x7b8] sm:$0xff] }
  0xeb   : > { %1025 = vmatpush.msrb.mxu3 %v603_v16  ;;  %961 = vmatpush.msrb.mxu0 %v497_v0  ;;  %v649_v16 = vld [vmem:[#allocation7 + $0x848] sm:$0xff] }
  0xec   : > { %991 = vmatpush.msrb.mxu1 %v515_v41  ;;  %1003 = vmatpush.msrb.mxu2 %v569_v17  ;;  %v629_v0 = vld [vmem:[#allocation7 + $0x7a8] sm:$0xff]  ;;  %v647_v41 = vld [vmem:[#allocation7 + $0x838] sm:$0xff] }
  0xed   : > { %1026 = vmatpush.msrb.mxu3 %v601_v50  ;;  %962 = vmatpush.msrb.mxu0 %v495_v18  ;;  %v627_v17 = vld [vmem:[#allocation7 + $0x798] sm:$0xff]  ;;  %v1792_v50 = vld [vmem:[#allocation2 + $0x68] sm:$0xff] }
  0xee   : > { %992 = vmatpush.msrb.mxu1 %v513_v49  ;;  %1004 = vmatpush.msrb.mxu2 %v567_v19  ;;  %v645_v18 = vld [vmem:[#allocation7 + $0x828] sm:$0xff]  ;;  %v643_v19 = vld [vmem:[#allocation7 + $0x818] sm:$0xff] }
  0xef   : > { %927 = vmatmul.f32.gmra.mxu2 %v1790_v25  ;;  %1027 = vmatpush.msrb.mxu3 %v599_v20  ;;  %v625_v49 = vld [vmem:[#allocation7 + $0x788] sm:$0xff]  ;;  %v611_v25 = vld [vmem:[#allocation7 + $0x718] sm:$0xff] }
  0xf0   : > { %1069 = vmatpush.msra.mxu1 %v671_v21  ;;  %950 = vmatmul.f32.gmra.mxu3 %v2285_v6  ;;  %v591_v6 = vld [vmem:[#allocation7 + $0x678] sm:$0xff]  ;;  %v621_v20 = vld [vmem:[#allocation7 + $0x768] sm:$0xff] }
  0xf1   : > { %963 = vmatpush.msrb.mxu0 %v493_v22  ;;  %1005 = vmatpush.msrb.mxu2 %v565_v23  ;;  %v617_v21 = vld [vmem:[#allocation7 + $0x748] sm:$0xff]  ;;  %v615_v22 = vld [vmem:[#allocation7 + $0x738] sm:$0xff] }
  0xf2   : > { %1028 = vmatpush.msrb.mxu3 %v597_v26  ;;  %1070 = vmatpush.msra.mxu1 %v669_v28  ;;  %v613_v23 = vld [vmem:[#allocation7 + $0x728] sm:$0xff]  ;;  %v1793_v26 = vld [vmem:[#allocation2 + $0x38] sm:$0xff] }
  0xf3   : > { %964 = vmatpush.msrb.mxu0 %v491_v29  ;;  %1006 = vmatpush.msrb.mxu2 %v563_v30  ;;  %v1226_v28 = vld [vmem:[#allocation10 + $0xf0] sm:$0xff]  ;;  %v1224_v29 = vld [vmem:[#allocation10 + $0xe0] sm:$0xff]  ;;  %v1223_v30 = vld [vmem:[#allocation10 + $0xd8] sm:$0xff] }
  0xf4   : > { %1029 = vmatpush.msrb.mxu3 %v595_v31  ;;  %1071 = vmatpush.msra.mxu1 %v667_v32  ;;  %v1222_v31 = vld [vmem:[#allocation10 + $0xd0] sm:$0xff] }
  0xf5   : > { %965 = vmatpush.msrb.mxu0 %v489_v33  ;;  %1007 = vmatpush.msrb.mxu2 %v561_v34  ;;  %v1220_v33 = vld [vmem:[#allocation10 + $0xc0] sm:$0xff]  ;;  %v2331_v34 = vld [vmem:[#allocation9] sm:$0x3] }
  0xf6   : > { %1030 = vmatpush.msrb.mxu3 %v593_v35  ;;  %1072 = vmatpush.msra.mxu1 %v665_v36  ;;  %v674_v35 = vperm.slane %v2331_v34, 0  ;;  %v718_v36 = vpop.f32.mrf.mxu1 }
  0xf7   : > { %966 = vmatpush.msrb.mxu0 %v487_v37  ;;  %1008 = vmatpush.msrb.mxu2 %v559_v38 }
  0xf8   : > { %1031 = vmatpush.msrb.mxu3 %v591_v6  ;;  %1073 = vmatpush.msra.mxu1 %v663_v39  ;;  %v1219_v6 = vld [vmem:[#allocation10 + $0xb8] sm:$0xff]  ;;  %v1218_v39 = vld [vmem:[#allocation10 + $0xb0] sm:$0xff] }
  0xf9   : > { %967 = vmatpush.msrb.mxu0 %v485_v40  ;;  %1009 = vmatpush.msrb.mxu2 %v557_v11  ;;  %v1217_v11 = vld [vmem:[#allocation10 + $0xa8] sm:$0xff] }
  0xfa   : > { %1032 = vmatpush.msrb.mxu3 %v589_v43  ;;  %1074 = vmatpush.msra.mxu1 %v661_v1  ;;  %v1216_v1 = vld [vmem:[#allocation10 + $0xa0] sm:$0xff] }
  0xfb   : > { %968 = vmatpush.msrb.mxu0 %v483_v46  ;;  %1010 = vmatpush.msrb.mxu2 %v555_v47 }
  0xfc   : > { %1033 = vmatpush.msrb.mxu3 %v587_v48  ;;  %1075 = vmatpush.msra.mxu1 %v659_v52 }
  0xfd   : > { %969 = vmatpush.msrb.mxu0 %v481_v53  ;;  %1011 = vmatpush.msrb.mxu2 %v553_v55  ;;  %v1215_v53 = vld [vmem:[#allocation10 + $0x98] sm:$0xff] }
  0xfe   : > { %970 = vmatmul.f32.vlgmr.msrb.gmra.mxu0 %v2277_v54  ;;  %1034 = vmatpush.msrb.mxu3 %v585_v56  ;;  %v633_v54 = vld [vmem:[#allocation7 + $0x7c8] sm:$0xff]  ;;  %v721_v47 = vpop.f32.mrf.mxu1 }
  0xff   : > { %1046 = vmatpush.msra.mxu0 %v639_v57  ;;  %1076 = vmatpush.msra.mxu1 %v657_v58  ;;  %v1214_v57 = vld [vmem:[#allocation10 + $0x90] sm:$0xff] }
 0x100   : > { %993 = vmatmul.f32.vlgmr.msrb.gmra.mxu1 %v1791_v2  ;;  %1012 = vmatpush.msrb.mxu2 %v551_v60  ;;  %v1213_v60 = vld [vmem:[#allocation10 + $0x88] sm:$0xff] }
 0x101   : > { %1035 = vmatpush.msrb.mxu3 %v583_v61  ;;  %1047 = vmatpush.msra.mxu0 %v637_v62  ;;  %v1212_v61 = vld [vmem:[#allocation10 + $0x80] sm:$0xff] }
 0x102   : > { %1077 = vmatpush.msra.mxu1 %v655_v63  ;;  %1013 = vmatpush.msrb.mxu2 %v549_v42 }
 0x103   : > { %1036 = vmatpush.msrb.mxu3 %v581_v3  ;;  %1048 = vmatpush.msra.mxu0 %v635_v4 }
 0x104   : > { %1078 = vmatpush.msra.mxu1 %v653_v5  ;;  %1014 = vmatpush.msrb.mxu2 %v547_v9 }
 0x105   : > { %1037 = vmatpush.msrb.mxu3 %v579_v7  ;;  %1049 = vmatpush.msra.mxu0 %v633_v54 }
 0x106   : > { %1079 = vmatpush.msra.mxu1 %v651_v12  ;;  %1015 = vmatpush.msrb.mxu2 %v545_v13 }
 0x107   : > { %973 = vmatmul.f32.gmra.mxu0 %v2287_v8  ;;  %1016 = vmatmul.f32.vlgmr.msrb.gmra.mxu2 %v2289_v59  ;;  %v623_v8 = vld [vmem:[#allocation7 + $0x778] sm:$0xff]  ;;  %v641_v59 = vld [vmem:[#allocation7 + $0x808] sm:$0xff] }
 0x108   : > { %1038 = vmatpush.msrb.mxu3 %v577_v14  ;;  %1050 = vmatpush.msra.mxu0 %v631_v15 }
 0x109   : > { %1080 = vmatpush.msra.mxu1 %v649_v16  ;;  %1039 = vmatmul.f32.vlgmr.msrb.gmra.mxu3 %v2297_v24  ;;  %v619_v24 = vld [vmem:[#allocation7 + $0x758] sm:$0xff] }
 0x10a   : > { %996 = vmatmul.f32.gmra.mxu1 %v1792_v50  ;;  %1051 = vmatpush.msra.mxu0 %v629_v0 }
 0x10b   : > { %1081 = vmatpush.msra.mxu1 %v647_v41 }
 0x10c   : > { %1052 = vmatpush.msra.mxu0 %v627_v17 }
 0x10d   : > { %1082 = vmatpush.msra.mxu1 %v645_v18 }
 0x10e   : > { %1053 = vmatpush.msra.mxu0 %v625_v49 }
 0x10f   : > { %1083 = vmatpush.msra.mxu1 %v643_v19  ;;  %1019 = vmatmul.f32.gmra.mxu2 %v2299_v27  ;;  %v609_v27 = vld [vmem:[#allocation7 + $0x708] sm:$0xff] }
 0x110   : > { %1054 = vmatpush.msra.mxu0 %v623_v8 }
 0x111   : > { %1084 = vmatpush.msra.mxu1 %v641_v59  ;;  %1042 = vmatmul.f32.gmra.mxu3 %v2305_v44  ;;  %v1227_v44 = vld [vmem:[#allocation10 + $0xf8] sm:$0xff] }
 0x112   : > { %1085 = vmatmul.f32.vlgmr.msra.gmra.mxu1 %v2311_v51  ;;  %1055 = vmatpush.msra.mxu0 %v621_v20  ;;  %v1225_v51 = vld [vmem:[#allocation10 + $0xe8] sm:$0xff] }
 0x113   : > { %1363 = vmatpush.msra.mxu3 %v1227_v44  ;;  %v1258_v44 = vld [vmem:[#allocation10 + $0x1f0] sm:$0xff] }
 0x114   : > { %1056 = vmatpush.msra.mxu0 %v619_v24 }
 0x115   : > { %1364 = vmatpush.msra.mxu3 %v1226_v28  ;;  %v1257_v28 = vld [vmem:[#allocation10 + $0x1e8] sm:$0xff] }
 0x116   : > { %1057 = vmatpush.msra.mxu0 %v617_v21 }
 0x117   : > { %1365 = vmatpush.msra.mxu3 %v1225_v51  ;;  %v1256_v51 = vld [vmem:[#allocation10 + $0x1e0] sm:$0xff] }
 0x118   : > { %1058 = vmatpush.msra.mxu0 %v615_v22 }
 0x119   : > { %1366 = vmatpush.msra.mxu3 %v1224_v29  ;;  %v1255_v29 = vld [vmem:[#allocation10 + $0x1d8] sm:$0xff] }
 0x11a   : > { %1088 = vmatmul.f32.gmra.mxu1 %v2316_v10  ;;  %1059 = vmatpush.msra.mxu0 %v613_v23  ;;  %v1221_v10 = vld [vmem:[#allocation10 + $0xc8] sm:$0xff] }
 0x11b   : > { %1367 = vmatpush.msra.mxu3 %v1223_v30  ;;  %v1254_v30 = vld [vmem:[#allocation10 + $0x1d0] sm:$0xff] }
 0x11c   : > { %1060 = vmatpush.msra.mxu0 %v611_v25 }
 0x11d   : > { %1368 = vmatpush.msra.mxu3 %v1222_v31  ;;  %v1211_v31 = vld [vmem:[#allocation10 + $0x78] sm:$0xff] }
 0x11e   : > { %1061 = vmatpush.msra.mxu0 %v609_v27  ;;  %1340 = vmatpush.msra.mxu2 %v1211_v31  ;;  %v1281_v31 = vld [vmem:[#allocation10 + $0x2a8] sm:$0xff] }
 0x11f   : > { %1062 = vmatmul.f32.vlgmr.msra.gmra.mxu0 %v1793_v26  ;;  %1369 = vmatpush.msra.mxu3 %v1221_v10  ;;  %v1259_v26 = vld [vmem:[#allocation10 + $0x1f8] sm:$0xff]  ;;  %v1253_v10 = vld [vmem:[#allocation10 + $0x1c8] sm:$0xff] }
 0x120   : > { %1409 = vmatpush.msrb.mxu1 %v1259_v26  ;;  %v1238_v26 = vld [vmem:[#allocation10 + $0x150] sm:$0xff] }
 0x121   : > { %1370 = vmatpush.msra.mxu3 %v1220_v33  ;;  %v1252_v33 = vld [vmem:[#allocation10 + $0x1c0] sm:$0xff] }
 0x122   : > { %1410 = vmatpush.msrb.mxu1 %v1258_v44  ;;  %v1314_v44 = vld [vmem:[#allocation10 + $0x3b0] sm:$0xff] }
 0x123   : > { %1371 = vmatpush.msra.mxu3 %v1219_v6  ;;  %v1249_v6 = vld [vmem:[#allocation10 + $0x1a8] sm:$0xff] }
 0x124   : > { %1411 = vmatpush.msrb.mxu1 %v1257_v28  ;;  %v1271_v28 = vld [vmem:[#allocation10 + $0x258] sm:$0xff] }
 0x125   : > { %1372 = vmatpush.msra.mxu3 %v1218_v39  ;;  %v1206_v39 = vld [vmem:[#allocation10 + $0x50] sm:$0xff] }
 0x126   : > { %1412 = vmatpush.msrb.mxu1 %v1256_v51  ;;  %v1313_v51 = vld [vmem:[#allocation10 + $0x3a8] sm:$0xff] }
 0x127   : > { %1065 = vmatmul.f32.gmra.mxu0 %v2307_v45  ;;  %1373 = vmatpush.msra.mxu3 %v1217_v11  ;;  %v1290_v11 = vld [vmem:[#allocation10 + $0x2f0] sm:$0xff] }
 0x128   : > { %1413 = vmatpush.msrb.mxu1 %v1255_v29  ;;  %v1270_v29 = vld [vmem:[#allocation10 + $0x250] sm:$0xff] }
 0x129   : > { %1374 = vmatpush.msra.mxu3 %v1216_v1  ;;  %v1205_v1 = vld [vmem:[#allocation10 + $0x48] sm:$0xff] }
 0x12a   : > { %1414 = vmatpush.msrb.mxu1 %v1254_v30  ;;  %v1312_v30 = vld [vmem:[#allocation10 + $0x3a0] sm:$0xff] }
 0x12b   : > { %1375 = vmatpush.msra.mxu3 %v1215_v53  ;;  %v1245_v53 = vld [vmem:[#allocation10 + $0x188] sm:$0xff] }
 0x12c   : > { %1415 = vmatpush.msrb.mxu1 %v1253_v10  ;;  %v1237_v10 = vld [vmem:[#allocation10 + $0x148] sm:$0xff] }
 0x12d   : > { %1376 = vmatpush.msra.mxu3 %v1214_v57  ;;  %v1201_v57 = vld [vmem:[#allocation10 + $0x28] sm:$0xff] }
 0x12e   : > { %1416 = vmatpush.msrb.mxu1 %v1252_v33  ;;  %v1280_v33 = vld [vmem:[#allocation10 + $0x2a0] sm:$0xff] }
 0x12f   : > { %1377 = vmatpush.msra.mxu3 %v1213_v60  ;;  %v1200_v60 = vld [vmem:[#allocation10 + $0x20] sm:$0xff] }
 0x131   : > { %1378 = vmatpush.msra.mxu3 %v1212_v61  ;;  %v1322_v61 = vld [vmem:[#allocation10 + $0x3f0] sm:$0xff] }
 0x132   : > { %v695_v32 = vpop.f32.mrf.mxu0 }
 0x133   : > { %v696_v37 = vadd.f32 %v695_v32, %v674_v35  ;;  %v1210_v32 = vld [vmem:[#allocation10 + $0x70] sm:$0xff] }
 0x134   : > { %1341 = vmatpush.msra.mxu2 %v1210_v32  ;;  %v1269_v32 = vld [vmem:[#allocation10 + $0x248] sm:$0xff] }
 0x135   : > { %v719_v43 = vadd.f32 %v718_v36, %v696_v37  ;;  %v1251_v36 = vld [vmem:[#allocation10 + $0x1b8] sm:$0xff]  ;;  %v1250_v37 = vld [vmem:[#allocation10 + $0x1b0] sm:$0xff] }
 0x136   : > { %1417 = vmatpush.msrb.mxu1 %v1251_v36  ;;  %v1279_v36 = vld [vmem:[#allocation10 + $0x298] sm:$0xff] }
 0x138   : > { %1418 = vmatpush.msrb.mxu1 %v1250_v37  ;;  %v1268_v37 = vld [vmem:[#allocation10 + $0x240] sm:$0xff] }
 0x13a   : > { %v698_v45 = vpop.f32.mrf.mxu0  ;;  %1419 = vmatpush.msrb.mxu1 %v1249_v6  ;;  %v1278_v6 = vld [vmem:[#allocation10 + $0x290] sm:$0xff] }
 0x13b   : > { %v699_v55 = vadd.f32 %v698_v45, %v674_v35  ;;  %v1209_v35 = vld [vmem:[#allocation10 + $0x68] sm:$0xff]  ;;  %v1208_v45 = vld [vmem:[#allocation10 + $0x60] sm:$0xff] }
 0x13c   : > { %1342 = vmatpush.msra.mxu2 %v1209_v35  ;;  %v1236_v35 = vld [vmem:[#allocation10 + $0x140] sm:$0xff] }
 0x13d   : > { %v722_v62 = vadd.f32 %v721_v47, %v699_v55  ;;  %v1204_v47 = vld [vmem:[#allocation10 + $0x40] sm:$0xff]  ;;  %v1202_v55 = vld [vmem:[#allocation10 + $0x30] sm:$0xff] }
 0x13e   : > { %1343 = vmatpush.msra.mxu2 %v1208_v45  ;;  %v1311_v45 = vld [vmem:[#allocation10 + $0x398] sm:$0xff] }
 0x140   : > { %v741_v38 = vpop.f32.mrf.mxu2 }
 0x141   : > { %v742_v46 = vadd.f32 %v741_v38, %v719_v43  ;;  %v1207_v38 = vld [vmem:[#allocation10 + $0x58] sm:$0xff]  ;;  %v1248_v43 = vld [vmem:[#allocation10 + $0x1a0] sm:$0xff] }
 0x142   : > { %v764_v40 = vpop.f32.mrf.mxu3  ;;  %v787_v48 = vpop.f32.mrf.mxu0  ;;  %1344 = vmatpush.msra.mxu2 %v1207_v38  ;;  %1420 = vmatpush.msrb.mxu1 %v1248_v43  ;;  %v1235_v38 = vld [vmem:[#allocation10 + $0x138] sm:$0xff]  ;;  %v1309_v43 = vld [vmem:[#allocation10 + $0x388] sm:$0xff] }
 0x143   : > { %v765_v56 = vadd.f32 %v764_v40, %v742_v46  ;;  %v1291_v40 = vld [vmem:[#allocation10 + $0x2f8] sm:$0xff] }
 0x144   : > { %1455 = vmatpush.msrb.mxu3 %v1291_v40  ;;  %1345 = vmatpush.msra.mxu2 %v1206_v39  ;;  %v1247_v46 = vld [vmem:[#allocation10 + $0x198] sm:$0xff]  ;;  %v1234_v39 = vld [vmem:[#allocation10 + $0x130] sm:$0xff] }
 0x145   : > { %v788_v63 = vadd.f32 %v787_v48, %v765_v56  ;;  %v810_v2 = vpop.f32.mrf.mxu1  ;;  %v1246_v48 = vld [vmem:[#allocation10 + $0x190] sm:$0xff]  ;;  %1421 = vmatpush.msrb.mxu1 %v1247_v46  ;;  %v1244_v56 = vld [vmem:[#allocation10 + $0x180] sm:$0xff] }
 0x146   : > { %1456 = vmatpush.msrb.mxu3 %v1290_v11  ;;  %1346 = vmatpush.msra.mxu2 %v1205_v1  ;;  %v1310_v40 = vld [vmem:[#allocation10 + $0x390] sm:$0xff]  ;;  %v1267_v11 = vld [vmem:[#allocation10 + $0x238] sm:$0xff]  ;;  %v1308_v46 = vld [vmem:[#allocation10 + $0x380] sm:$0xff] }
 0x147   : > { %v811_v4 = vadd.f32 %v810_v2, %v788_v63  ;;  %1422 = vmatpush.msrb.mxu1 %v1246_v48  ;;  %v1289_v63 = vld [vmem:[#allocation10 + $0x2e8] sm:$0xff]  ;;  %v1288_v2 = vld [vmem:[#allocation10 + $0x2e0] sm:$0xff]  ;;  %v1266_v1 = vld [vmem:[#allocation10 + $0x230] sm:$0xff] }
 0x148   : > { %1347 = vmatpush.msra.mxu2 %v1204_v47  ;;  %1457 = vmatpush.msrb.mxu3 %v1289_v63  ;;  %v1277_v47 = vld [vmem:[#allocation10 + $0x288] sm:$0xff]  ;;  %v1263_v63 = vld [vmem:[#allocation10 + $0x218] sm:$0xff] }
 0x149   : > { %v744_v52 = vpop.f32.mrf.mxu2  ;;  %1423 = vmatpush.msrb.mxu1 %v1245_v53  ;;  %v1233_v48 = vld [vmem:[#allocation10 + $0x128] sm:$0xff]  ;;  %v1276_v53 = vld [vmem:[#allocation10 + $0x280] sm:$0xff] }
 0x14a   : > { %v745_v42 = vadd.f32 %v744_v52, %v722_v62  ;;  %v1203_v52 = vld [vmem:[#allocation10 + $0x38] sm:$0xff]  ;;  %1458 = vmatpush.msrb.mxu3 %v1288_v2  ;;  %v1262_v2 = vld [vmem:[#allocation10 + $0x210] sm:$0xff] }
 0x14b   : > { %v767_v58 = vpop.f32.mrf.mxu3  ;;  %1348 = vmatpush.msra.mxu2 %v1203_v52  ;;  %1424 = vmatpush.msrb.mxu1 %v1244_v56  ;;  %v1199_v62 = vld [vmem:[#allocation10 + $0x18] sm:$0xff]  ;;  %v1265_v52 = vld [vmem:[#allocation10 + $0x228] sm:$0xff] }
 0x14c   : > { %v768_v9 = vadd.f32 %v767_v58, %v745_v42  ;;  %v1323_v58 = vld [vmem:[#allocation10 + $0x3f8] sm:$0xff]  ;;  %v1321_v42 = vld [vmem:[#allocation10 + $0x3e8] sm:$0xff] }
 0x14d   : > { %1349 = vmatpush.msra.mxu2 %v1202_v55  ;;  %1501 = vmatpush.msra.mxu1 %v1323_v58  ;;  %v1232_v55 = vld [vmem:[#allocation10 + $0x120] sm:$0xff]  ;;  %v1307_v56 = vld [vmem:[#allocation10 + $0x378] sm:$0xff] }
 0x14e   : > { %v813_v14 = vpop.f32.mrf.mxu1  ;;  %v1264_v58 = vld [vmem:[#allocation10 + $0x220] sm:$0xff] }
 0x14f   : > { %1350 = vmatpush.msra.mxu2 %v1201_v57  ;;  %1502 = vmatpush.msra.mxu1 %v1322_v61  ;;  %v1231_v57 = vld [vmem:[#allocation10 + $0x118] sm:$0xff]  ;;  %v1230_v61 = vld [vmem:[#allocation10 + $0x110] sm:$0xff] }
 0x150   : > { %v790_v3 = vpop.f32.mrf.mxu0 }
 0x151   : > { %v791_v12 = vadd.f32 %v790_v3, %v768_v9  ;;  %1351 = vmatpush.msra.mxu2 %v1200_v60  ;;  %v1198_v3 = vld [vmem:[#allocation10 + $0x10] sm:$0xff]  ;;  %v1320_v9 = vld [vmem:[#allocation10 + $0x3e0] sm:$0xff]  ;;  %1503 = vmatpush.msra.mxu1 %v1321_v42  ;;  %v1305_v42 = vld [vmem:[#allocation10 + $0x368] sm:$0xff] }
 0x152   : > { %v1306_v60 = vld [vmem:[#allocation10 + $0x370] sm:$0xff] }
 0x153   : > { %v833_v5 = vpop.f32.mrf.mxu2  ;;  %v814_v0 = vadd.f32 %v813_v14, %v791_v12  ;;  %1352 = vmatpush.msra.mxu2 %v1199_v62  ;;  %v1242_v12 = vld [vmem:[#allocation10 + $0x170] sm:$0xff]  ;;  %1504 = vmatpush.msra.mxu1 %v1320_v9  ;;  %v1196_v14 = vld [vmem:[#allocation10] sm:$0xff] }
 0x154   : > { %v834_v7 = vadd.f32 %v833_v5, %v811_v4  ;;  %v1287_v4 = vld [vmem:[#allocation10 + $0x2d8] sm:$0xff]  ;;  %v1228_v9 = vld [vmem:[#allocation10 + $0x100] sm:$0xff] }
 0x155   : > { %v856_v54 = vpop.f32.mrf.mxu3  ;;  %v1243_v5 = vld [vmem:[#allocation10 + $0x178] sm:$0xff]  ;;  %1353 = vmatpush.msra.mxu2 %v1198_v3  ;;  %1459 = vmatpush.msrb.mxu3 %v1287_v4  ;;  %v1229_v3 = vld [vmem:[#allocation10 + $0x108] sm:$0xff]  ;;  %v1304_v4 = vld [vmem:[#allocation10 + $0x360] sm:$0xff] }
 0x156   : > { %v857_v13 = vadd.f32 %v856_v54, %v834_v7  ;;  %v1197_v7 = vld [vmem:[#allocation10 + $0x8] sm:$0xff]  ;;  %1386 = vmatpush.msrb.mxu0 %v1243_v5  ;;  %v1286_v54 = vld [vmem:[#allocation10 + $0x2d0] sm:$0xff] }
 0x157   : > { %1354 = vmatpush.msra.mxu2 %v1197_v7  ;;  %1460 = vmatpush.msrb.mxu3 %v1286_v54  ;;  %v1261_v5 = vld [vmem:[#allocation10 + $0x208] sm:$0xff]  ;;  %v1260_v7 = vld [vmem:[#allocation10 + $0x200] sm:$0xff]  ;;  %v1303_v54 = vld [vmem:[#allocation10 + $0x358] sm:$0xff] }
 0x158   : > { %1387 = vmatpush.msrb.mxu0 %v1242_v12  ;;  %v1302_v12 = vld [vmem:[#allocation10 + $0x350] sm:$0xff] }
 0x159   : > { %1355 = vmatpush.msra.mxu2 %v1196_v14  ;;  %v1301_v14 = vld [vmem:[#allocation10 + $0x348] sm:$0xff] }
 0x15b   : > { %v879_v15 = vpop.f32.mrf.mxu0 }
 0x15c   : > { %v880_v16 = vadd.f32 %v879_v15, %v857_v13  ;;  %v1319_v13 = vld [vmem:[#allocation10 + $0x3d8] sm:$0xff]  ;;  %v1318_v15 = vld [vmem:[#allocation10 + $0x3d0] sm:$0xff] }
 0x15d   : > { %v836_v41 = vpop.f32.mrf.mxu2  ;;  %1505 = vmatpush.msra.mxu1 %v1319_v13 }
 0x15e   : > { %v2334_v17 = vmax.f32 %v880_v16, 0.0  ;;  %v837_v50 = vadd.f32 %v836_v41, %v814_v0  ;;  %v859_v18 = vpop.f32.mrf.mxu3  ;;  %v1275_v16 = vld [vmem:[#allocation10 + $0x278] sm:$0xff]  ;;  %v1317_v0 = vld [vmem:[#allocation10 + $0x3c8] sm:$0xff]  ;;  %v1274_v41 = vld [vmem:[#allocation10 + $0x270] sm:$0xff] }
 0x15f   : > { %1506 = vmatpush.msra.mxu1 %v1318_v15  ;;  %1432 = vmatpush.msrb.mxu2 %v1275_v16  ;;  %v1300_v16 = vld [vmem:[#allocation10 + $0x340] sm:$0xff] }
 0x160   : > { %1128 = vrot.lane.b32.xlu2 %v2334_v17, %s1997_s21  ;;  %v1099_v49 = vrot.slane %v2334_v17, 7  ;;  %v860_v19 = vadd.f32 %v859_v18, %v837_v50  ;;  %v1151_v22 = vrot.slane %v2334_v17, 1  ;;  %v1316_v50 = vld [vmem:[#allocation10 + $0x3c0] sm:$0xff]  ;;  %v1285_v18 = vld [vmem:[#allocation10 + $0x2c8] sm:$0xff] }
 0x161   : > { %1461 = vmatpush.msrb.mxu3 %v1285_v18  ;;  %1507 = vmatpush.msra.mxu1 %v1317_v0  ;;  %v1299_v0 = vld [vmem:[#allocation10 + $0x338] sm:$0xff] }
 0x162   : > { %1102 = vrot.lane.b32.xlu0 %v1099_v49, %s1997_s21  ;;  %1113 = vst [vmem:[#allocation3 + $0x8] sm:$0xfe] %v1099_v49  ;;  %1433 = vmatpush.msrb.mxu2 %v1274_v41  ;;  %v1298_v41 = vld [vmem:[#allocation10 + $0x330] sm:$0xff] }
 0x163   : > { %1508 = vmatpush.msra.mxu1 %v1316_v50  ;;  %v1297_v50 = vld [vmem:[#allocation10 + $0x328] sm:$0xff] }
 0x165   : > { %v882_v8 = vpop.f32.mrf.mxu0 }
 0x166   : > { %v883_v59 = vadd.f32 %v882_v8, %v860_v19  ;;  %v1273_v19 = vld [vmem:[#allocation10 + $0x268] sm:$0xff]  ;;  %v1284_v8 = vld [vmem:[#allocation10 + $0x2c0] sm:$0xff] }
 0x167   : > { %1462 = vmatpush.msrb.mxu3 %v1284_v8  ;;  %1434 = vmatpush.msrb.mxu2 %v1273_v19  ;;  %v1296_v19 = vld [vmem:[#allocation10 + $0x320] sm:$0xff]  ;;  %v1295_v8 = vld [vmem:[#allocation10 + $0x318] sm:$0xff] }
 0x168   : > { %v2340_v20 = vmax.f32 %v883_v59, 0.0  ;;  %v1240_v59 = vld [vmem:[#allocation10 + $0x160] sm:$0xff] }
 0x169   : > { %v1179_v24 = vld [vmem:[#allocation3 + $0x8] sm:$0xff] }
 0x16a   : > { %1130 = vrot.lane.b32.xlu2 %v2340_v20, %s1997_s21  ;;  %1140 = vrot.lane.b32.xlu0 %v2334_v17, %s1998_s26  ;;  %v1100_v21 = vrot.slane %v2340_v20, 7  ;;  %v1152_v23 = vrot.slane %v2340_v20, 1 }
 0x16b   : > { %1379 = vmatmul.f32.vlgmr.msra.gmra.mxu3 %v1179_v24  ;;  %v1283_v24 = vld [vmem:[#allocation10 + $0x2b8] sm:$0xff] }
 0x16c   : > { %v1101_v25 = vsel %vm275_vm0, %v1099_v49, %v1100_v21  ;;  %v2351_v27 = vsel %vm335_vm1, %v1151_v22, %v1152_v23  ;;  %1166 = vst [vmem:[#allocation3 + $0x80] sm:$0x7f] %v1152_v23  ;;  %v1315_v21 = vld [vmem:[#allocation10 + $0x3b8] sm:$0xff]  ;;  %v1272_v22 = vld [vmem:[#allocation10 + $0x260] sm:$0xff]  ;;  %1463 = vmatpush.msrb.mxu3 %v1283_v24  ;;  %v1293_v24 = vld [vmem:[#allocation10 + $0x308] sm:$0xff] }
 0x16d   : > { %1104 = vrot.lane.b32.xlu1 %v1101_v25, %s1997_s21  ;;  %1509 = vmatpush.msra.mxu1 %v1315_v21 }
 0x16e   : > { %1435 = vmatpush.msrb.mxu2 %v1272_v22 }
 0x16f   : > { %1510 = vmatpush.msra.mxu1 %v1314_v44  ;;  %v1339_v44 = vld [vmem:[#allocation10 + $0x478] sm:$0xff] }
 0x170   : > { %1436 = vmatpush.msrb.mxu2 %v1271_v28 }
 0x171   : > { %1511 = vmatpush.msra.mxu1 %v1313_v51  ;;  %v1338_v51 = vld [vmem:[#allocation10 + $0x470] sm:$0xff] }
 0x172   : > { %1120 = vrot.lane.b32.xlu2 %v1101_v25, %s1998_s26  ;;  %1142 = vrot.lane.b32.xlu0 %v2340_v20, %s1998_s26 }
 0x173   : > { %1382 = vmatmul.f32.gmra.mxu3 %v1101_v25  ;;  %v1282_v25 = vld [vmem:[#allocation10 + $0x2b0] sm:$0xff]  ;;  %1437 = vmatpush.msrb.mxu2 %v1270_v29  ;;  %v1337_v29 = vld [vmem:[#allocation10 + $0x468] sm:$0xff] }
 0x174   : > { %1464 = vmatpush.msrb.mxu3 %v1282_v25  ;;  %1512 = vmatpush.msra.mxu1 %v1312_v30  ;;  %v1194_v25 = vld [vmem:[#allocation3 + $0x80] sm:$0xff]  ;;  %v1336_v30 = vld [vmem:[#allocation10 + $0x460] sm:$0xff] }
 0x175   : > { %1118 = vrot.lane.b32.xlu1 %v1099_v49, %s1998_s26  ;;  %v1241_v49 = vld [vmem:[#allocation10 + $0x168] sm:$0xff]  ;;  %1438 = vmatpush.msrb.mxu2 %v1269_v32  ;;  %v1335_v32 = vld [vmem:[#allocation10 + $0x458] sm:$0xff] }
 0x176   : > { %1388 = vmatpush.msrb.mxu0 %v1241_v49  ;;  %1465 = vmatpush.msrb.mxu3 %v1281_v31 }
 0x177   : > { %1513 = vmatpush.msra.mxu1 %v1311_v45  ;;  %1439 = vmatpush.msrb.mxu2 %v1268_v37  ;;  %v1333_v45 = vld [vmem:[#allocation10 + $0x448] sm:$0xff]  ;;  %v1332_v37 = vld [vmem:[#allocation10 + $0x440] sm:$0xff] }
 0x178   : > { %1389 = vmatpush.msrb.mxu0 %v1240_v59  ;;  %1466 = vmatpush.msrb.mxu3 %v1280_v33  ;;  %v1294_v59 = vld [vmem:[#allocation10 + $0x310] sm:$0xff] }
 0x179   : > { %1514 = vmatpush.msra.mxu1 %v1310_v40  ;;  %1440 = vmatpush.msrb.mxu2 %v1267_v11  ;;  %v1334_v33 = vld [vmem:[#allocation10 + $0x450] sm:$0xff] }
 0x17a   : > { %1154 = vrot.lane.b32.xlu2 %v2351_v27, %s1997_s21  ;;  %1156 = vrot.lane.b32.xlu0 %v1152_v23, %s1997_s21  ;;  %v1330_v40 = vld [vmem:[#allocation10 + $0x430] sm:$0xff] }
 0x17b   : > { %1467 = vmatpush.msrb.mxu3 %v1279_v36  ;;  %1515 = vmatpush.msra.mxu1 %v1309_v43 }
 0x17c   : > { %1441 = vmatpush.msrb.mxu2 %v1266_v1  ;;  %v1329_v1 = vld [vmem:[#allocation10 + $0x428] sm:$0xff] }
 0x17d   : > { %1170 = vrot.lane.b32.xlu1 %v2351_v27, %s1998_s26  ;;  %1468 = vmatpush.msrb.mxu3 %v1278_v6 }
 0x17e   : > { %1516 = vmatpush.msra.mxu1 %v1308_v46  ;;  %1442 = vmatpush.msrb.mxu2 %v1265_v52  ;;  %v1328_v46 = vld [vmem:[#allocation10 + $0x420] sm:$0xff]  ;;  %v1326_v52 = vld [vmem:[#allocation10 + $0x410] sm:$0xff] }
 0x17f   : > { %1469 = vmatpush.msrb.mxu3 %v1277_v47 }
 0x180   : > { %1443 = vmatpush.msrb.mxu2 %v1264_v58 }
 0x181   : > { %1470 = vmatpush.msrb.mxu3 %v1276_v53 }
 0x182   : > { %1444 = vmatpush.msrb.mxu2 %v1263_v63 }
 0x183   : > { %1689 = vmatpush.msra.mxu3 %v1307_v56 }
 0x184   : > { %1445 = vmatpush.msrb.mxu2 %v1262_v2 }
 0x185   : > { %1172 = vrot.lane.b32.xlu1 %v1152_v23, %s1998_s26  ;;  %v1239_v23 = vld [vmem:[#allocation10 + $0x158] sm:$0xff]  ;;  %1690 = vmatpush.msra.mxu3 %v1306_v60 }
 0x186   : > { %1390 = vmatpush.msrb.mxu0 %v1239_v23  ;;  %1446 = vmatpush.msrb.mxu2 %v1261_v5  ;;  %v1292_v23 = vld [vmem:[#allocation10 + $0x300] sm:$0xff]  ;;  %v971_v5 = vpop.f32.mrf.mxu0 }
 0x187   : > { %1691 = vmatpush.msra.mxu3 %v1305_v42 }
 0x188   : > { %1391 = vmatpush.msrb.mxu0 %v1238_v26  ;;  %1447 = vmatpush.msrb.mxu2 %v1260_v7 }
 0x189   : > { %1692 = vmatpush.msra.mxu3 %v1304_v4 }
 0x18a   : > { %1392 = vmatpush.msrb.mxu0 %v1237_v10 }
 0x18b   : > { %1693 = vmatpush.msra.mxu3 %v1303_v54 }
 0x18c   : > { %1393 = vmatpush.msrb.mxu0 %v1236_v35 }
 0x18d   : > { %1694 = vmatpush.msra.mxu3 %v1302_v12 }
 0x18e   : > { %1394 = vmatpush.msrb.mxu0 %v1235_v38 }
 0x18f   : > { %1695 = vmatpush.msra.mxu3 %v1301_v14 }
 0x190   : > { %1395 = vmatpush.msrb.mxu0 %v1234_v39  ;;  %v1331_v39 = vld [vmem:[#allocation10 + $0x438] sm:$0xff] }
 0x191   : > { %1696 = vmatpush.msra.mxu3 %v1300_v16 }
 0x192   : > { %1396 = vmatpush.msrb.mxu0 %v1233_v48  ;;  %v1327_v48 = vld [vmem:[#allocation10 + $0x418] sm:$0xff] }
 0x193   : > { %1697 = vmatpush.msra.mxu3 %v1299_v0 }
 0x194   : > { %1397 = vmatpush.msrb.mxu0 %v1232_v55 }
 0x195   : > { %1698 = vmatpush.msra.mxu3 %v1298_v41 }
 0x196   : > { %1398 = vmatpush.msrb.mxu0 %v1231_v57 }
 0x197   : > { %1699 = vmatpush.msra.mxu3 %v1297_v50 }
 0x198   : > { %1399 = vmatpush.msrb.mxu0 %v1230_v61  ;;  %v902_v61 = vpop.f32.mrf.mxu1 }
 0x199   : > { %1700 = vmatpush.msra.mxu3 %v1296_v19 }
 0x19a   : > { %1400 = vmatpush.msrb.mxu0 %v1229_v3 }
 0x19b   : > { %1701 = vmatpush.msra.mxu3 %v1295_v8 }
 0x19c   : > { %1401 = vmatpush.msrb.mxu0 %v1228_v9  ;;  %v675_v9 = vperm.slane %v2331_v34, 1 }
 0x19d   : > { %1702 = vmatpush.msra.mxu3 %v1294_v59 }
 0x19e   : > { %1478 = vmatpush.msra.mxu0 %v1307_v56  ;;  %v1325_v56 = vld [vmem:[#allocation10 + $0x408] sm:$0xff] }
 0x19f   : > { %1703 = vmatpush.msra.mxu3 %v1293_v24 }
 0x1a0   : > { %1479 = vmatpush.msra.mxu0 %v1306_v60  ;;  %v905_v63 = vpop.f32.mrf.mxu1 }
 0x1a1   : > { %1704 = vmatpush.msra.mxu3 %v1292_v23 }
 0x1a2   : > { %1480 = vmatpush.msra.mxu0 %v1305_v42  ;;  %v925_v42 = vpop.f32.mrf.mxu2 }
 0x1a4   : > { %1481 = vmatpush.msra.mxu0 %v1304_v4 }
 0x1a6   : > { %1482 = vmatpush.msra.mxu0 %v1303_v54 }
 0x1a8   : > { %1483 = vmatpush.msra.mxu0 %v1302_v12  ;;  %v994_v3 = vpop.f32.mrf.mxu1  ;;  %v903_v12 = vadd.f32 %v902_v61, %v675_v9 }
 0x1aa   : > { %1484 = vmatpush.msra.mxu0 %v1301_v14  ;;  %v928_v4 = vpop.f32.mrf.mxu2  ;;  %v926_v14 = vadd.f32 %v925_v42, %v903_v12 }
 0x1ac   : > { %1485 = vmatpush.msra.mxu0 %v1300_v16  ;;  %v906_v16 = vadd.f32 %v905_v63, %v675_v9 }
 0x1ae   : > { %1486 = vmatpush.msra.mxu0 %v1299_v0 }
 0x1b0   : > { %1487 = vmatpush.msra.mxu0 %v1298_v41  ;;  %v997_v7 = vpop.f32.mrf.mxu1 }
 0x1b2   : > { %1488 = vmatpush.msra.mxu0 %v1297_v50  ;;  %v1017_v54 = vpop.f32.mrf.mxu2 }
 0x1b4   : > { %1489 = vmatpush.msra.mxu0 %v1296_v19 }
 0x1b6   : > { %1490 = vmatpush.msra.mxu0 %v1295_v8 }
 0x1b8   : > { %1491 = vmatpush.msra.mxu0 %v1294_v59  ;;  %v1086_v41 = vpop.f32.mrf.mxu1 }
 0x1ba   : > { %v1129_v62 = vpop.permute.xlu2 %1128  ;;  %1492 = vmatpush.msra.mxu0 %v1293_v24  ;;  %v1020_v50 = vpop.f32.mrf.mxu2 }
 0x1bb   : > { %1134 = vst.msk [vmem:[#allocation3 + $0x18] sm:$0xff] %vm287_vm7, %v1129_v62  ;;  %v948_v62 = vpop.f32.mrf.mxu3 }
 0x1bc   : > { %1493 = vmatpush.msra.mxu0 %v1292_v23  ;;  %v949_v0 = vadd.f32 %v948_v62, %v926_v14 }
 0x1c0   : > { %v1089_v34 = vpop.f32.mrf.mxu1 }
 0x1c2   : > { %v1181_v13 = vld [vmem:[#allocation3 + $0x18] sm:$0xff] }
 0x1c3   : > { %1425 = vmatmul.f32.vlgmr.msrb.gmra.mxu1 %v1181_v13  ;;  %v951_v2 = vpop.f32.mrf.mxu3  ;;  %v974_v13 = vpop.f32.mrf.mxu0 }
 0x1c4   : > { %v1131_v15 = vpop.permute.xlu2 %1130 }
 0x1c5   : > { %1135 = vst.msk [vmem:[#allocation3 + $0x60] sm:$0xff] %vm287_vm7, %v1131_v15 }
 0x1cb   : > { %v1063_v19 = vpop.f32.mrf.mxu0 }
 0x1cc   : > { %v1121_v18 = vpop.permute.xlu2 %1120  ;;  %v1190_v49 = vld [vmem:[#allocation3 + $0x60] sm:$0xff] }
 0x1cd   : > { %1125 = vst.msk [vmem:[#allocation3 + $0x58] sm:$0xff] %vm307_vm6, %v1121_v18  ;;  %1428 = vmatmul.f32.gmra.mxu1 %v1190_v49  ;;  %v929_v18 = vadd.f32 %v928_v4, %v906_v16  ;;  %v972_v49 = vadd.f32 %v971_v5, %v949_v0 }
 0x1cf   : > { %v952_v8 = vadd.f32 %v951_v2, %v929_v18  ;;  %v995_v59 = vadd.f32 %v994_v3, %v972_v49 }
 0x1d4   : > { %v1155_v21 = vpop.permute.xlu2 %1154  ;;  %v1103_v22 = vpop.permute.xlu0 %1102  ;;  %v1189_v55 = vld [vmem:[#allocation3 + $0x58] sm:$0xff] }
 0x1d5   : > { %1160 = vst.msk [vmem:[#allocation3 + $0x30] sm:$0xff] %vm287_vm7, %v1155_v21  ;;  %1517 = vmatmul.f32.vlgmr.msra.gmra.mxu1 %v2351_v27  ;;  %v975_v21 = vadd.f32 %v974_v13, %v952_v8 }
 0x1d6   : > { %1108 = vst.msk [vmem:[#allocation3] sm:$0xfe] %vm285_vm8, %v1103_v22  ;;  %v1018_v22 = vadd.f32 %v1017_v54, %v995_v59 }
 0x1dc   : > { %v1141_v26 = vpop.permute.xlu0 %1140  ;;  %v1184_v57 = vld [vmem:[#allocation3 + $0x30] sm:$0xff] }
 0x1dd   : > { %1520 = vmatmul.f32.gmra.mxu1 %v1194_v25  ;;  %1146 = vst.msk [vmem:[#allocation3 + $0x28] sm:$0xff] %vm307_vm6, %v1141_v26  ;;  %v1178_v28 = vld [vmem:[#allocation3] sm:$0xff]  ;;  %v998_v25 = vadd.f32 %v997_v7, %v975_v21 }
 0x1de   : > { %1356 = vmatmul.f32.vlgmr.msra.gmra.mxu2 %v1178_v28 }
 0x1df   : > { %v1105_v27 = vpop.permute.xlu1 %1104  ;;  %1524 = vmatpush.msra.mxu2 %v1339_v44  ;;  %v1066_v44 = vpop.f32.mrf.mxu0  ;;  %v1021_v28 = vadd.f32 %v1020_v50, %v998_v25 }
 0x1e0   : > { %1109 = vst.msk [vmem:[#allocation3 + $0x48] sm:$0xff] %vm287_vm7, %v1105_v27 }
 0x1e1   : > { %1525 = vmatpush.msra.mxu2 %v1338_v51 }
 0x1e3   : > { %1526 = vmatpush.msra.mxu2 %v1337_v29 }
 0x1e4   : > { %v1143_v31 = vpop.permute.xlu0 %1142  ;;  %v1183_v10 = vld [vmem:[#allocation3 + $0x28] sm:$0xff] }
 0x1e5   : > { %1147 = vst.msk [vmem:[#allocation3 + $0x70] sm:$0xff] %vm307_vm6, %v1143_v31  ;;  %1527 = vmatpush.msra.mxu2 %v1336_v30  ;;  %1471 = vmatmul.f32.vlgmr.msrb.gmra.mxu3 %v1183_v10 }
 0x1e7   : > { %v1119_v35 = vpop.permute.xlu1 %1118  ;;  %v1187_v36 = vld [vmem:[#allocation3 + $0x48] sm:$0xff]  ;;  %1528 = vmatpush.msra.mxu2 %v1335_v32 }
 0x1e8   : > { %1124 = vst.msk [vmem:[#allocation3 + $0x10] sm:$0xfe] %vm305_vm11, %v1119_v35  ;;  %1359 = vmatmul.f32.gmra.mxu2 %v1187_v36 }
 0x1e9   : > { %1529 = vmatpush.msra.mxu2 %v1334_v33 }
 0x1eb   : > { %1530 = vmatpush.msra.mxu2 %v1333_v45 }
 0x1ec   : > { %v1157_v38 = vpop.permute.xlu0 %1156  ;;  %v1192_v6 = vld [vmem:[#allocation3 + $0x70] sm:$0xff] }
 0x1ed   : > { %1161 = vst.msk [vmem:[#allocation3 + $0x78] sm:$0x7f] %vm346_vm10, %v1157_v38  ;;  %1531 = vmatpush.msra.mxu2 %v1332_v37  ;;  %1474 = vmatmul.f32.gmra.mxu3 %v1192_v6 }
 0x1ef   : > { %v1171_v11 = vpop.permute.xlu1 %1170  ;;  %v1180_v43 = vld [vmem:[#allocation3 + $0x10] sm:$0xff]  ;;  %1532 = vmatpush.msra.mxu2 %v1331_v39 }
 0x1f0   : > { %1176 = vst.msk [vmem:[#allocation3 + $0x40] sm:$0xff] %vm307_vm6, %v1171_v11  ;;  %1402 = vmatmul.f32.vlgmr.msrb.gmra.mxu0 %v1180_v43  ;;  %1448 = vmatmul.f32.vlgmr.msrb.gmra.mxu2 %v2334_v17  ;;  %v1324_v17 = vld [vmem:[#allocation10 + $0x400] sm:$0xff] }
 0x1f1   : > { %1533 = vmatpush.msra.mxu2 %v1330_v40 }
 0x1f3   : > { %1534 = vmatpush.msra.mxu2 %v1329_v1 }
 0x1f4   : > { %v1193_v47 = vld [vmem:[#allocation3 + $0x78] sm:$0xff] }
 0x1f5   : > { %1535 = vmatpush.msra.mxu2 %v1328_v46  ;;  %1497 = vmatmul.f32.vlgmr.msra.gmra.mxu3 %v1193_v47 }
 0x1f7   : > { %v1173_v53 = vpop.permute.xlu1 %1172  ;;  %1536 = vmatpush.msra.mxu2 %v1327_v48  ;;  %v1186_v58 = vld [vmem:[#allocation3 + $0x40] sm:$0xff] }
 0x1f8   : > { %1177 = vst.msk [vmem:[#allocation3 + $0x88] sm:$0x7f] %vm364_vm13, %v1173_v53  ;;  %1405 = vmatmul.f32.gmra.mxu0 %v1189_v55  ;;  %1451 = vmatmul.f32.gmra.mxu2 %v2340_v20  ;;  %v1040_v20 = vpop.f32.mrf.mxu3 }
 0x1f9   : > { %1537 = vmatpush.msra.mxu2 %v1326_v52  ;;  %v1041_v26 = vadd.f32 %v1040_v20, %v1018_v22 }
 0x1fb   : > { %1538 = vmatpush.msra.mxu2 %v1325_v56  ;;  %v1064_v51 = vadd.f32 %v1063_v19, %v1041_v26 }
 0x1fd   : > { %1539 = vmatpush.msra.mxu2 %v1324_v17  ;;  %v1087_v30 = vadd.f32 %v1086_v41, %v1064_v51 }
 0x1ff   : > { %v1195_v60 = vld [vmem:[#allocation3 + $0x88] sm:$0xff] }
 0x200   : > { %1494 = vmatmul.f32.vlgmr.msra.gmra.mxu0 %v1184_v57  ;;  %1540 = vmatmul.f32.vlgmr.msra.gmra.mxu2 %v1186_v58  ;;  %v1043_v15 = vpop.f32.mrf.mxu3 }
 0x201   : > { %v1044_v29 = vadd.f32 %v1043_v15, %v1021_v28 }
 0x203   : > { %v1067_v32 = vadd.f32 %v1066_v44, %v1044_v29 }
 0x205   : > { %v1090_v36 = vadd.f32 %v1089_v34, %v1067_v32 }
 0x208   : > { %1543 = vmatmul.f32.gmra.mxu2 %v1195_v60  ;;  %v1380_v24 = vpop.f32.mrf.mxu3 }
 0x210   : > { %v1383_v27 = vpop.f32.mrf.mxu3 }
 0x240   : > { %v1426_v31 = vpop.f32.mrf.mxu1 }
 0x24a   : > { %v1429_v40 = vpop.f32.mrf.mxu1 }
 0x252   : > { %v1518_v58 = vpop.f32.mrf.mxu1 }
 0x25a   : > { %v1521_v3 = vpop.f32.mrf.mxu1 }
 0x261   : > { %v1357_v23 = vpop.f32.mrf.mxu2 }
 0x262   : > { %v1358_v33 = vadd.f32 %v1357_v23, %v1087_v30 }
 0x264   : > { %v1381_v45 = vadd.f32 %v1380_v24, %v1358_v33 }
 0x268   : > { %v1472_v37 = vpop.f32.mrf.mxu3 }
 0x26b   : > { %v1360_v10 = vpop.f32.mrf.mxu2 }
 0x26c   : > { %v1361_v38 = vadd.f32 %v1360_v10, %v1090_v36 }
 0x26d   : > { %v1403_v35 = vpop.f32.mrf.mxu0 }
 0x26e   : > { %v1404_v6 = vadd.f32 %v1403_v35, %v1381_v45  ;;  %v1384_v1 = vadd.f32 %v1383_v27, %v1361_v38 }
 0x270   : > { %v1427_v43 = vadd.f32 %v1426_v31, %v1404_v6  ;;  %v1475_v48 = vpop.f32.mrf.mxu3 }
 0x273   : > { %v1449_v39 = vpop.f32.mrf.mxu2 }
 0x274   : > { %v1450_v46 = vadd.f32 %v1449_v39, %v1427_v43 }
 0x275   : > { %v1406_v11 = vpop.f32.mrf.mxu0 }
 0x276   : > { %v1407_v47 = vadd.f32 %v1406_v11, %v1384_v1  ;;  %v1473_v55 = vadd.f32 %v1472_v37, %v1450_v46 }
 0x278   : > { %v1430_v53 = vadd.f32 %v1429_v40, %v1407_v47  ;;  %v1498_v42 = vpop.f32.mrf.mxu3 }
 0x27b   : > { %v1452_v52 = vpop.f32.mrf.mxu2 }
 0x27c   : > { %v1453_v17 = vadd.f32 %v1452_v52, %v1430_v53 }
 0x27d   : > { %v1495_v56 = vpop.f32.mrf.mxu0 }
 0x27e   : > { %v1496_v57 = vadd.f32 %v1495_v56, %v1473_v55  ;;  %v1476_v60 = vadd.f32 %v1475_v48, %v1453_v17 }
 0x280   : > { %v1519_v61 = vadd.f32 %v1518_v58, %v1496_v57  ;;  %v1499_v2 = vadd.f32 %v1498_v42, %v1476_v60 }
 0x282   : > { %v1522_v4 = vadd.f32 %v1521_v3, %v1499_v2 }
 0x283   : > { %v1541_v62 = vpop.f32.mrf.mxu2 }
 0x284   : > { %v1542_v63 = vadd.f32 %v1541_v62, %v1519_v61 }
 0x286   : > { %1547 = vst [vmem:[%s265_s24] sm:$0xff] %v1542_v63 }
 0x28b   : > { %v1544_v5 = vpop.f32.mrf.mxu2 }
 0x28c   : > { %v1545_v20 = vadd.f32 %v1544_v5, %v1522_v4 }
 0x28e   : > { %1548 = vst [vmem:[%s265_s24 + $0x8] sm:$0xff] %v1545_v20 }
 0x28f   : > { %1941 = shalt.err (!%p1938_p10)
}
 0x290   : > { %s2000_s29 = smov 128  }
 0x291   : > { %1719 = dma.vmem_to_hbm [thread:$0]  (%p2111_p3), %s1563_s20, 256, %s1565_s6, %s1550_s19, %s2000_s29, %s2000_s29, %s1997_s21  }
 0x292 PF: > { %s1579_s26 = sand.u32 1, %s1976_s15   ;;  %p2427_p12 = scmp.ge.s32.totalorder %s1988_s18, 2 }
 0x293   : > { %s1580_s23 = scalar_lea.sflag [#allocation6], %s1579_s26 }
 0x294   : > { %p1736_p13 = pnand %p2427_p12, %p2061_p6 }
 0x296   : > { %p1737_p0 = pneg %p1736_p13 }
 0x298   : > { %1971 = dma.done.wait (%p1737_p0), %s1580_s23, 256  }
 0x299   : > { %1973 = vsyncadd (%p1737_p0), %s1580_s23, 4294967040  ;;  %p19_p5 = scmp.ge.s32.totalorder %s2098_s25, 4   ;;  %s2428_s15 = smov %s1980_s16 }
 0x29a   : > { %s2429_s16 = smov %s1984_s17  ;;  %s2430_s17 = smov %s2107_s30 }
 0x29b   : > { %s2431_s18 = smov %s2098_s25  ;;  %21 = sbr.rel (!%p19_p5) target bundleno = 7 (0x7), region = 93 }
 0x2a0   :  { %1586 = vsyncpa [#allocation5], 1 }
 0x2a1   :  { %1588 = vsyncpa [#allocation5 + $0x1], 1 }
 0x2a2   :  { %1589 = vsyncpa [#allocation8], 1 }
 0x2a3   :  { %1590 = vsyncpa [#allocation11], 1 }
 0x2a4   :  { %1591 = vsyncpa [#allocation6], 1 }
 0x2a5   :  { %1593 = vsyncpa [#allocation6 + $0x1], 1 }

</bundles_post_ra>
